<compile_context>
chip_gen: v6e
topology: v6e:2x2x1
jax: 0.10.0
libtpu: 0.0.40
codegen_flags: <defaults>
</compile_context>

<pallas_src>
import functools

import jax
import jax.numpy as jnp
from jax import lax
from jax.experimental import pallas as pl
from jax.experimental.pallas import tpu as pltpu


# ----------------------------- in-kernel helpers ----------------------------

def _sigmoid(x):
    # exp and approx-reciprocal both ride the EUP slot -> cheap on the VPU.
    return pl.reciprocal(1.0 + jnp.exp(-x), approx=True)


def _silu(x):
    return x * _sigmoid(x)


# ------------------------- single fused MBConv kernel -----------------------

def _mbconv_kernel(*refs, H, W, Ho, Wo, stride, expand, use_residual):
    if expand:
        (x_ref, w_exp_ref, shift1_ref, w_dw_ref, shift2_ref,
         w1_ref, b1_ref, w2_ref, b2_ref, wp_ref, shiftp_ref,
         o_ref, hp_ref, dw_ref) = refs
    else:
        (x_ref, w_dw_ref, shift2_ref,
         w1_ref, b1_ref, w2_ref, b2_ref, wp_ref, shiftp_ref,
         o_ref, hp_ref, dw_ref) = refs

    C = hp_ref.shape[-1]          # hidden channels (lane axis)
    HWo = Ho * Wo

    x = x_ref[0]                  # (H*W, Cin) bf16

    # -- 1) expand 1x1 conv (+ folded BN) + SiLU (MXU, f32 accumulate) --------
    if expand:
        h = jnp.dot(x, w_exp_ref[...], preferred_element_type=jnp.float32)
        h = _silu(h + shift1_ref[...])
    else:
        h = x.astype(jnp.float32)

    # halo handling in VMEM: zero only the 1-pixel border, write the interior.
    zrow = jnp.zeros((1, W + 2, C), jnp.float32)
    zcol = jnp.zeros((H + 2, 1, C), jnp.float32)
    hp_ref[0:1, :, :] = zrow
    hp_ref[H + 1:H + 2, :, :] = zrow
    hp_ref[:, 0:1, :] = zcol
    hp_ref[:, W + 1:W + 2, :] = zcol
    hp_ref[1:H + 1, 1:W + 1, :] = h.reshape(H, W, C)

    # -- 2) depthwise 3x3 conv (+ folded BN) + SiLU, one output row at a time -
    w9 = w_dw_ref[...]            # (9, C) f32 (BN scale folded)
    shift2 = shift2_ref[...]      # (1, C) f32

    def dw_row(i, carry):
        acc = jnp.zeros((Wo, C), jnp.float32)
        for dy in range(3):
            for dx in range(3):
                if stride == 1:
                    tap = hp_ref[i + dy, dx:dx + Wo, :]
                else:
                    tap = hp_ref[i * stride + dy, pl.ds(dx, Wo, stride), :]
                acc = acc + tap * w9[dy * 3 + dx:dy * 3 + dx + 1, :]
        dw_ref[i] = _silu(acc + shift2).astype(jnp.bfloat16)
        return carry

    lax.fori_loop(0, Ho, dw_row, 0, unroll=True)

    # -- 3) squeeze-and-excitation gate ----------------------------------------
    dw = dw_ref[...].reshape(HWo, C)                                    # bf16
    pooled = jnp.sum(dw.astype(jnp.float32), axis=0, keepdims=True) * (1.0 / HWo)
    pooled8 = jnp.broadcast_to(pooled, (8, C)).astype(jnp.bfloat16)     # pad M for MXU
    e = jnp.dot(pooled8, w1_ref[...],
                preferred_element_type=jnp.float32) + b1_ref[...]
    e = _silu(e)
    s8 = jnp.dot(e.astype(jnp.bfloat16), w2_ref[...],
                 preferred_element_type=jnp.float32) + b2_ref[...]
    s = _sigmoid(s8)[0:1, :]                                            # (1, C)

    # -- 4) channel rescale + project 1x1 conv (+ folded BN) + residual --------
    # SE gate applied as a row-broadcast on the VMEM-resident bf16 activation
    # (no extra HBM traffic, no recast pass).
    y = dw * s.astype(jnp.bfloat16)
    out = jnp.dot(y, wp_ref[...],
                  preferred_element_type=jnp.float32) + shiftp_ref[...]
    if use_residual:
        out = out + x.astype(jnp.float32)
    o_ref[0] = out.astype(o_ref.dtype)


# ----------------------------- forward wrapper ------------------------------

@functools.partial(jax.jit, static_argnames=("expand_ratio", "stride"))
def mbconv_forward(x_nchw, params, expand_ratio, stride=1):
    """MBConvBlock forward (PyTorch semantics, inference BN): NCHW in -> NCHW out."""
    N, Cin, H, W = x_nchw.shape
    hidden = Cin * expand_ratio
    Cout = params["w_proj"].shape[1]
    Cr = params["w1_se"].shape[1]
    Ho = (H + 2 - 3) // stride + 1
    Wo = (W + 2 - 3) // stride + 1
    HW, HWo = H * W, Ho * Wo
    expand = expand_ratio != 1
    use_residual = (stride == 1) and (Cin == Cout)

    # NCHW -> (N, H*W, Cin), channels on the lane axis, carried in bf16.
    x_flat = jnp.transpose(x_nchw.astype(jnp.bfloat16),
                           (0, 2, 3, 1)).reshape(N, HW, Cin)

    inputs = [x_flat]
    in_specs = [pl.BlockSpec((1, HW, Cin), lambda n: (n, 0, 0))]
    if expand:
        inputs += [params["w_expand"], params["shift1"]]
        in_specs += [pl.BlockSpec((Cin, hidden), lambda n: (0, 0)),
                     pl.BlockSpec((1, hidden), lambda n: (0, 0))]
    inputs += [params["w_dw"], params["shift2"],
               params["w1_se"], params["b1_se"], params["w2_se"], params["b2_se"],
               params["w_proj"], params["shift_proj"]]
    in_specs += [pl.BlockSpec((9, hidden), lambda n: (0, 0)),
                 pl.BlockSpec((1, hidden), lambda n: (0, 0)),
                 pl.BlockSpec((hidden, Cr), lambda n: (0, 0)),
                 pl.BlockSpec((1, Cr), lambda n: (0, 0)),
                 pl.BlockSpec((Cr, hidden), lambda n: (0, 0)),
                 pl.BlockSpec((1, hidden), lambda n: (0, 0)),
                 pl.BlockSpec((hidden, Cout), lambda n: (0, 0)),
                 pl.BlockSpec((1, Cout), lambda n: (0, 0))]

    kernel = functools.partial(
        _mbconv_kernel, H=H, W=W, Ho=Ho, Wo=Wo, stride=stride,
        expand=expand, use_residual=use_residual)

    out = pl.pallas_call(
        kernel,
        out_shape=jax.ShapeDtypeStruct((N, HWo, Cout), jnp.bfloat16),
        grid=(N,),
        in_specs=in_specs,
        out_specs=pl.BlockSpec((1, HWo, Cout), lambda n: (n, 0, 0)),
        scratch_shapes=[
            pltpu.VMEM((H + 2, W + 2, hidden), jnp.float32),   # padded expand act
            pltpu.VMEM((Ho, Wo, hidden), jnp.bfloat16),        # depthwise output
        ],
        compiler_params=pltpu.CompilerParams(dimension_semantics=("parallel",)),
    )(*inputs)

    out = out.reshape(N, Ho, Wo, Cout)
    return jnp.transpose(out, (0, 3, 1, 2)).astype(jnp.float32)   # NHWC -> NCHW


# ----------------------------- parameter init -------------------------------

class KeyGen:
    def __init__(self, key):
        self.key = key
        self.i = 0

    def __call__(self):
        self.i += 1
        return jax.random.fold_in(self.key, self.i)


def _bn_scale_shift(kg, c, eps=1e-5):
    # inference-mode BN: random gamma/beta, running_mean=0, running_var=1
    gamma = 1.0 + 0.1 * jax.random.normal(kg(), (c,), jnp.float32)
    beta = 0.1 * jax.random.normal(kg(), (c,), jnp.float32)
    mean = jnp.zeros((c,), jnp.float32)
    var = jnp.ones((c,), jnp.float32)
    scale = gamma / jnp.sqrt(var + eps)
    shift = beta - mean * scale
    return scale, shift


def build_mbconv_params(kg, in_channels, out_channels, expand_ratio, reduction=4):
    hidden = in_channels * expand_ratio
    p = {}

    if expand_ratio != 1:
        std = (2.0 / in_channels) ** 0.5
        w_exp = jax.random.normal(kg(), (in_channels, hidden), jnp.float32) * std
        scale1, shift1 = _bn_scale_shift(kg, hidden)
        p["w_expand"] = (w_exp * scale1[None, :]).astype(jnp.bfloat16)   # BN folded
        p["shift1"] = shift1.reshape(1, hidden)

    # depthwise 3x3 (groups=hidden): weight (3,3,hidden) -> (9,hidden), BN folded
    std = (2.0 / 9.0) ** 0.5
    w_dw = jax.random.normal(kg(), (3, 3, hidden), jnp.float32) * std
    scale2, shift2 = _bn_scale_shift(kg, hidden)
    p["w_dw"] = (w_dw * scale2[None, None, :]).reshape(9, hidden)
    p["shift2"] = shift2.reshape(1, hidden)

    # SE block (1x1 convs with bias)
    cr = hidden // reduction
    p["w1_se"] = (jax.random.normal(kg(), (hidden, cr), jnp.float32)
                  * (2.0 / hidden) ** 0.5).astype(jnp.bfloat16)
    p["b1_se"] = 0.01 * jax.random.normal(kg(), (1, cr), jnp.float32)
    p["w2_se"] = (jax.random.normal(kg(), (cr, hidden), jnp.float32)
                  * (2.0 / cr) ** 0.5).astype(jnp.bfloat16)
    p["b2_se"] = 0.01 * jax.random.normal(kg(), (1, hidden), jnp.float32)

    # projection 1x1 conv + BN folded
    std = (2.0 / hidden) ** 0.5
    w_proj = jax.random.normal(kg(), (hidden, out_channels), jnp.float32) * std
    scale3, shift3 = _bn_scale_shift(kg, out_channels)
    p["w_proj"] = (w_proj * scale3[None, :]).astype(jnp.bfloat16)
    p["shift_proj"] = shift3.reshape(1, out_channels)
    return p


# --------------------------------- main --------------------------------------

if __name__ == "__main__":
    in_channels, out_channels = 32, 32
    expand_ratio, stride = 4, 1          # hidden_dim = 128 (lane-dense), residual on
    N, H, W = 2, 16, 16

    key = jax.random.PRNGKey(0)
    kg = KeyGen(key)
    params = build_mbconv_params(kg, in_channels, out_channels, expand_ratio)

    x = jax.random.normal(jax.random.fold_in(key, 99999),
                          (N, in_channels, H, W), jnp.float32)

    out = mbconv_forward(x, params, expand_ratio=expand_ratio, stride=stride)
    out = jax.block_until_ready(out)
    assert out.shape == (N, out_channels, H, W), out.shape
    assert bool(jnp.all(jnp.isfinite(out)))
    print("KERNEL_OK")
</pallas_src>

<mosaic_0001>
module attributes {stable_mosaic.version = 11 : i64} {
  func.func @_mbconv_kernel(%arg0: i32, %arg1: memref<1x256x32xbf16, #tpu.memory_space<vmem>>, %arg2: memref<32x128xbf16, #tpu.memory_space<vmem>>, %arg3: memref<1x128xf32, #tpu.memory_space<vmem>>, %arg4: memref<9x128xf32, #tpu.memory_space<vmem>>, %arg5: memref<1x128xf32, #tpu.memory_space<vmem>>, %arg6: memref<128x32xbf16, #tpu.memory_space<vmem>>, %arg7: memref<1x32xf32, #tpu.memory_space<vmem>>, %arg8: memref<32x128xbf16, #tpu.memory_space<vmem>>, %arg9: memref<1x128xf32, #tpu.memory_space<vmem>>, %arg10: memref<128x32xbf16, #tpu.memory_space<vmem>>, %arg11: memref<1x32xf32, #tpu.memory_space<vmem>>, %arg12: memref<1x256x32xbf16, #tpu.memory_space<vmem>>, %arg13: memref<18x18x128xf32, #tpu.memory_space<vmem>>, %arg14: memref<16x16x128xbf16, #tpu.memory_space<vmem>>) attributes {dimension_semantics = [#tpu.dimension_semantics<parallel>], iteration_bounds = array<i64: 2>, scalar_prefetch = 0 : i64, scratch_operands = 2 : i64, tpu.core_type = #tpu.core_type<tc>, window_params = [{transform_indices = @transform_0, window_bounds = array<i64: 1, 256, 32>}, {pipeline_mode = #tpu.pipeline_mode<synchronous>, transform_indices = @transform_1, window_bounds = array<i64: 32, 128>}, {pipeline_mode = #tpu.pipeline_mode<synchronous>, transform_indices = @transform_2, window_bounds = array<i64: 1, 128>}, {pipeline_mode = #tpu.pipeline_mode<synchronous>, transform_indices = @transform_3, window_bounds = array<i64: 9, 128>}, {pipeline_mode = #tpu.pipeline_mode<synchronous>, transform_indices = @transform_4, window_bounds = array<i64: 1, 128>}, {pipeline_mode = #tpu.pipeline_mode<synchronous>, transform_indices = @transform_5, window_bounds = array<i64: 128, 32>}, {pipeline_mode = #tpu.pipeline_mode<synchronous>, transform_indices = @transform_6, window_bounds = array<i64: 1, 32>}, {pipeline_mode = #tpu.pipeline_mode<synchronous>, transform_indices = @transform_7, window_bounds = array<i64: 32, 128>}, {pipeline_mode = #tpu.pipeline_mode<synchronous>, transform_indices = @transform_8, window_bounds = array<i64: 1, 128>}, {pipeline_mode = #tpu.pipeline_mode<synchronous>, transform_indices = @transform_9, window_bounds = array<i64: 128, 32>}, {pipeline_mode = #tpu.pipeline_mode<synchronous>, transform_indices = @transform_10, window_bounds = array<i64: 1, 32>}, {transform_indices = @transform_11, window_bounds = array<i64: 1, 256, 32>}]} {
    %c0 = arith.constant 0 : index
    %c0_0 = arith.constant 0 : index
    %c0_1 = arith.constant 0 : index
    %0 = vector.load %arg1[%c0, %c0_0, %c0_1] : memref<1x256x32xbf16, #tpu.memory_space<vmem>>, vector<1x256x32xbf16>
    %1 = vector.shape_cast %0 : vector<1x256x32xbf16> to vector<256x32xbf16>
    %c0_2 = arith.constant 0 : index
    %c0_3 = arith.constant 0 : index
    %2 = vector.load %arg2[%c0_2, %c0_3] : memref<32x128xbf16, #tpu.memory_space<vmem>>, vector<32x128xbf16>
    %cst = arith.constant dense<0.000000e+00> : vector<256x128xf32>
    %3 = tpu.matmul %1, %2, %cst {dimension_numbers = #tpu.dot_dimension_numbers<[1], [0], [0], [1], [0, 0, 1, 1], [], []>} : vector<256x32xbf16>, vector<32x128xbf16>, vector<256x128xf32> -> vector<256x128xf32>
    %c0_4 = arith.constant 0 : index
    %c0_5 = arith.constant 0 : index
    %4 = vector.load %arg3[%c0_4, %c0_5] : memref<1x128xf32, #tpu.memory_space<vmem>>, vector<1x128xf32>
    %5 = vector.broadcast %4 : vector<1x128xf32> to vector<256x128xf32>
    %6 = arith.addf %3, %5 : vector<256x128xf32>
    %cst_6 = arith.constant 0.000000e+00 : f32
    %7 = vector.broadcast %cst_6 : f32 to vector<256x128xf32>
    %8 = arith.subf %7, %6 : vector<256x128xf32>
    %9 = math.exp %8 : vector<256x128xf32>
    %cst_7 = arith.constant 1.000000e+00 : f32
    %10 = vector.broadcast %cst_7 : f32 to vector<256x128xf32>
    %11 = arith.addf %10, %9 : vector<256x128xf32>
    %12 = tpu.reciprocal %11 {approx = true} : vector<256x128xf32> -> vector<256x128xf32>
    %13 = arith.mulf %6, %12 : vector<256x128xf32>
    %cst_8 = arith.constant 0.000000e+00 : f32
    %14 = vector.broadcast %cst_8 : f32 to vector<1x18x128xf32>
    %cst_9 = arith.constant 0.000000e+00 : f32
    %15 = vector.broadcast %cst_9 : f32 to vector<18x1x128xf32>
    %c0_10 = arith.constant 0 : index
    %c0_11 = arith.constant 0 : index
    %c0_12 = arith.constant 0 : index
    %16 = vector.load %arg13[%c0_10, %c0_11, %c0_12] : memref<18x18x128xf32, #tpu.memory_space<vmem>>, vector<1x18x128xf32>
    tpu.vector_store %arg13[%c0_10, %c0_11, %c0_12], %14 {strides = array<i32>} : memref<18x18x128xf32, #tpu.memory_space<vmem>>, vector<1x18x128xf32>,
    %c17 = arith.constant 17 : index
    %c0_13 = arith.constant 0 : index
    %c0_14 = arith.constant 0 : index
    %17 = vector.load %arg13[%c17, %c0_13, %c0_14] : memref<18x18x128xf32, #tpu.memory_space<vmem>>, vector<1x18x128xf32>
    tpu.vector_store %arg13[%c17, %c0_13, %c0_14], %14 {strides = array<i32>} : memref<18x18x128xf32, #tpu.memory_space<vmem>>, vector<1x18x128xf32>,
    %c0_15 = arith.constant 0 : index
    %c0_16 = arith.constant 0 : index
    %c0_17 = arith.constant 0 : index
    %18 = vector.load %arg13[%c0_15, %c0_16, %c0_17] : memref<18x18x128xf32, #tpu.memory_space<vmem>>, vector<18x1x128xf32>
    tpu.vector_store %arg13[%c0_15, %c0_16, %c0_17], %15 {strides = array<i32>} : memref<18x18x128xf32, #tpu.memory_space<vmem>>, vector<18x1x128xf32>,
    %c0_18 = arith.constant 0 : index
    %c17_19 = arith.constant 17 : index
    %c0_20 = arith.constant 0 : index
    %19 = vector.load %arg13[%c0_18, %c17_19, %c0_20] : memref<18x18x128xf32, #tpu.memory_space<vmem>>, vector<18x1x128xf32>
    tpu.vector_store %arg13[%c0_18, %c17_19, %c0_20], %15 {strides = array<i32>} : memref<18x18x128xf32, #tpu.memory_space<vmem>>, vector<18x1x128xf32>,
    %20 = vector.shape_cast %13 : vector<256x128xf32> to vector<16x16x128xf32>
    %c1 = arith.constant 1 : index
    %c1_21 = arith.constant 1 : index
    %c0_22 = arith.constant 0 : index
    %21 = vector.load %arg13[%c1, %c1_21, %c0_22] : memref<18x18x128xf32, #tpu.memory_space<vmem>>, vector<16x16x128xf32>
    tpu.vector_store %arg13[%c1, %c1_21, %c0_22], %20 {strides = array<i32>} : memref<18x18x128xf32, #tpu.memory_space<vmem>>, vector<16x16x128xf32>,
    %c0_23 = arith.constant 0 : index
    %c0_24 = arith.constant 0 : index
    %22 = vector.load %arg4[%c0_23, %c0_24] : memref<9x128xf32, #tpu.memory_space<vmem>>, vector<9x128xf32>
    %c0_25 = arith.constant 0 : index
    %c0_26 = arith.constant 0 : index
    %23 = vector.load %arg5[%c0_25, %c0_26] : memref<1x128xf32, #tpu.memory_space<vmem>>, vector<1x128xf32>
    %c0_i32 = arith.constant 0 : i32
    %cst_27 = arith.constant 0.000000e+00 : f32
    %24 = vector.broadcast %cst_27 : f32 to vector<16x128xf32>
    %c0_i32_28 = arith.constant 0 : i32
    %25 = arith.addi %c0_i32, %c0_i32_28 : i32
    %26 = arith.index_cast %25 : i32 to index
    %c0_29 = arith.constant 0 : index
    %c0_30 = arith.constant 0 : index
    %27 = vector.load %arg13[%26, %c0_29, %c0_30] : memref<18x18x128xf32, #tpu.memory_space<vmem>>, vector<1x16x128xf32>
    %28 = vector.shape_cast %27 : vector<1x16x128xf32> to vector<16x128xf32>
    %29 = vector.extract_strided_slice %22 {offsets = [0, 0], sizes = [1, 128], strides = [1, 1]} : vector<9x128xf32> to vector<1x128xf32>
    %30 = vector.broadcast %29 : vector<1x128xf32> to vector<16x128xf32>
    %31 = arith.mulf %28, %30 : vector<16x128xf32>
    %32 = arith.addf %24, %31 : vector<16x128xf32>
    %c0_i32_31 = arith.constant 0 : i32
    %33 = arith.addi %c0_i32, %c0_i32_31 : i32
    %34 = arith.index_cast %33 : i32 to index
    %c1_32 = arith.constant 1 : index
    %c0_33 = arith.constant 0 : index
    %35 = vector.load %arg13[%34, %c1_32, %c0_33] : memref<18x18x128xf32, #tpu.memory_space<vmem>>, vector<1x16x128xf32>
    %36 = vector.shape_cast %35 : vector<1x16x128xf32> to vector<16x128xf32>
    %37 = vector.extract_strided_slice %22 {offsets = [1, 0], sizes = [1, 128], strides = [1, 1]} : vector<9x128xf32> to vector<1x128xf32>
    %38 = vector.broadcast %37 : vector<1x128xf32> to vector<16x128xf32>
    %39 = arith.mulf %36, %38 : vector<16x128xf32>
    %40 = arith.addf %32, %39 : vector<16x128xf32>
    %c0_i32_34 = arith.constant 0 : i32
    %41 = arith.addi %c0_i32, %c0_i32_34 : i32
    %42 = arith.index_cast %41 : i32 to index
    %c2 = arith.constant 2 : index
    %c0_35 = arith.constant 0 : index
    %43 = vector.load %arg13[%42, %c2, %c0_35] : memref<18x18x128xf32, #tpu.memory_space<vmem>>, vector<1x16x128xf32>
    %44 = vector.shape_cast %43 : vector<1x16x128xf32> to vector<16x128xf32>
    %45 = vector.extract_strided_slice %22 {offsets = [2, 0], sizes = [1, 128], strides = [1, 1]} : vector<9x128xf32> to vector<1x128xf32>
    %46 = vector.broadcast %45 : vector<1x128xf32> to vector<16x128xf32>
    %47 = arith.mulf %44, %46 : vector<16x128xf32>
    %48 = arith.addf %40, %47 : vector<16x128xf32>
    %c1_i32 = arith.constant 1 : i32
    %49 = arith.addi %c0_i32, %c1_i32 : i32
    %50 = arith.index_cast %49 : i32 to index
    %c0_36 = arith.constant 0 : index
    %c0_37 = arith.constant 0 : index
    %51 = vector.load %arg13[%50, %c0_36, %c0_37] : memref<18x18x128xf32, #tpu.memory_space<vmem>>, vector<1x16x128xf32>
    %52 = vector.shape_cast %51 : vector<1x16x128xf32> to vector<16x128xf32>
    %53 = vector.extract_strided_slice %22 {offsets = [3, 0], sizes = [1, 128], strides = [1, 1]} : vector<9x128xf32> to vector<1x128xf32>
    %54 = vector.broadcast %53 : vector<1x128xf32> to vector<16x128xf32>
    %55 = arith.mulf %52, %54 : vector<16x128xf32>
    %56 = arith.addf %48, %55 : vector<16x128xf32>
    %c1_i32_38 = arith.constant 1 : i32
    %57 = arith.addi %c0_i32, %c1_i32_38 : i32
    %58 = arith.index_cast %57 : i32 to index
    %c1_39 = arith.constant 1 : index
    %c0_40 = arith.constant 0 : index
    %59 = vector.load %arg13[%58, %c1_39, %c0_40] : memref<18x18x128xf32, #tpu.memory_space<vmem>>, vector<1x16x128xf32>
    %60 = vector.shape_cast %59 : vector<1x16x128xf32> to vector<16x128xf32>
    %61 = vector.extract_strided_slice %22 {offsets = [4, 0], sizes = [1, 128], strides = [1, 1]} : vector<9x128xf32> to vector<1x128xf32>
    %62 = vector.broadcast %61 : vector<1x128xf32> to vector<16x128xf32>
    %63 = arith.mulf %60, %62 : vector<16x128xf32>
    %64 = arith.addf %56, %63 : vector<16x128xf32>
    %c1_i32_41 = arith.constant 1 : i32
    %65 = arith.addi %c0_i32, %c1_i32_41 : i32
    %66 = arith.index_cast %65 : i32 to index
    %c2_42 = arith.constant 2 : index
    %c0_43 = arith.constant 0 : index
    %67 = vector.load %arg13[%66, %c2_42, %c0_43] : memref<18x18x128xf32, #tpu.memory_space<vmem>>, vector<1x16x128xf32>
    %68 = vector.shape_cast %67 : vector<1x16x128xf32> to vector<16x128xf32>
    %69 = vector.extract_strided_slice %22 {offsets = [5, 0], sizes = [1, 128], strides = [1, 1]} : vector<9x128xf32> to vector<1x128xf32>
    %70 = vector.broadcast %69 : vector<1x128xf32> to vector<16x128xf32>
    %71 = arith.mulf %68, %70 : vector<16x128xf32>
    %72 = arith.addf %64, %71 : vector<16x128xf32>
    %c2_i32 = arith.constant 2 : i32
    %73 = arith.addi %c0_i32, %c2_i32 : i32
    %74 = arith.index_cast %73 : i32 to index
    %c0_44 = arith.constant 0 : index
    %c0_45 = arith.constant 0 : index
    %75 = vector.load %arg13[%74, %c0_44, %c0_45] : memref<18x18x128xf32, #tpu.memory_space<vmem>>, vector<1x16x128xf32>
    %76 = vector.shape_cast %75 : vector<1x16x128xf32> to vector<16x128xf32>
    %77 = vector.extract_strided_slice %22 {offsets = [6, 0], sizes = [1, 128], strides = [1, 1]} : vector<9x128xf32> to vector<1x128xf32>
    %78 = vector.broadcast %77 : vector<1x128xf32> to vector<16x128xf32>
    %79 = arith.mulf %76, %78 : vector<16x128xf32>
    %80 = arith.addf %72, %79 : vector<16x128xf32>
    %c2_i32_46 = arith.constant 2 : i32
    %81 = arith.addi %c0_i32, %c2_i32_46 : i32
    %82 = arith.index_cast %81 : i32 to index
    %c1_47 = arith.constant 1 : index
    %c0_48 = arith.constant 0 : index
    %83 = vector.load %arg13[%82, %c1_47, %c0_48] : memref<18x18x128xf32, #tpu.memory_space<vmem>>, vector<1x16x128xf32>
    %84 = vector.shape_cast %83 : vector<1x16x128xf32> to vector<16x128xf32>
    %85 = vector.extract_strided_slice %22 {offsets = [7, 0], sizes = [1, 128], strides = [1, 1]} : vector<9x128xf32> to vector<1x128xf32>
    %86 = vector.broadcast %85 : vector<1x128xf32> to vector<16x128xf32>
    %87 = arith.mulf %84, %86 : vector<16x128xf32>
    %88 = arith.addf %80, %87 : vector<16x128xf32>
    %c2_i32_49 = arith.constant 2 : i32
    %89 = arith.addi %c0_i32, %c2_i32_49 : i32
    %90 = arith.index_cast %89 : i32 to index
    %c2_50 = arith.constant 2 : index
    %c0_51 = arith.constant 0 : index
    %91 = vector.load %arg13[%90, %c2_50, %c0_51] : memref<18x18x128xf32, #tpu.memory_space<vmem>>, vector<1x16x128xf32>
    %92 = vector.shape_cast %91 : vector<1x16x128xf32> to vector<16x128xf32>
    %93 = vector.extract_strided_slice %22 {offsets = [8, 0], sizes = [1, 128], strides = [1, 1]} : vector<9x128xf32> to vector<1x128xf32>
    %94 = vector.broadcast %93 : vector<1x128xf32> to vector<16x128xf32>
    %95 = arith.mulf %92, %94 : vector<16x128xf32>
    %96 = arith.addf %88, %95 : vector<16x128xf32>
    %97 = vector.broadcast %23 : vector<1x128xf32> to vector<16x128xf32>
    %98 = arith.addf %96, %97 : vector<16x128xf32>
    %cst_52 = arith.constant 0.000000e+00 : f32
    %99 = vector.broadcast %cst_52 : f32 to vector<16x128xf32>
    %100 = arith.subf %99, %98 : vector<16x128xf32>
    %101 = math.exp %100 : vector<16x128xf32>
    %cst_53 = arith.constant 1.000000e+00 : f32
    %102 = vector.broadcast %cst_53 : f32 to vector<16x128xf32>
    %103 = arith.addf %102, %101 : vector<16x128xf32>
    %104 = tpu.reciprocal %103 {approx = true} : vector<16x128xf32> -> vector<16x128xf32>
    %105 = arith.mulf %98, %104 : vector<16x128xf32>
    %106 = arith.truncf %105 : vector<16x128xf32> to vector<16x128xbf16>
    %107 = arith.index_cast %c0_i32 : i32 to index
    %c0_54 = arith.constant 0 : index
    %c0_55 = arith.constant 0 : index
    %108 = vector.load %arg14[%107, %c0_54, %c0_55] : memref<16x16x128xbf16, #tpu.memory_space<vmem>>, vector<1x16x128xbf16>
    %109 = vector.shape_cast %108 : vector<1x16x128xbf16> to vector<16x128xbf16>
    %110 = vector.shape_cast %106 : vector<16x128xbf16> to vector<1x16x128xbf16>
    tpu.vector_store %arg14[%107, %c0_54, %c0_55], %110 {strides = array<i32>} : memref<16x16x128xbf16, #tpu.memory_space<vmem>>, vector<1x16x128xbf16>,
    %c1_i32_56 = arith.constant 1 : i32
    %cst_57 = arith.constant 0.000000e+00 : f32
    %111 = vector.broadcast %cst_57 : f32 to vector<16x128xf32>
    %c0_i32_58 = arith.constant 0 : i32
    %112 = arith.addi %c1_i32_56, %c0_i32_58 : i32
    %113 = arith.index_cast %112 : i32 to index
    %c0_59 = arith.constant 0 : index
    %c0_60 = arith.constant 0 : index
    %114 = vector.load %arg13[%113, %c0_59, %c0_60] : memref<18x18x128xf32, #tpu.memory_space<vmem>>, vector<1x16x128xf32>
    %115 = vector.shape_cast %114 : vector<1x16x128xf32> to vector<16x128xf32>
    %116 = vector.extract_strided_slice %22 {offsets = [0, 0], sizes = [1, 128], strides = [1, 1]} : vector<9x128xf32> to vector<1x128xf32>
    %117 = vector.broadcast %116 : vector<1x128xf32> to vector<16x128xf32>
    %118 = arith.mulf %115, %117 : vector<16x128xf32>
    %119 = arith.addf %111, %118 : vector<16x128xf32>
    %c0_i32_61 = arith.constant 0 : i32
    %120 = arith.addi %c1_i32_56, %c0_i32_61 : i32
    %121 = arith.index_cast %120 : i32 to index
    %c1_62 = arith.constant 1 : index
    %c0_63 = arith.constant 0 : index
    %122 = vector.load %arg13[%121, %c1_62, %c0_63] : memref<18x18x128xf32, #tpu.memory_space<vmem>>, vector<1x16x128xf32>
    %123 = vector.shape_cast %122 : vector<1x16x128xf32> to vector<16x128xf32>
    %124 = vector.extract_strided_slice %22 {offsets = [1, 0], sizes = [1, 128], strides = [1, 1]} : vector<9x128xf32> to vector<1x128xf32>
    %125 = vector.broadcast %124 : vector<1x128xf32> to vector<16x128xf32>
    %126 = arith.mulf %123, %125 : vector<16x128xf32>
    %127 = arith.addf %119, %126 : vector<16x128xf32>
    %c0_i32_64 = arith.constant 0 : i32
    %128 = arith.addi %c1_i32_56, %c0_i32_64 : i32
    %129 = arith.index_cast %128 : i32 to index
    %c2_65 = arith.constant 2 : index
    %c0_66 = arith.constant 0 : index
    %130 = vector.load %arg13[%129, %c2_65, %c0_66] : memref<18x18x128xf32, #tpu.memory_space<vmem>>, vector<1x16x128xf32>
    %131 = vector.shape_cast %130 : vector<1x16x128xf32> to vector<16x128xf32>
    %132 = vector.extract_strided_slice %22 {offsets = [2, 0], sizes = [1, 128], strides = [1, 1]} : vector<9x128xf32> to vector<1x128xf32>
    %133 = vector.broadcast %132 : vector<1x128xf32> to vector<16x128xf32>
    %134 = arith.mulf %131, %133 : vector<16x128xf32>
    %135 = arith.addf %127, %134 : vector<16x128xf32>
    %c1_i32_67 = arith.constant 1 : i32
    %136 = arith.addi %c1_i32_56, %c1_i32_67 : i32
    %137 = arith.index_cast %136 : i32 to index
    %c0_68 = arith.constant 0 : index
    %c0_69 = arith.constant 0 : index
    %138 = vector.load %arg13[%137, %c0_68, %c0_69] : memref<18x18x128xf32, #tpu.memory_space<vmem>>, vector<1x16x128xf32>
    %139 = vector.shape_cast %138 : vector<1x16x128xf32> to vector<16x128xf32>
    %140 = vector.extract_strided_slice %22 {offsets = [3, 0], sizes = [1, 128], strides = [1, 1]} : vector<9x128xf32> to vector<1x128xf32>
    %141 = vector.broadcast %140 : vector<1x128xf32> to vector<16x128xf32>
    %142 = arith.mulf %139, %141 : vector<16x128xf32>
    %143 = arith.addf %135, %142 : vector<16x128xf32>
    %c1_i32_70 = arith.constant 1 : i32
    %144 = arith.addi %c1_i32_56, %c1_i32_70 : i32
    %145 = arith.index_cast %144 : i32 to index
    %c1_71 = arith.constant 1 : index
    %c0_72 = arith.constant 0 : index
    %146 = vector.load %arg13[%145, %c1_71, %c0_72] : memref<18x18x128xf32, #tpu.memory_space<vmem>>, vector<1x16x128xf32>
    %147 = vector.shape_cast %146 : vector<1x16x128xf32> to vector<16x128xf32>
    %148 = vector.extract_strided_slice %22 {offsets = [4, 0], sizes = [1, 128], strides = [1, 1]} : vector<9x128xf32> to vector<1x128xf32>
    %149 = vector.broadcast %148 : vector<1x128xf32> to vector<16x128xf32>
    %150 = arith.mulf %147, %149 : vector<16x128xf32>
    %151 = arith.addf %143, %150 : vector<16x128xf32>
    %c1_i32_73 = arith.constant 1 : i32
    %152 = arith.addi %c1_i32_56, %c1_i32_73 : i32
    %153 = arith.index_cast %152 : i32 to index
    %c2_74 = arith.constant 2 : index
    %c0_75 = arith.constant 0 : index
    %154 = vector.load %arg13[%153, %c2_74, %c0_75] : memref<18x18x128xf32, #tpu.memory_space<vmem>>, vector<1x16x128xf32>
    %155 = vector.shape_cast %154 : vector<1x16x128xf32> to vector<16x128xf32>
    %156 = vector.extract_strided_slice %22 {offsets = [5, 0], sizes = [1, 128], strides = [1, 1]} : vector<9x128xf32> to vector<1x128xf32>
    %157 = vector.broadcast %156 : vector<1x128xf32> to vector<16x128xf32>
    %158 = arith.mulf %155, %157 : vector<16x128xf32>
    %159 = arith.addf %151, %158 : vector<16x128xf32>
    %c2_i32_76 = arith.constant 2 : i32
    %160 = arith.addi %c1_i32_56, %c2_i32_76 : i32
    %161 = arith.index_cast %160 : i32 to index
    %c0_77 = arith.constant 0 : index
    %c0_78 = arith.constant 0 : index
    %162 = vector.load %arg13[%161, %c0_77, %c0_78] : memref<18x18x128xf32, #tpu.memory_space<vmem>>, vector<1x16x128xf32>
    %163 = vector.shape_cast %162 : vector<1x16x128xf32> to vector<16x128xf32>
    %164 = vector.extract_strided_slice %22 {offsets = [6, 0], sizes = [1, 128], strides = [1, 1]} : vector<9x128xf32> to vector<1x128xf32>
    %165 = vector.broadcast %164 : vector<1x128xf32> to vector<16x128xf32>
    %166 = arith.mulf %163, %165 : vector<16x128xf32>
    %167 = arith.addf %159, %166 : vector<16x128xf32>
    %c2_i32_79 = arith.constant 2 : i32
    %168 = arith.addi %c1_i32_56, %c2_i32_79 : i32
    %169 = arith.index_cast %168 : i32 to index
    %c1_80 = arith.constant 1 : index
    %c0_81 = arith.constant 0 : index
    %170 = vector.load %arg13[%169, %c1_80, %c0_81] : memref<18x18x128xf32, #tpu.memory_space<vmem>>, vector<1x16x128xf32>
    %171 = vector.shape_cast %170 : vector<1x16x128xf32> to vector<16x128xf32>
    %172 = vector.extract_strided_slice %22 {offsets = [7, 0], sizes = [1, 128], strides = [1, 1]} : vector<9x128xf32> to vector<1x128xf32>
    %173 = vector.broadcast %172 : vector<1x128xf32> to vector<16x128xf32>
    %174 = arith.mulf %171, %173 : vector<16x128xf32>
    %175 = arith.addf %167, %174 : vector<16x128xf32>
    %c2_i32_82 = arith.constant 2 : i32
    %176 = arith.addi %c1_i32_56, %c2_i32_82 : i32
    %177 = arith.index_cast %176 : i32 to index
    %c2_83 = arith.constant 2 : index
    %c0_84 = arith.constant 0 : index
    %178 = vector.load %arg13[%177, %c2_83, %c0_84] : memref<18x18x128xf32, #tpu.memory_space<vmem>>, vector<1x16x128xf32>
    %179 = vector.shape_cast %178 : vector<1x16x128xf32> to vector<16x128xf32>
    %180 = vector.extract_strided_slice %22 {offsets = [8, 0], sizes = [1, 128], strides = [1, 1]} : vector<9x128xf32> to vector<1x128xf32>
    %181 = vector.broadcast %180 : vector<1x128xf32> to vector<16x128xf32>
    %182 = arith.mulf %179, %181 : vector<16x128xf32>
    %183 = arith.addf %175, %182 : vector<16x128xf32>
    %184 = vector.broadcast %23 : vector<1x128xf32> to vector<16x128xf32>
    %185 = arith.addf %183, %184 : vector<16x128xf32>
    %cst_85 = arith.constant 0.000000e+00 : f32
    %186 = vector.broadcast %cst_85 : f32 to vector<16x128xf32>
    %187 = arith.subf %186, %185 : vector<16x128xf32>
    %188 = math.exp %187 : vector<16x128xf32>
    %cst_86 = arith.constant 1.000000e+00 : f32
    %189 = vector.broadcast %cst_86 : f32 to vector<16x128xf32>
    %190 = arith.addf %189, %188 : vector<16x128xf32>
    %191 = tpu.reciprocal %190 {approx = true} : vector<16x128xf32> -> vector<16x128xf32>
    %192 = arith.mulf %185, %191 : vector<16x128xf32>
    %193 = arith.truncf %192 : vector<16x128xf32> to vector<16x128xbf16>
    %194 = arith.index_cast %c1_i32_56 : i32 to index
    %c0_87 = arith.constant 0 : index
    %c0_88 = arith.constant 0 : index
    %195 = vector.load %arg14[%194, %c0_87, %c0_88] : memref<16x16x128xbf16, #tpu.memory_space<vmem>>, vector<1x16x128xbf16>
    %196 = vector.shape_cast %195 : vector<1x16x128xbf16> to vector<16x128xbf16>
    %197 = vector.shape_cast %193 : vector<16x128xbf16> to vector<1x16x128xbf16>
    tpu.vector_store %arg14[%194, %c0_87, %c0_88], %197 {strides = array<i32>} : memref<16x16x128xbf16, #tpu.memory_space<vmem>>, vector<1x16x128xbf16>,
    %c2_i32_89 = arith.constant 2 : i32
    %cst_90 = arith.constant 0.000000e+00 : f32
    %198 = vector.broadcast %cst_90 : f32 to vector<16x128xf32>
    %c0_i32_91 = arith.constant 0 : i32
    %199 = arith.addi %c2_i32_89, %c0_i32_91 : i32
    %200 = arith.index_cast %199 : i32 to index
    %c0_92 = arith.constant 0 : index
    %c0_93 = arith.constant 0 : index
    %201 = vector.load %arg13[%200, %c0_92, %c0_93] : memref<18x18x128xf32, #tpu.memory_space<vmem>>, vector<1x16x128xf32>
    %202 = vector.shape_cast %201 : vector<1x16x128xf32> to vector<16x128xf32>
    %203 = vector.extract_strided_slice %22 {offsets = [0, 0], sizes = [1, 128], strides = [1, 1]} : vector<9x128xf32> to vector<1x128xf32>
    %204 = vector.broadcast %203 : vector<1x128xf32> to vector<16x128xf32>
    %205 = arith.mulf %202, %204 : vector<16x128xf32>
    %206 = arith.addf %198, %205 : vector<16x128xf32>
    %c0_i32_94 = arith.constant 0 : i32
    %207 = arith.addi %c2_i32_89, %c0_i32_94 : i32
    %208 = arith.index_cast %207 : i32 to index
    %c1_95 = arith.constant 1 : index
    %c0_96 = arith.constant 0 : index
    %209 = vector.load %arg13[%208, %c1_95, %c0_96] : memref<18x18x128xf32, #tpu.memory_space<vmem>>, vector<1x16x128xf32>
    %210 = vector.shape_cast %209 : vector<1x16x128xf32> to vector<16x128xf32>
    %211 = vector.extract_strided_slice %22 {offsets = [1, 0], sizes = [1, 128], strides = [1, 1]} : vector<9x128xf32> to vector<1x128xf32>
    %212 = vector.broadcast %211 : vector<1x128xf32> to vector<16x128xf32>
    %213 = arith.mulf %210, %212 : vector<16x128xf32>
    %214 = arith.addf %206, %213 : vector<16x128xf32>
    %c0_i32_97 = arith.constant 0 : i32
    %215 = arith.addi %c2_i32_89, %c0_i32_97 : i32
    %216 = arith.index_cast %215 : i32 to index
    %c2_98 = arith.constant 2 : index
    %c0_99 = arith.constant 0 : index
    %217 = vector.load %arg13[%216, %c2_98, %c0_99] : memref<18x18x128xf32, #tpu.memory_space<vmem>>, vector<1x16x128xf32>
    %218 = vector.shape_cast %217 : vector<1x16x128xf32> to vector<16x128xf32>
    %219 = vector.extract_strided_slice %22 {offsets = [2, 0], sizes = [1, 128], strides = [1, 1]} : vector<9x128xf32> to vector<1x128xf32>
    %220 = vector.broadcast %219 : vector<1x128xf32> to vector<16x128xf32>
    %221 = arith.mulf %218, %220 : vector<16x128xf32>
    %222 = arith.addf %214, %221 : vector<16x128xf32>
    %c1_i32_100 = arith.constant 1 : i32
    %223 = arith.addi %c2_i32_89, %c1_i32_100 : i32
    %224 = arith.index_cast %223 : i32 to index
    %c0_101 = arith.constant 0 : index
    %c0_102 = arith.constant 0 : index
    %225 = vector.load %arg13[%224, %c0_101, %c0_102] : memref<18x18x128xf32, #tpu.memory_space<vmem>>, vector<1x16x128xf32>
    %226 = vector.shape_cast %225 : vector<1x16x128xf32> to vector<16x128xf32>
    %227 = vector.extract_strided_slice %22 {offsets = [3, 0], sizes = [1, 128], strides = [1, 1]} : vector<9x128xf32> to vector<1x128xf32>
    %228 = vector.broadcast %227 : vector<1x128xf32> to vector<16x128xf32>
    %229 = arith.mulf %226, %228 : vector<16x128xf32>
    %230 = arith.addf %222, %229 : vector<16x128xf32>
    %c1_i32_103 = arith.constant 1 : i32
    %231 = arith.addi %c2_i32_89, %c1_i32_103 : i32
    %232 = arith.index_cast %231 : i32 to index
    %c1_104 = arith.constant 1 : index
    %c0_105 = arith.constant 0 : index
    %233 = vector.load %arg13[%232, %c1_104, %c0_105] : memref<18x18x128xf32, #tpu.memory_space<vmem>>, vector<1x16x128xf32>
    %234 = vector.shape_cast %233 : vector<1x16x128xf32> to vector<16x128xf32>
    %235 = vector.extract_strided_slice %22 {offsets = [4, 0], sizes = [1, 128], strides = [1, 1]} : vector<9x128xf32> to vector<1x128xf32>
    %236 = vector.broadcast %235 : vector<1x128xf32> to vector<16x128xf32>
    %237 = arith.mulf %234, %236 : vector<16x128xf32>
    %238 = arith.addf %230, %237 : vector<16x128xf32>
    %c1_i32_106 = arith.constant 1 : i32
    %239 = arith.addi %c2_i32_89, %c1_i32_106 : i32
    %240 = arith.index_cast %239 : i32 to index
    %c2_107 = arith.constant 2 : index
    %c0_108 = arith.constant 0 : index
    %241 = vector.load %arg13[%240, %c2_107, %c0_108] : memref<18x18x128xf32, #tpu.memory_space<vmem>>, vector<1x16x128xf32>
    %242 = vector.shape_cast %241 : vector<1x16x128xf32> to vector<16x128xf32>
    %243 = vector.extract_strided_slice %22 {offsets = [5, 0], sizes = [1, 128], strides = [1, 1]} : vector<9x128xf32> to vector<1x128xf32>
    %244 = vector.broadcast %243 : vector<1x128xf32> to vector<16x128xf32>
    %245 = arith.mulf %242, %244 : vector<16x128xf32>
    %246 = arith.addf %238, %245 : vector<16x128xf32>
    %c2_i32_109 = arith.constant 2 : i32
    %247 = arith.addi %c2_i32_89, %c2_i32_109 : i32
    %248 = arith.index_cast %247 : i32 to index
    %c0_110 = arith.constant 0 : index
    %c0_111 = arith.constant 0 : index
    %249 = vector.load %arg13[%248, %c0_110, %c0_111] : memref<18x18x128xf32, #tpu.memory_space<vmem>>, vector<1x16x128xf32>
    %250 = vector.shape_cast %249 : vector<1x16x128xf32> to vector<16x128xf32>
    %251 = vector.extract_strided_slice %22 {offsets = [6, 0], sizes = [1, 128], strides = [1, 1]} : vector<9x128xf32> to vector<1x128xf32>
    %252 = vector.broadcast %251 : vector<1x128xf32> to vector<16x128xf32>
    %253 = arith.mulf %250, %252 : vector<16x128xf32>
    %254 = arith.addf %246, %253 : vector<16x128xf32>
    %c2_i32_112 = arith.constant 2 : i32
    %255 = arith.addi %c2_i32_89, %c2_i32_112 : i32
    %256 = arith.index_cast %255 : i32 to index
    %c1_113 = arith.constant 1 : index
    %c0_114 = arith.constant 0 : index
    %257 = vector.load %arg13[%256, %c1_113, %c0_114] : memref<18x18x128xf32, #tpu.memory_space<vmem>>, vector<1x16x128xf32>
    %258 = vector.shape_cast %257 : vector<1x16x128xf32> to vector<16x128xf32>
    %259 = vector.extract_strided_slice %22 {offsets = [7, 0], sizes = [1, 128], strides = [1, 1]} : vector<9x128xf32> to vector<1x128xf32>
    %260 = vector.broadcast %259 : vector<1x128xf32> to vector<16x128xf32>
    %261 = arith.mulf %258, %260 : vector<16x128xf32>
    %262 = arith.addf %254, %261 : vector<16x128xf32>
    %c2_i32_115 = arith.constant 2 : i32
    %263 = arith.addi %c2_i32_89, %c2_i32_115 : i32
    %264 = arith.index_cast %263 : i32 to index
    %c2_116 = arith.constant 2 : index
    %c0_117 = arith.constant 0 : index
    %265 = vector.load %arg13[%264, %c2_116, %c0_117] : memref<18x18x128xf32, #tpu.memory_space<vmem>>, vector<1x16x128xf32>
    %266 = vector.shape_cast %265 : vector<1x16x128xf32> to vector<16x128xf32>
    %267 = vector.extract_strided_slice %22 {offsets = [8, 0], sizes = [1, 128], strides = [1, 1]} : vector<9x128xf32> to vector<1x128xf32>
    %268 = vector.broadcast %267 : vector<1x128xf32> to vector<16x128xf32>
    %269 = arith.mulf %266, %268 : vector<16x128xf32>
    %270 = arith.addf %262, %269 : vector<16x128xf32>
    %271 = vector.broadcast %23 : vector<1x128xf32> to vector<16x128xf32>
    %272 = arith.addf %270, %271 : vector<16x128xf32>
    %cst_118 = arith.constant 0.000000e+00 : f32
    %273 = vector.broadcast %cst_118 : f32 to vector<16x128xf32>
    %274 = arith.subf %273, %272 : vector<16x128xf32>
    %275 = math.exp %274 : vector<16x128xf32>
    %cst_119 = arith.constant 1.000000e+00 : f32
    %276 = vector.broadcast %cst_119 : f32 to vector<16x128xf32>
    %277 = arith.addf %276, %275 : vector<16x128xf32>
    %278 = tpu.reciprocal %277 {approx = true} : vector<16x128xf32> -> vector<16x128xf32>
    %279 = arith.mulf %272, %278 : vector<16x128xf32>
    %280 = arith.truncf %279 : vector<16x128xf32> to vector<16x128xbf16>
    %281 = arith.index_cast %c2_i32_89 : i32 to index
    %c0_120 = arith.constant 0 : index
    %c0_121 = arith.constant 0 : index
    %282 = vector.load %arg14[%281, %c0_120, %c0_121] : memref<16x16x128xbf16, #tpu.memory_space<vmem>>, vector<1x16x128xbf16>
    %283 = vector.shape_cast %282 : vector<1x16x128xbf16> to vector<16x128xbf16>
    %284 = vector.shape_cast %280 : vector<16x128xbf16> to vector<1x16x128xbf16>
    tpu.vector_store %arg14[%281, %c0_120, %c0_121], %284 {strides = array<i32>} : memref<16x16x128xbf16, #tpu.memory_space<vmem>>, vector<1x16x128xbf16>,
    %c3_i32 = arith.constant 3 : i32
    %cst_122 = arith.constant 0.000000e+00 : f32
    %285 = vector.broadcast %cst_122 : f32 to vector<16x128xf32>
    %c0_i32_123 = arith.constant 0 : i32
    %286 = arith.addi %c3_i32, %c0_i32_123 : i32
    %287 = arith.index_cast %286 : i32 to index
    %c0_124 = arith.constant 0 : index
    %c0_125 = arith.constant 0 : index
    %288 = vector.load %arg13[%287, %c0_124, %c0_125] : memref<18x18x128xf32, #tpu.memory_space<vmem>>, vector<1x16x128xf32>
    %289 = vector.shape_cast %288 : vector<1x16x128xf32> to vector<16x128xf32>
    %290 = vector.extract_strided_slice %22 {offsets = [0, 0], sizes = [1, 128], strides = [1, 1]} : vector<9x128xf32> to vector<1x128xf32>
    %291 = vector.broadcast %290 : vector<1x128xf32> to vector<16x128xf32>
    %292 = arith.mulf %289, %291 : vector<16x128xf32>
    %293 = arith.addf %285, %292 : vector<16x128xf32>
    %c0_i32_126 = arith.constant 0 : i32
    %294 = arith.addi %c3_i32, %c0_i32_126 : i32
    %295 = arith.index_cast %294 : i32 to index
    %c1_127 = arith.constant 1 : index
    %c0_128 = arith.constant 0 : index
    %296 = vector.load %arg13[%295, %c1_127, %c0_128] : memref<18x18x128xf32, #tpu.memory_space<vmem>>, vector<1x16x128xf32>
    %297 = vector.shape_cast %296 : vector<1x16x128xf32> to vector<16x128xf32>
    %298 = vector.extract_strided_slice %22 {offsets = [1, 0], sizes = [1, 128], strides = [1, 1]} : vector<9x128xf32> to vector<1x128xf32>
    %299 = vector.broadcast %298 : vector<1x128xf32> to vector<16x128xf32>
    %300 = arith.mulf %297, %299 : vector<16x128xf32>
    %301 = arith.addf %293, %300 : vector<16x128xf32>
    %c0_i32_129 = arith.constant 0 : i32
    %302 = arith.addi %c3_i32, %c0_i32_129 : i32
    %303 = arith.index_cast %302 : i32 to index
    %c2_130 = arith.constant 2 : index
    %c0_131 = arith.constant 0 : index
    %304 = vector.load %arg13[%303, %c2_130, %c0_131] : memref<18x18x128xf32, #tpu.memory_space<vmem>>, vector<1x16x128xf32>
    %305 = vector.shape_cast %304 : vector<1x16x128xf32> to vector<16x128xf32>
    %306 = vector.extract_strided_slice %22 {offsets = [2, 0], sizes = [1, 128], strides = [1, 1]} : vector<9x128xf32> to vector<1x128xf32>
    %307 = vector.broadcast %306 : vector<1x128xf32> to vector<16x128xf32>
    %308 = arith.mulf %305, %307 : vector<16x128xf32>
    %309 = arith.addf %301, %308 : vector<16x128xf32>
    %c1_i32_132 = arith.constant 1 : i32
    %310 = arith.addi %c3_i32, %c1_i32_132 : i32
    %311 = arith.index_cast %310 : i32 to index
    %c0_133 = arith.constant 0 : index
    %c0_134 = arith.constant 0 : index
    %312 = vector.load %arg13[%311, %c0_133, %c0_134] : memref<18x18x128xf32, #tpu.memory_space<vmem>>, vector<1x16x128xf32>
    %313 = vector.shape_cast %312 : vector<1x16x128xf32> to vector<16x128xf32>
    %314 = vector.extract_strided_slice %22 {offsets = [3, 0], sizes = [1, 128], strides = [1, 1]} : vector<9x128xf32> to vector<1x128xf32>
    %315 = vector.broadcast %314 : vector<1x128xf32> to vector<16x128xf32>
    %316 = arith.mulf %313, %315 : vector<16x128xf32>
    %317 = arith.addf %309, %316 : vector<16x128xf32>
    %c1_i32_135 = arith.constant 1 : i32
    %318 = arith.addi %c3_i32, %c1_i32_135 : i32
    %319 = arith.index_cast %318 : i32 to index
    %c1_136 = arith.constant 1 : index
    %c0_137 = arith.constant 0 : index
    %320 = vector.load %arg13[%319, %c1_136, %c0_137] : memref<18x18x128xf32, #tpu.memory_space<vmem>>, vector<1x16x128xf32>
    %321 = vector.shape_cast %320 : vector<1x16x128xf32> to vector<16x128xf32>
    %322 = vector.extract_strided_slice %22 {offsets = [4, 0], sizes = [1, 128], strides = [1, 1]} : vector<9x128xf32> to vector<1x128xf32>
    %323 = vector.broadcast %322 : vector<1x128xf32> to vector<16x128xf32>
    %324 = arith.mulf %321, %323 : vector<16x128xf32>
    %325 = arith.addf %317, %324 : vector<16x128xf32>
    %c1_i32_138 = arith.constant 1 : i32
    %326 = arith.addi %c3_i32, %c1_i32_138 : i32
    %327 = arith.index_cast %326 : i32 to index
    %c2_139 = arith.constant 2 : index
    %c0_140 = arith.constant 0 : index
    %328 = vector.load %arg13[%327, %c2_139, %c0_140] : memref<18x18x128xf32, #tpu.memory_space<vmem>>, vector<1x16x128xf32>
    %329 = vector.shape_cast %328 : vector<1x16x128xf32> to vector<16x128xf32>
    %330 = vector.extract_strided_slice %22 {offsets = [5, 0], sizes = [1, 128], strides = [1, 1]} : vector<9x128xf32> to vector<1x128xf32>
    %331 = vector.broadcast %330 : vector<1x128xf32> to vector<16x128xf32>
    %332 = arith.mulf %329, %331 : vector<16x128xf32>
    %333 = arith.addf %325, %332 : vector<16x128xf32>
    %c2_i32_141 = arith.constant 2 : i32
    %334 = arith.addi %c3_i32, %c2_i32_141 : i32
    %335 = arith.index_cast %334 : i32 to index
    %c0_142 = arith.constant 0 : index
    %c0_143 = arith.constant 0 : index
    %336 = vector.load %arg13[%335, %c0_142, %c0_143] : memref<18x18x128xf32, #tpu.memory_space<vmem>>, vector<1x16x128xf32>
    %337 = vector.shape_cast %336 : vector<1x16x128xf32> to vector<16x128xf32>
    %338 = vector.extract_strided_slice %22 {offsets = [6, 0], sizes = [1, 128], strides = [1, 1]} : vector<9x128xf32> to vector<1x128xf32>
    %339 = vector.broadcast %338 : vector<1x128xf32> to vector<16x128xf32>
    %340 = arith.mulf %337, %339 : vector<16x128xf32>
    %341 = arith.addf %333, %340 : vector<16x128xf32>
    %c2_i32_144 = arith.constant 2 : i32
    %342 = arith.addi %c3_i32, %c2_i32_144 : i32
    %343 = arith.index_cast %342 : i32 to index
    %c1_145 = arith.constant 1 : index
    %c0_146 = arith.constant 0 : index
    %344 = vector.load %arg13[%343, %c1_145, %c0_146] : memref<18x18x128xf32, #tpu.memory_space<vmem>>, vector<1x16x128xf32>
    %345 = vector.shape_cast %344 : vector<1x16x128xf32> to vector<16x128xf32>
    %346 = vector.extract_strided_slice %22 {offsets = [7, 0], sizes = [1, 128], strides = [1, 1]} : vector<9x128xf32> to vector<1x128xf32>
    %347 = vector.broadcast %346 : vector<1x128xf32> to vector<16x128xf32>
    %348 = arith.mulf %345, %347 : vector<16x128xf32>
    %349 = arith.addf %341, %348 : vector<16x128xf32>
    %c2_i32_147 = arith.constant 2 : i32
    %350 = arith.addi %c3_i32, %c2_i32_147 : i32
    %351 = arith.index_cast %350 : i32 to index
    %c2_148 = arith.constant 2 : index
    %c0_149 = arith.constant 0 : index
    %352 = vector.load %arg13[%351, %c2_148, %c0_149] : memref<18x18x128xf32, #tpu.memory_space<vmem>>, vector<1x16x128xf32>
    %353 = vector.shape_cast %352 : vector<1x16x128xf32> to vector<16x128xf32>
    %354 = vector.extract_strided_slice %22 {offsets = [8, 0], sizes = [1, 128], strides = [1, 1]} : vector<9x128xf32> to vector<1x128xf32>
    %355 = vector.broadcast %354 : vector<1x128xf32> to vector<16x128xf32>
    %356 = arith.mulf %353, %355 : vector<16x128xf32>
    %357 = arith.addf %349, %356 : vector<16x128xf32>
    %358 = vector.broadcast %23 : vector<1x128xf32> to vector<16x128xf32>
    %359 = arith.addf %357, %358 : vector<16x128xf32>
    %cst_150 = arith.constant 0.000000e+00 : f32
    %360 = vector.broadcast %cst_150 : f32 to vector<16x128xf32>
    %361 = arith.subf %360, %359 : vector<16x128xf32>
    %362 = math.exp %361 : vector<16x128xf32>
    %cst_151 = arith.constant 1.000000e+00 : f32
    %363 = vector.broadcast %cst_151 : f32 to vector<16x128xf32>
    %364 = arith.addf %363, %362 : vector<16x128xf32>
    %365 = tpu.reciprocal %364 {approx = true} : vector<16x128xf32> -> vector<16x128xf32>
    %366 = arith.mulf %359, %365 : vector<16x128xf32>
    %367 = arith.truncf %366 : vector<16x128xf32> to vector<16x128xbf16>
    %368 = arith.index_cast %c3_i32 : i32 to index
    %c0_152 = arith.constant 0 : index
    %c0_153 = arith.constant 0 : index
    %369 = vector.load %arg14[%368, %c0_152, %c0_153] : memref<16x16x128xbf16, #tpu.memory_space<vmem>>, vector<1x16x128xbf16>
    %370 = vector.shape_cast %369 : vector<1x16x128xbf16> to vector<16x128xbf16>
    %371 = vector.shape_cast %367 : vector<16x128xbf16> to vector<1x16x128xbf16>
    tpu.vector_store %arg14[%368, %c0_152, %c0_153], %371 {strides = array<i32>} : memref<16x16x128xbf16, #tpu.memory_space<vmem>>, vector<1x16x128xbf16>,
    %c4_i32 = arith.constant 4 : i32
    %cst_154 = arith.constant 0.000000e+00 : f32
    %372 = vector.broadcast %cst_154 : f32 to vector<16x128xf32>
    %c0_i32_155 = arith.constant 0 : i32
    %373 = arith.addi %c4_i32, %c0_i32_155 : i32
    %374 = arith.index_cast %373 : i32 to index
    %c0_156 = arith.constant 0 : index
    %c0_157 = arith.constant 0 : index
    %375 = vector.load %arg13[%374, %c0_156, %c0_157] : memref<18x18x128xf32, #tpu.memory_space<vmem>>, vector<1x16x128xf32>
    %376 = vector.shape_cast %375 : vector<1x16x128xf32> to vector<16x128xf32>
    %377 = vector.extract_strided_slice %22 {offsets = [0, 0], sizes = [1, 128], strides = [1, 1]} : vector<9x128xf32> to vector<1x128xf32>
    %378 = vector.broadcast %377 : vector<1x128xf32> to vector<16x128xf32>
    %379 = arith.mulf %376, %378 : vector<16x128xf32>
    %380 = arith.addf %372, %379 : vector<16x128xf32>
    %c0_i32_158 = arith.constant 0 : i32
    %381 = arith.addi %c4_i32, %c0_i32_158 : i32
    %382 = arith.index_cast %381 : i32 to index
    %c1_159 = arith.constant 1 : index
    %c0_160 = arith.constant 0 : index
    %383 = vector.load %arg13[%382, %c1_159, %c0_160] : memref<18x18x128xf32, #tpu.memory_space<vmem>>, vector<1x16x128xf32>
    %384 = vector.shape_cast %383 : vector<1x16x128xf32> to vector<16x128xf32>
    %385 = vector.extract_strided_slice %22 {offsets = [1, 0], sizes = [1, 128], strides = [1, 1]} : vector<9x128xf32> to vector<1x128xf32>
    %386 = vector.broadcast %385 : vector<1x128xf32> to vector<16x128xf32>
    %387 = arith.mulf %384, %386 : vector<16x128xf32>
    %388 = arith.addf %380, %387 : vector<16x128xf32>
    %c0_i32_161 = arith.constant 0 : i32
    %389 = arith.addi %c4_i32, %c0_i32_161 : i32
    %390 = arith.index_cast %389 : i32 to index
    %c2_162 = arith.constant 2 : index
    %c0_163 = arith.constant 0 : index
    %391 = vector.load %arg13[%390, %c2_162, %c0_163] : memref<18x18x128xf32, #tpu.memory_space<vmem>>, vector<1x16x128xf32>
    %392 = vector.shape_cast %391 : vector<1x16x128xf32> to vector<16x128xf32>
    %393 = vector.extract_strided_slice %22 {offsets = [2, 0], sizes = [1, 128], strides = [1, 1]} : vector<9x128xf32> to vector<1x128xf32>
    %394 = vector.broadcast %393 : vector<1x128xf32> to vector<16x128xf32>
    %395 = arith.mulf %392, %394 : vector<16x128xf32>
    %396 = arith.addf %388, %395 : vector<16x128xf32>
    %c1_i32_164 = arith.constant 1 : i32
    %397 = arith.addi %c4_i32, %c1_i32_164 : i32
    %398 = arith.index_cast %397 : i32 to index
    %c0_165 = arith.constant 0 : index
    %c0_166 = arith.constant 0 : index
    %399 = vector.load %arg13[%398, %c0_165, %c0_166] : memref<18x18x128xf32, #tpu.memory_space<vmem>>, vector<1x16x128xf32>
    %400 = vector.shape_cast %399 : vector<1x16x128xf32> to vector<16x128xf32>
    %401 = vector.extract_strided_slice %22 {offsets = [3, 0], sizes = [1, 128], strides = [1, 1]} : vector<9x128xf32> to vector<1x128xf32>
    %402 = vector.broadcast %401 : vector<1x128xf32> to vector<16x128xf32>
    %403 = arith.mulf %400, %402 : vector<16x128xf32>
    %404 = arith.addf %396, %403 : vector<16x128xf32>
    %c1_i32_167 = arith.constant 1 : i32
    %405 = arith.addi %c4_i32, %c1_i32_167 : i32
    %406 = arith.index_cast %405 : i32 to index
    %c1_168 = arith.constant 1 : index
    %c0_169 = arith.constant 0 : index
    %407 = vector.load %arg13[%406, %c1_168, %c0_169] : memref<18x18x128xf32, #tpu.memory_space<vmem>>, vector<1x16x128xf32>
    %408 = vector.shape_cast %407 : vector<1x16x128xf32> to vector<16x128xf32>
    %409 = vector.extract_strided_slice %22 {offsets = [4, 0], sizes = [1, 128], strides = [1, 1]} : vector<9x128xf32> to vector<1x128xf32>
    %410 = vector.broadcast %409 : vector<1x128xf32> to vector<16x128xf32>
    %411 = arith.mulf %408, %410 : vector<16x128xf32>
    %412 = arith.addf %404, %411 : vector<16x128xf32>
    %c1_i32_170 = arith.constant 1 : i32
    %413 = arith.addi %c4_i32, %c1_i32_170 : i32
    %414 = arith.index_cast %413 : i32 to index
    %c2_171 = arith.constant 2 : index
    %c0_172 = arith.constant 0 : index
    %415 = vector.load %arg13[%414, %c2_171, %c0_172] : memref<18x18x128xf32, #tpu.memory_space<vmem>>, vector<1x16x128xf32>
    %416 = vector.shape_cast %415 : vector<1x16x128xf32> to vector<16x128xf32>
    %417 = vector.extract_strided_slice %22 {offsets = [5, 0], sizes = [1, 128], strides = [1, 1]} : vector<9x128xf32> to vector<1x128xf32>
    %418 = vector.broadcast %417 : vector<1x128xf32> to vector<16x128xf32>
    %419 = arith.mulf %416, %418 : vector<16x128xf32>
    %420 = arith.addf %412, %419 : vector<16x128xf32>
    %c2_i32_173 = arith.constant 2 : i32
    %421 = arith.addi %c4_i32, %c2_i32_173 : i32
    %422 = arith.index_cast %421 : i32 to index
    %c0_174 = arith.constant 0 : index
    %c0_175 = arith.constant 0 : index
    %423 = vector.load %arg13[%422, %c0_174, %c0_175] : memref<18x18x128xf32, #tpu.memory_space<vmem>>, vector<1x16x128xf32>
    %424 = vector.shape_cast %423 : vector<1x16x128xf32> to vector<16x128xf32>
    %425 = vector.extract_strided_slice %22 {offsets = [6, 0], sizes = [1, 128], strides = [1, 1]} : vector<9x128xf32> to vector<1x128xf32>
    %426 = vector.broadcast %425 : vector<1x128xf32> to vector<16x128xf32>
    %427 = arith.mulf %424, %426 : vector<16x128xf32>
    %428 = arith.addf %420, %427 : vector<16x128xf32>
    %c2_i32_176 = arith.constant 2 : i32
    %429 = arith.addi %c4_i32, %c2_i32_176 : i32
    %430 = arith.index_cast %429 : i32 to index
    %c1_177 = arith.constant 1 : index
    %c0_178 = arith.constant 0 : index
    %431 = vector.load %arg13[%430, %c1_177, %c0_178] : memref<18x18x128xf32, #tpu.memory_space<vmem>>, vector<1x16x128xf32>
    %432 = vector.shape_cast %431 : vector<1x16x128xf32> to vector<16x128xf32>
    %433 = vector.extract_strided_slice %22 {offsets = [7, 0], sizes = [1, 128], strides = [1, 1]} : vector<9x128xf32> to vector<1x128xf32>
    %434 = vector.broadcast %433 : vector<1x128xf32> to vector<16x128xf32>
    %435 = arith.mulf %432, %434 : vector<16x128xf32>
    %436 = arith.addf %428, %435 : vector<16x128xf32>
    %c2_i32_179 = arith.constant 2 : i32
    %437 = arith.addi %c4_i32, %c2_i32_179 : i32
    %438 = arith.index_cast %437 : i32 to index
    %c2_180 = arith.constant 2 : index
    %c0_181 = arith.constant 0 : index
    %439 = vector.load %arg13[%438, %c2_180, %c0_181] : memref<18x18x128xf32, #tpu.memory_space<vmem>>, vector<1x16x128xf32>
    %440 = vector.shape_cast %439 : vector<1x16x128xf32> to vector<16x128xf32>
    %441 = vector.extract_strided_slice %22 {offsets = [8, 0], sizes = [1, 128], strides = [1, 1]} : vector<9x128xf32> to vector<1x128xf32>
    %442 = vector.broadcast %441 : vector<1x128xf32> to vector<16x128xf32>
    %443 = arith.mulf %440, %442 : vector<16x128xf32>
    %444 = arith.addf %436, %443 : vector<16x128xf32>
    %445 = vector.broadcast %23 : vector<1x128xf32> to vector<16x128xf32>
    %446 = arith.addf %444, %445 : vector<16x128xf32>
    %cst_182 = arith.constant 0.000000e+00 : f32
    %447 = vector.broadcast %cst_182 : f32 to vector<16x128xf32>
    %448 = arith.subf %447, %446 : vector<16x128xf32>
    %449 = math.exp %448 : vector<16x128xf32>
    %cst_183 = arith.constant 1.000000e+00 : f32
    %450 = vector.broadcast %cst_183 : f32 to vector<16x128xf32>
    %451 = arith.addf %450, %449 : vector<16x128xf32>
    %452 = tpu.reciprocal %451 {approx = true} : vector<16x128xf32> -> vector<16x128xf32>
    %453 = arith.mulf %446, %452 : vector<16x128xf32>
    %454 = arith.truncf %453 : vector<16x128xf32> to vector<16x128xbf16>
    %455 = arith.index_cast %c4_i32 : i32 to index
    %c0_184 = arith.constant 0 : index
    %c0_185 = arith.constant 0 : index
    %456 = vector.load %arg14[%455, %c0_184, %c0_185] : memref<16x16x128xbf16, #tpu.memory_space<vmem>>, vector<1x16x128xbf16>
    %457 = vector.shape_cast %456 : vector<1x16x128xbf16> to vector<16x128xbf16>
    %458 = vector.shape_cast %454 : vector<16x128xbf16> to vector<1x16x128xbf16>
    tpu.vector_store %arg14[%455, %c0_184, %c0_185], %458 {strides = array<i32>} : memref<16x16x128xbf16, #tpu.memory_space<vmem>>, vector<1x16x128xbf16>,
    %c5_i32 = arith.constant 5 : i32
    %cst_186 = arith.constant 0.000000e+00 : f32
    %459 = vector.broadcast %cst_186 : f32 to vector<16x128xf32>
    %c0_i32_187 = arith.constant 0 : i32
    %460 = arith.addi %c5_i32, %c0_i32_187 : i32
    %461 = arith.index_cast %460 : i32 to index
    %c0_188 = arith.constant 0 : index
    %c0_189 = arith.constant 0 : index
    %462 = vector.load %arg13[%461, %c0_188, %c0_189] : memref<18x18x128xf32, #tpu.memory_space<vmem>>, vector<1x16x128xf32>
    %463 = vector.shape_cast %462 : vector<1x16x128xf32> to vector<16x128xf32>
    %464 = vector.extract_strided_slice %22 {offsets = [0, 0], sizes = [1, 128], strides = [1, 1]} : vector<9x128xf32> to vector<1x128xf32>
    %465 = vector.broadcast %464 : vector<1x128xf32> to vector<16x128xf32>
    %466 = arith.mulf %463, %465 : vector<16x128xf32>
    %467 = arith.addf %459, %466 : vector<16x128xf32>
    %c0_i32_190 = arith.constant 0 : i32
    %468 = arith.addi %c5_i32, %c0_i32_190 : i32
    %469 = arith.index_cast %468 : i32 to index
    %c1_191 = arith.constant 1 : index
    %c0_192 = arith.constant 0 : index
    %470 = vector.load %arg13[%469, %c1_191, %c0_192] : memref<18x18x128xf32, #tpu.memory_space<vmem>>, vector<1x16x128xf32>
    %471 = vector.shape_cast %470 : vector<1x16x128xf32> to vector<16x128xf32>
    %472 = vector.extract_strided_slice %22 {offsets = [1, 0], sizes = [1, 128], strides = [1, 1]} : vector<9x128xf32> to vector<1x128xf32>
    %473 = vector.broadcast %472 : vector<1x128xf32> to vector<16x128xf32>
    %474 = arith.mulf %471, %473 : vector<16x128xf32>
    %475 = arith.addf %467, %474 : vector<16x128xf32>
    %c0_i32_193 = arith.constant 0 : i32
    %476 = arith.addi %c5_i32, %c0_i32_193 : i32
    %477 = arith.index_cast %476 : i32 to index
    %c2_194 = arith.constant 2 : index
    %c0_195 = arith.constant 0 : index
    %478 = vector.load %arg13[%477, %c2_194, %c0_195] : memref<18x18x128xf32, #tpu.memory_space<vmem>>, vector<1x16x128xf32>
    %479 = vector.shape_cast %478 : vector<1x16x128xf32> to vector<16x128xf32>
    %480 = vector.extract_strided_slice %22 {offsets = [2, 0], sizes = [1, 128], strides = [1, 1]} : vector<9x128xf32> to vector<1x128xf32>
    %481 = vector.broadcast %480 : vector<1x128xf32> to vector<16x128xf32>
    %482 = arith.mulf %479, %481 : vector<16x128xf32>
    %483 = arith.addf %475, %482 : vector<16x128xf32>
    %c1_i32_196 = arith.constant 1 : i32
    %484 = arith.addi %c5_i32, %c1_i32_196 : i32
    %485 = arith.index_cast %484 : i32 to index
    %c0_197 = arith.constant 0 : index
    %c0_198 = arith.constant 0 : index
    %486 = vector.load %arg13[%485, %c0_197, %c0_198] : memref<18x18x128xf32, #tpu.memory_space<vmem>>, vector<1x16x128xf32>
    %487 = vector.shape_cast %486 : vector<1x16x128xf32> to vector<16x128xf32>
    %488 = vector.extract_strided_slice %22 {offsets = [3, 0], sizes = [1, 128], strides = [1, 1]} : vector<9x128xf32> to vector<1x128xf32>
    %489 = vector.broadcast %488 : vector<1x128xf32> to vector<16x128xf32>
    %490 = arith.mulf %487, %489 : vector<16x128xf32>
    %491 = arith.addf %483, %490 : vector<16x128xf32>
    %c1_i32_199 = arith.constant 1 : i32
    %492 = arith.addi %c5_i32, %c1_i32_199 : i32
    %493 = arith.index_cast %492 : i32 to index
    %c1_200 = arith.constant 1 : index
    %c0_201 = arith.constant 0 : index
    %494 = vector.load %arg13[%493, %c1_200, %c0_201] : memref<18x18x128xf32, #tpu.memory_space<vmem>>, vector<1x16x128xf32>
    %495 = vector.shape_cast %494 : vector<1x16x128xf32> to vector<16x128xf32>
    %496 = vector.extract_strided_slice %22 {offsets = [4, 0], sizes = [1, 128], strides = [1, 1]} : vector<9x128xf32> to vector<1x128xf32>
    %497 = vector.broadcast %496 : vector<1x128xf32> to vector<16x128xf32>
    %498 = arith.mulf %495, %497 : vector<16x128xf32>
    %499 = arith.addf %491, %498 : vector<16x128xf32>
    %c1_i32_202 = arith.constant 1 : i32
    %500 = arith.addi %c5_i32, %c1_i32_202 : i32
    %501 = arith.index_cast %500 : i32 to index
    %c2_203 = arith.constant 2 : index
    %c0_204 = arith.constant 0 : index
    %502 = vector.load %arg13[%501, %c2_203, %c0_204] : memref<18x18x128xf32, #tpu.memory_space<vmem>>, vector<1x16x128xf32>
    %503 = vector.shape_cast %502 : vector<1x16x128xf32> to vector<16x128xf32>
    %504 = vector.extract_strided_slice %22 {offsets = [5, 0], sizes = [1, 128], strides = [1, 1]} : vector<9x128xf32> to vector<1x128xf32>
    %505 = vector.broadcast %504 : vector<1x128xf32> to vector<16x128xf32>
    %506 = arith.mulf %503, %505 : vector<16x128xf32>
    %507 = arith.addf %499, %506 : vector<16x128xf32>
    %c2_i32_205 = arith.constant 2 : i32
    %508 = arith.addi %c5_i32, %c2_i32_205 : i32
    %509 = arith.index_cast %508 : i32 to index
    %c0_206 = arith.constant 0 : index
    %c0_207 = arith.constant 0 : index
    %510 = vector.load %arg13[%509, %c0_206, %c0_207] : memref<18x18x128xf32, #tpu.memory_space<vmem>>, vector<1x16x128xf32>
    %511 = vector.shape_cast %510 : vector<1x16x128xf32> to vector<16x128xf32>
    %512 = vector.extract_strided_slice %22 {offsets = [6, 0], sizes = [1, 128], strides = [1, 1]} : vector<9x128xf32> to vector<1x128xf32>
    %513 = vector.broadcast %512 : vector<1x128xf32> to vector<16x128xf32>
    %514 = arith.mulf %511, %513 : vector<16x128xf32>
    %515 = arith.addf %507, %514 : vector<16x128xf32>
    %c2_i32_208 = arith.constant 2 : i32
    %516 = arith.addi %c5_i32, %c2_i32_208 : i32
    %517 = arith.index_cast %516 : i32 to index
    %c1_209 = arith.constant 1 : index
    %c0_210 = arith.constant 0 : index
    %518 = vector.load %arg13[%517, %c1_209, %c0_210] : memref<18x18x128xf32, #tpu.memory_space<vmem>>, vector<1x16x128xf32>
    %519 = vector.shape_cast %518 : vector<1x16x128xf32> to vector<16x128xf32>
    %520 = vector.extract_strided_slice %22 {offsets = [7, 0], sizes = [1, 128], strides = [1, 1]} : vector<9x128xf32> to vector<1x128xf32>
    %521 = vector.broadcast %520 : vector<1x128xf32> to vector<16x128xf32>
    %522 = arith.mulf %519, %521 : vector<16x128xf32>
    %523 = arith.addf %515, %522 : vector<16x128xf32>
    %c2_i32_211 = arith.constant 2 : i32
    %524 = arith.addi %c5_i32, %c2_i32_211 : i32
    %525 = arith.index_cast %524 : i32 to index
    %c2_212 = arith.constant 2 : index
    %c0_213 = arith.constant 0 : index
    %526 = vector.load %arg13[%525, %c2_212, %c0_213] : memref<18x18x128xf32, #tpu.memory_space<vmem>>, vector<1x16x128xf32>
    %527 = vector.shape_cast %526 : vector<1x16x128xf32> to vector<16x128xf32>
    %528 = vector.extract_strided_slice %22 {offsets = [8, 0], sizes = [1, 128], strides = [1, 1]} : vector<9x128xf32> to vector<1x128xf32>
    %529 = vector.broadcast %528 : vector<1x128xf32> to vector<16x128xf32>
    %530 = arith.mulf %527, %529 : vector<16x128xf32>
    %531 = arith.addf %523, %530 : vector<16x128xf32>
    %532 = vector.broadcast %23 : vector<1x128xf32> to vector<16x128xf32>
    %533 = arith.addf %531, %532 : vector<16x128xf32>
    %cst_214 = arith.constant 0.000000e+00 : f32
    %534 = vector.broadcast %cst_214 : f32 to vector<16x128xf32>
    %535 = arith.subf %534, %533 : vector<16x128xf32>
    %536 = math.exp %535 : vector<16x128xf32>
    %cst_215 = arith.constant 1.000000e+00 : f32
    %537 = vector.broadcast %cst_215 : f32 to vector<16x128xf32>
    %538 = arith.addf %537, %536 : vector<16x128xf32>
    %539 = tpu.reciprocal %538 {approx = true} : vector<16x128xf32> -> vector<16x128xf32>
    %540 = arith.mulf %533, %539 : vector<16x128xf32>
    %541 = arith.truncf %540 : vector<16x128xf32> to vector<16x128xbf16>
    %542 = arith.index_cast %c5_i32 : i32 to index
    %c0_216 = arith.constant 0 : index
    %c0_217 = arith.constant 0 : index
    %543 = vector.load %arg14[%542, %c0_216, %c0_217] : memref<16x16x128xbf16, #tpu.memory_space<vmem>>, vector<1x16x128xbf16>
    %544 = vector.shape_cast %543 : vector<1x16x128xbf16> to vector<16x128xbf16>
    %545 = vector.shape_cast %541 : vector<16x128xbf16> to vector<1x16x128xbf16>
    tpu.vector_store %arg14[%542, %c0_216, %c0_217], %545 {strides = array<i32>} : memref<16x16x128xbf16, #tpu.memory_space<vmem>>, vector<1x16x128xbf16>,
    %c6_i32 = arith.constant 6 : i32
    %cst_218 = arith.constant 0.000000e+00 : f32
    %546 = vector.broadcast %cst_218 : f32 to vector<16x128xf32>
    %c0_i32_219 = arith.constant 0 : i32
    %547 = arith.addi %c6_i32, %c0_i32_219 : i32
    %548 = arith.index_cast %547 : i32 to index
    %c0_220 = arith.constant 0 : index
    %c0_221 = arith.constant 0 : index
    %549 = vector.load %arg13[%548, %c0_220, %c0_221] : memref<18x18x128xf32, #tpu.memory_space<vmem>>, vector<1x16x128xf32>
    %550 = vector.shape_cast %549 : vector<1x16x128xf32> to vector<16x128xf32>
    %551 = vector.extract_strided_slice %22 {offsets = [0, 0], sizes = [1, 128], strides = [1, 1]} : vector<9x128xf32> to vector<1x128xf32>
    %552 = vector.broadcast %551 : vector<1x128xf32> to vector<16x128xf32>
    %553 = arith.mulf %550, %552 : vector<16x128xf32>
    %554 = arith.addf %546, %553 : vector<16x128xf32>
    %c0_i32_222 = arith.constant 0 : i32
    %555 = arith.addi %c6_i32, %c0_i32_222 : i32
    %556 = arith.index_cast %555 : i32 to index
    %c1_223 = arith.constant 1 : index
    %c0_224 = arith.constant 0 : index
    %557 = vector.load %arg13[%556, %c1_223, %c0_224] : memref<18x18x128xf32, #tpu.memory_space<vmem>>, vector<1x16x128xf32>
    %558 = vector.shape_cast %557 : vector<1x16x128xf32> to vector<16x128xf32>
    %559 = vector.extract_strided_slice %22 {offsets = [1, 0], sizes = [1, 128], strides = [1, 1]} : vector<9x128xf32> to vector<1x128xf32>
    %560 = vector.broadcast %559 : vector<1x128xf32> to vector<16x128xf32>
    %561 = arith.mulf %558, %560 : vector<16x128xf32>
    %562 = arith.addf %554, %561 : vector<16x128xf32>
    %c0_i32_225 = arith.constant 0 : i32
    %563 = arith.addi %c6_i32, %c0_i32_225 : i32
    %564 = arith.index_cast %563 : i32 to index
    %c2_226 = arith.constant 2 : index
    %c0_227 = arith.constant 0 : index
    %565 = vector.load %arg13[%564, %c2_226, %c0_227] : memref<18x18x128xf32, #tpu.memory_space<vmem>>, vector<1x16x128xf32>
    %566 = vector.shape_cast %565 : vector<1x16x128xf32> to vector<16x128xf32>
    %567 = vector.extract_strided_slice %22 {offsets = [2, 0], sizes = [1, 128], strides = [1, 1]} : vector<9x128xf32> to vector<1x128xf32>
    %568 = vector.broadcast %567 : vector<1x128xf32> to vector<16x128xf32>
    %569 = arith.mulf %566, %568 : vector<16x128xf32>
    %570 = arith.addf %562, %569 : vector<16x128xf32>
    %c1_i32_228 = arith.constant 1 : i32
    %571 = arith.addi %c6_i32, %c1_i32_228 : i32
    %572 = arith.index_cast %571 : i32 to index
    %c0_229 = arith.constant 0 : index
    %c0_230 = arith.constant 0 : index
    %573 = vector.load %arg13[%572, %c0_229, %c0_230] : memref<18x18x128xf32, #tpu.memory_space<vmem>>, vector<1x16x128xf32>
    %574 = vector.shape_cast %573 : vector<1x16x128xf32> to vector<16x128xf32>
    %575 = vector.extract_strided_slice %22 {offsets = [3, 0], sizes = [1, 128], strides = [1, 1]} : vector<9x128xf32> to vector<1x128xf32>
    %576 = vector.broadcast %575 : vector<1x128xf32> to vector<16x128xf32>
    %577 = arith.mulf %574, %576 : vector<16x128xf32>
    %578 = arith.addf %570, %577 : vector<16x128xf32>
    %c1_i32_231 = arith.constant 1 : i32
    %579 = arith.addi %c6_i32, %c1_i32_231 : i32
    %580 = arith.index_cast %579 : i32 to index
    %c1_232 = arith.constant 1 : index
    %c0_233 = arith.constant 0 : index
    %581 = vector.load %arg13[%580, %c1_232, %c0_233] : memref<18x18x128xf32, #tpu.memory_space<vmem>>, vector<1x16x128xf32>
    %582 = vector.shape_cast %581 : vector<1x16x128xf32> to vector<16x128xf32>
    %583 = vector.extract_strided_slice %22 {offsets = [4, 0], sizes = [1, 128], strides = [1, 1]} : vector<9x128xf32> to vector<1x128xf32>
    %584 = vector.broadcast %583 : vector<1x128xf32> to vector<16x128xf32>
    %585 = arith.mulf %582, %584 : vector<16x128xf32>
    %586 = arith.addf %578, %585 : vector<16x128xf32>
    %c1_i32_234 = arith.constant 1 : i32
    %587 = arith.addi %c6_i32, %c1_i32_234 : i32
    %588 = arith.index_cast %587 : i32 to index
    %c2_235 = arith.constant 2 : index
    %c0_236 = arith.constant 0 : index
    %589 = vector.load %arg13[%588, %c2_235, %c0_236] : memref<18x18x128xf32, #tpu.memory_space<vmem>>, vector<1x16x128xf32>
    %590 = vector.shape_cast %589 : vector<1x16x128xf32> to vector<16x128xf32>
    %591 = vector.extract_strided_slice %22 {offsets = [5, 0], sizes = [1, 128], strides = [1, 1]} : vector<9x128xf32> to vector<1x128xf32>
    %592 = vector.broadcast %591 : vector<1x128xf32> to vector<16x128xf32>
    %593 = arith.mulf %590, %592 : vector<16x128xf32>
    %594 = arith.addf %586, %593 : vector<16x128xf32>
    %c2_i32_237 = arith.constant 2 : i32
    %595 = arith.addi %c6_i32, %c2_i32_237 : i32
    %596 = arith.index_cast %595 : i32 to index
    %c0_238 = arith.constant 0 : index
    %c0_239 = arith.constant 0 : index
    %597 = vector.load %arg13[%596, %c0_238, %c0_239] : memref<18x18x128xf32, #tpu.memory_space<vmem>>, vector<1x16x128xf32>
    %598 = vector.shape_cast %597 : vector<1x16x128xf32> to vector<16x128xf32>
    %599 = vector.extract_strided_slice %22 {offsets = [6, 0], sizes = [1, 128], strides = [1, 1]} : vector<9x128xf32> to vector<1x128xf32>
    %600 = vector.broadcast %599 : vector<1x128xf32> to vector<16x128xf32>
    %601 = arith.mulf %598, %600 : vector<16x128xf32>
    %602 = arith.addf %594, %601 : vector<16x128xf32>
    %c2_i32_240 = arith.constant 2 : i32
    %603 = arith.addi %c6_i32, %c2_i32_240 : i32
    %604 = arith.index_cast %603 : i32 to index
    %c1_241 = arith.constant 1 : index
    %c0_242 = arith.constant 0 : index
    %605 = vector.load %arg13[%604, %c1_241, %c0_242] : memref<18x18x128xf32, #tpu.memory_space<vmem>>, vector<1x16x128xf32>
    %606 = vector.shape_cast %605 : vector<1x16x128xf32> to vector<16x128xf32>
    %607 = vector.extract_strided_slice %22 {offsets = [7, 0], sizes = [1, 128], strides = [1, 1]} : vector<9x128xf32> to vector<1x128xf32>
    %608 = vector.broadcast %607 : vector<1x128xf32> to vector<16x128xf32>
    %609 = arith.mulf %606, %608 : vector<16x128xf32>
    %610 = arith.addf %602, %609 : vector<16x128xf32>
    %c2_i32_243 = arith.constant 2 : i32
    %611 = arith.addi %c6_i32, %c2_i32_243 : i32
    %612 = arith.index_cast %611 : i32 to index
    %c2_244 = arith.constant 2 : index
    %c0_245 = arith.constant 0 : index
    %613 = vector.load %arg13[%612, %c2_244, %c0_245] : memref<18x18x128xf32, #tpu.memory_space<vmem>>, vector<1x16x128xf32>
    %614 = vector.shape_cast %613 : vector<1x16x128xf32> to vector<16x128xf32>
    %615 = vector.extract_strided_slice %22 {offsets = [8, 0], sizes = [1, 128], strides = [1, 1]} : vector<9x128xf32> to vector<1x128xf32>
    %616 = vector.broadcast %615 : vector<1x128xf32> to vector<16x128xf32>
    %617 = arith.mulf %614, %616 : vector<16x128xf32>
    %618 = arith.addf %610, %617 : vector<16x128xf32>
    %619 = vector.broadcast %23 : vector<1x128xf32> to vector<16x128xf32>
    %620 = arith.addf %618, %619 : vector<16x128xf32>
    %cst_246 = arith.constant 0.000000e+00 : f32
    %621 = vector.broadcast %cst_246 : f32 to vector<16x128xf32>
    %622 = arith.subf %621, %620 : vector<16x128xf32>
    %623 = math.exp %622 : vector<16x128xf32>
    %cst_247 = arith.constant 1.000000e+00 : f32
    %624 = vector.broadcast %cst_247 : f32 to vector<16x128xf32>
    %625 = arith.addf %624, %623 : vector<16x128xf32>
    %626 = tpu.reciprocal %625 {approx = true} : vector<16x128xf32> -> vector<16x128xf32>
    %627 = arith.mulf %620, %626 : vector<16x128xf32>
    %628 = arith.truncf %627 : vector<16x128xf32> to vector<16x128xbf16>
    %629 = arith.index_cast %c6_i32 : i32 to index
    %c0_248 = arith.constant 0 : index
    %c0_249 = arith.constant 0 : index
    %630 = vector.load %arg14[%629, %c0_248, %c0_249] : memref<16x16x128xbf16, #tpu.memory_space<vmem>>, vector<1x16x128xbf16>
    %631 = vector.shape_cast %630 : vector<1x16x128xbf16> to vector<16x128xbf16>
    %632 = vector.shape_cast %628 : vector<16x128xbf16> to vector<1x16x128xbf16>
    tpu.vector_store %arg14[%629, %c0_248, %c0_249], %632 {strides = array<i32>} : memref<16x16x128xbf16, #tpu.memory_space<vmem>>, vector<1x16x128xbf16>,
    %c7_i32 = arith.constant 7 : i32
    %cst_250 = arith.constant 0.000000e+00 : f32
    %633 = vector.broadcast %cst_250 : f32 to vector<16x128xf32>
    %c0_i32_251 = arith.constant 0 : i32
    %634 = arith.addi %c7_i32, %c0_i32_251 : i32
    %635 = arith.index_cast %634 : i32 to index
    %c0_252 = arith.constant 0 : index
    %c0_253 = arith.constant 0 : index
    %636 = vector.load %arg13[%635, %c0_252, %c0_253] : memref<18x18x128xf32, #tpu.memory_space<vmem>>, vector<1x16x128xf32>
    %637 = vector.shape_cast %636 : vector<1x16x128xf32> to vector<16x128xf32>
    %638 = vector.extract_strided_slice %22 {offsets = [0, 0], sizes = [1, 128], strides = [1, 1]} : vector<9x128xf32> to vector<1x128xf32>
    %639 = vector.broadcast %638 : vector<1x128xf32> to vector<16x128xf32>
    %640 = arith.mulf %637, %639 : vector<16x128xf32>
    %641 = arith.addf %633, %640 : vector<16x128xf32>
    %c0_i32_254 = arith.constant 0 : i32
    %642 = arith.addi %c7_i32, %c0_i32_254 : i32
    %643 = arith.index_cast %642 : i32 to index
    %c1_255 = arith.constant 1 : index
    %c0_256 = arith.constant 0 : index
    %644 = vector.load %arg13[%643, %c1_255, %c0_256] : memref<18x18x128xf32, #tpu.memory_space<vmem>>, vector<1x16x128xf32>
    %645 = vector.shape_cast %644 : vector<1x16x128xf32> to vector<16x128xf32>
    %646 = vector.extract_strided_slice %22 {offsets = [1, 0], sizes = [1, 128], strides = [1, 1]} : vector<9x128xf32> to vector<1x128xf32>
    %647 = vector.broadcast %646 : vector<1x128xf32> to vector<16x128xf32>
    %648 = arith.mulf %645, %647 : vector<16x128xf32>
    %649 = arith.addf %641, %648 : vector<16x128xf32>
    %c0_i32_257 = arith.constant 0 : i32
    %650 = arith.addi %c7_i32, %c0_i32_257 : i32
    %651 = arith.index_cast %650 : i32 to index
    %c2_258 = arith.constant 2 : index
    %c0_259 = arith.constant 0 : index
    %652 = vector.load %arg13[%651, %c2_258, %c0_259] : memref<18x18x128xf32, #tpu.memory_space<vmem>>, vector<1x16x128xf32>
    %653 = vector.shape_cast %652 : vector<1x16x128xf32> to vector<16x128xf32>
    %654 = vector.extract_strided_slice %22 {offsets = [2, 0], sizes = [1, 128], strides = [1, 1]} : vector<9x128xf32> to vector<1x128xf32>
    %655 = vector.broadcast %654 : vector<1x128xf32> to vector<16x128xf32>
    %656 = arith.mulf %653, %655 : vector<16x128xf32>
    %657 = arith.addf %649, %656 : vector<16x128xf32>
    %c1_i32_260 = arith.constant 1 : i32
    %658 = arith.addi %c7_i32, %c1_i32_260 : i32
    %659 = arith.index_cast %658 : i32 to index
    %c0_261 = arith.constant 0 : index
    %c0_262 = arith.constant 0 : index
    %660 = vector.load %arg13[%659, %c0_261, %c0_262] : memref<18x18x128xf32, #tpu.memory_space<vmem>>, vector<1x16x128xf32>
    %661 = vector.shape_cast %660 : vector<1x16x128xf32> to vector<16x128xf32>
    %662 = vector.extract_strided_slice %22 {offsets = [3, 0], sizes = [1, 128], strides = [1, 1]} : vector<9x128xf32> to vector<1x128xf32>
    %663 = vector.broadcast %662 : vector<1x128xf32> to vector<16x128xf32>
    %664 = arith.mulf %661, %663 : vector<16x128xf32>
    %665 = arith.addf %657, %664 : vector<16x128xf32>
    %c1_i32_263 = arith.constant 1 : i32
    %666 = arith.addi %c7_i32, %c1_i32_263 : i32
    %667 = arith.index_cast %666 : i32 to index
    %c1_264 = arith.constant 1 : index
    %c0_265 = arith.constant 0 : index
    %668 = vector.load %arg13[%667, %c1_264, %c0_265] : memref<18x18x128xf32, #tpu.memory_space<vmem>>, vector<1x16x128xf32>
    %669 = vector.shape_cast %668 : vector<1x16x128xf32> to vector<16x128xf32>
    %670 = vector.extract_strided_slice %22 {offsets = [4, 0], sizes = [1, 128], strides = [1, 1]} : vector<9x128xf32> to vector<1x128xf32>
    %671 = vector.broadcast %670 : vector<1x128xf32> to vector<16x128xf32>
    %672 = arith.mulf %669, %671 : vector<16x128xf32>
    %673 = arith.addf %665, %672 : vector<16x128xf32>
    %c1_i32_266 = arith.constant 1 : i32
    %674 = arith.addi %c7_i32, %c1_i32_266 : i32
    %675 = arith.index_cast %674 : i32 to index
    %c2_267 = arith.constant 2 : index
    %c0_268 = arith.constant 0 : index
    %676 = vector.load %arg13[%675, %c2_267, %c0_268] : memref<18x18x128xf32, #tpu.memory_space<vmem>>, vector<1x16x128xf32>
    %677 = vector.shape_cast %676 : vector<1x16x128xf32> to vector<16x128xf32>
    %678 = vector.extract_strided_slice %22 {offsets = [5, 0], sizes = [1, 128], strides = [1, 1]} : vector<9x128xf32> to vector<1x128xf32>
    %679 = vector.broadcast %678 : vector<1x128xf32> to vector<16x128xf32>
    %680 = arith.mulf %677, %679 : vector<16x128xf32>
    %681 = arith.addf %673, %680 : vector<16x128xf32>
    %c2_i32_269 = arith.constant 2 : i32
    %682 = arith.addi %c7_i32, %c2_i32_269 : i32
    %683 = arith.index_cast %682 : i32 to index
    %c0_270 = arith.constant 0 : index
    %c0_271 = arith.constant 0 : index
    %684 = vector.load %arg13[%683, %c0_270, %c0_271] : memref<18x18x128xf32, #tpu.memory_space<vmem>>, vector<1x16x128xf32>
    %685 = vector.shape_cast %684 : vector<1x16x128xf32> to vector<16x128xf32>
    %686 = vector.extract_strided_slice %22 {offsets = [6, 0], sizes = [1, 128], strides = [1, 1]} : vector<9x128xf32> to vector<1x128xf32>
    %687 = vector.broadcast %686 : vector<1x128xf32> to vector<16x128xf32>
    %688 = arith.mulf %685, %687 : vector<16x128xf32>
    %689 = arith.addf %681, %688 : vector<16x128xf32>
    %c2_i32_272 = arith.constant 2 : i32
    %690 = arith.addi %c7_i32, %c2_i32_272 : i32
    %691 = arith.index_cast %690 : i32 to index
    %c1_273 = arith.constant 1 : index
    %c0_274 = arith.constant 0 : index
    %692 = vector.load %arg13[%691, %c1_273, %c0_274] : memref<18x18x128xf32, #tpu.memory_space<vmem>>, vector<1x16x128xf32>
    %693 = vector.shape_cast %692 : vector<1x16x128xf32> to vector<16x128xf32>
    %694 = vector.extract_strided_slice %22 {offsets = [7, 0], sizes = [1, 128], strides = [1, 1]} : vector<9x128xf32> to vector<1x128xf32>
    %695 = vector.broadcast %694 : vector<1x128xf32> to vector<16x128xf32>
    %696 = arith.mulf %693, %695 : vector<16x128xf32>
    %697 = arith.addf %689, %696 : vector<16x128xf32>
    %c2_i32_275 = arith.constant 2 : i32
    %698 = arith.addi %c7_i32, %c2_i32_275 : i32
    %699 = arith.index_cast %698 : i32 to index
    %c2_276 = arith.constant 2 : index
    %c0_277 = arith.constant 0 : index
    %700 = vector.load %arg13[%699, %c2_276, %c0_277] : memref<18x18x128xf32, #tpu.memory_space<vmem>>, vector<1x16x128xf32>
    %701 = vector.shape_cast %700 : vector<1x16x128xf32> to vector<16x128xf32>
    %702 = vector.extract_strided_slice %22 {offsets = [8, 0], sizes = [1, 128], strides = [1, 1]} : vector<9x128xf32> to vector<1x128xf32>
    %703 = vector.broadcast %702 : vector<1x128xf32> to vector<16x128xf32>
    %704 = arith.mulf %701, %703 : vector<16x128xf32>
    %705 = arith.addf %697, %704 : vector<16x128xf32>
    %706 = vector.broadcast %23 : vector<1x128xf32> to vector<16x128xf32>
    %707 = arith.addf %705, %706 : vector<16x128xf32>
    %cst_278 = arith.constant 0.000000e+00 : f32
    %708 = vector.broadcast %cst_278 : f32 to vector<16x128xf32>
    %709 = arith.subf %708, %707 : vector<16x128xf32>
    %710 = math.exp %709 : vector<16x128xf32>
    %cst_279 = arith.constant 1.000000e+00 : f32
    %711 = vector.broadcast %cst_279 : f32 to vector<16x128xf32>
    %712 = arith.addf %711, %710 : vector<16x128xf32>
    %713 = tpu.reciprocal %712 {approx = true} : vector<16x128xf32> -> vector<16x128xf32>
    %714 = arith.mulf %707, %713 : vector<16x128xf32>
    %715 = arith.truncf %714 : vector<16x128xf32> to vector<16x128xbf16>
    %716 = arith.index_cast %c7_i32 : i32 to index
    %c0_280 = arith.constant 0 : index
    %c0_281 = arith.constant 0 : index
    %717 = vector.load %arg14[%716, %c0_280, %c0_281] : memref<16x16x128xbf16, #tpu.memory_space<vmem>>, vector<1x16x128xbf16>
    %718 = vector.shape_cast %717 : vector<1x16x128xbf16> to vector<16x128xbf16>
    %719 = vector.shape_cast %715 : vector<16x128xbf16> to vector<1x16x128xbf16>
    tpu.vector_store %arg14[%716, %c0_280, %c0_281], %719 {strides = array<i32>} : memref<16x16x128xbf16, #tpu.memory_space<vmem>>, vector<1x16x128xbf16>,
    %c8_i32 = arith.constant 8 : i32
    %cst_282 = arith.constant 0.000000e+00 : f32
    %720 = vector.broadcast %cst_282 : f32 to vector<16x128xf32>
    %c0_i32_283 = arith.constant 0 : i32
    %721 = arith.addi %c8_i32, %c0_i32_283 : i32
    %722 = arith.index_cast %721 : i32 to index
    %c0_284 = arith.constant 0 : index
    %c0_285 = arith.constant 0 : index
    %723 = vector.load %arg13[%722, %c0_284, %c0_285] : memref<18x18x128xf32, #tpu.memory_space<vmem>>, vector<1x16x128xf32>
    %724 = vector.shape_cast %723 : vector<1x16x128xf32> to vector<16x128xf32>
    %725 = vector.extract_strided_slice %22 {offsets = [0, 0], sizes = [1, 128], strides = [1, 1]} : vector<9x128xf32> to vector<1x128xf32>
    %726 = vector.broadcast %725 : vector<1x128xf32> to vector<16x128xf32>
    %727 = arith.mulf %724, %726 : vector<16x128xf32>
    %728 = arith.addf %720, %727 : vector<16x128xf32>
    %c0_i32_286 = arith.constant 0 : i32
    %729 = arith.addi %c8_i32, %c0_i32_286 : i32
    %730 = arith.index_cast %729 : i32 to index
    %c1_287 = arith.constant 1 : index
    %c0_288 = arith.constant 0 : index
    %731 = vector.load %arg13[%730, %c1_287, %c0_288] : memref<18x18x128xf32, #tpu.memory_space<vmem>>, vector<1x16x128xf32>
    %732 = vector.shape_cast %731 : vector<1x16x128xf32> to vector<16x128xf32>
    %733 = vector.extract_strided_slice %22 {offsets = [1, 0], sizes = [1, 128], strides = [1, 1]} : vector<9x128xf32> to vector<1x128xf32>
    %734 = vector.broadcast %733 : vector<1x128xf32> to vector<16x128xf32>
    %735 = arith.mulf %732, %734 : vector<16x128xf32>
    %736 = arith.addf %728, %735 : vector<16x128xf32>
    %c0_i32_289 = arith.constant 0 : i32
    %737 = arith.addi %c8_i32, %c0_i32_289 : i32
    %738 = arith.index_cast %737 : i32 to index
    %c2_290 = arith.constant 2 : index
    %c0_291 = arith.constant 0 : index
    %739 = vector.load %arg13[%738, %c2_290, %c0_291] : memref<18x18x128xf32, #tpu.memory_space<vmem>>, vector<1x16x128xf32>
    %740 = vector.shape_cast %739 : vector<1x16x128xf32> to vector<16x128xf32>
    %741 = vector.extract_strided_slice %22 {offsets = [2, 0], sizes = [1, 128], strides = [1, 1]} : vector<9x128xf32> to vector<1x128xf32>
    %742 = vector.broadcast %741 : vector<1x128xf32> to vector<16x128xf32>
    %743 = arith.mulf %740, %742 : vector<16x128xf32>
    %744 = arith.addf %736, %743 : vector<16x128xf32>
    %c1_i32_292 = arith.constant 1 : i32
    %745 = arith.addi %c8_i32, %c1_i32_292 : i32
    %746 = arith.index_cast %745 : i32 to index
    %c0_293 = arith.constant 0 : index
    %c0_294 = arith.constant 0 : index
    %747 = vector.load %arg13[%746, %c0_293, %c0_294] : memref<18x18x128xf32, #tpu.memory_space<vmem>>, vector<1x16x128xf32>
    %748 = vector.shape_cast %747 : vector<1x16x128xf32> to vector<16x128xf32>
    %749 = vector.extract_strided_slice %22 {offsets = [3, 0], sizes = [1, 128], strides = [1, 1]} : vector<9x128xf32> to vector<1x128xf32>
    %750 = vector.broadcast %749 : vector<1x128xf32> to vector<16x128xf32>
    %751 = arith.mulf %748, %750 : vector<16x128xf32>
    %752 = arith.addf %744, %751 : vector<16x128xf32>
    %c1_i32_295 = arith.constant 1 : i32
    %753 = arith.addi %c8_i32, %c1_i32_295 : i32
    %754 = arith.index_cast %753 : i32 to index
    %c1_296 = arith.constant 1 : index
    %c0_297 = arith.constant 0 : index
    %755 = vector.load %arg13[%754, %c1_296, %c0_297] : memref<18x18x128xf32, #tpu.memory_space<vmem>>, vector<1x16x128xf32>
    %756 = vector.shape_cast %755 : vector<1x16x128xf32> to vector<16x128xf32>
    %757 = vector.extract_strided_slice %22 {offsets = [4, 0], sizes = [1, 128], strides = [1, 1]} : vector<9x128xf32> to vector<1x128xf32>
    %758 = vector.broadcast %757 : vector<1x128xf32> to vector<16x128xf32>
    %759 = arith.mulf %756, %758 : vector<16x128xf32>
    %760 = arith.addf %752, %759 : vector<16x128xf32>
    %c1_i32_298 = arith.constant 1 : i32
    %761 = arith.addi %c8_i32, %c1_i32_298 : i32
    %762 = arith.index_cast %761 : i32 to index
    %c2_299 = arith.constant 2 : index
    %c0_300 = arith.constant 0 : index
    %763 = vector.load %arg13[%762, %c2_299, %c0_300] : memref<18x18x128xf32, #tpu.memory_space<vmem>>, vector<1x16x128xf32>
    %764 = vector.shape_cast %763 : vector<1x16x128xf32> to vector<16x128xf32>
    %765 = vector.extract_strided_slice %22 {offsets = [5, 0], sizes = [1, 128], strides = [1, 1]} : vector<9x128xf32> to vector<1x128xf32>
    %766 = vector.broadcast %765 : vector<1x128xf32> to vector<16x128xf32>
    %767 = arith.mulf %764, %766 : vector<16x128xf32>
    %768 = arith.addf %760, %767 : vector<16x128xf32>
    %c2_i32_301 = arith.constant 2 : i32
    %769 = arith.addi %c8_i32, %c2_i32_301 : i32
    %770 = arith.index_cast %769 : i32 to index
    %c0_302 = arith.constant 0 : index
    %c0_303 = arith.constant 0 : index
    %771 = vector.load %arg13[%770, %c0_302, %c0_303] : memref<18x18x128xf32, #tpu.memory_space<vmem>>, vector<1x16x128xf32>
    %772 = vector.shape_cast %771 : vector<1x16x128xf32> to vector<16x128xf32>
    %773 = vector.extract_strided_slice %22 {offsets = [6, 0], sizes = [1, 128], strides = [1, 1]} : vector<9x128xf32> to vector<1x128xf32>
    %774 = vector.broadcast %773 : vector<1x128xf32> to vector<16x128xf32>
    %775 = arith.mulf %772, %774 : vector<16x128xf32>
    %776 = arith.addf %768, %775 : vector<16x128xf32>
    %c2_i32_304 = arith.constant 2 : i32
    %777 = arith.addi %c8_i32, %c2_i32_304 : i32
    %778 = arith.index_cast %777 : i32 to index
    %c1_305 = arith.constant 1 : index
    %c0_306 = arith.constant 0 : index
    %779 = vector.load %arg13[%778, %c1_305, %c0_306] : memref<18x18x128xf32, #tpu.memory_space<vmem>>, vector<1x16x128xf32>
    %780 = vector.shape_cast %779 : vector<1x16x128xf32> to vector<16x128xf32>
    %781 = vector.extract_strided_slice %22 {offsets = [7, 0], sizes = [1, 128], strides = [1, 1]} : vector<9x128xf32> to vector<1x128xf32>
    %782 = vector.broadcast %781 : vector<1x128xf32> to vector<16x128xf32>
    %783 = arith.mulf %780, %782 : vector<16x128xf32>
    %784 = arith.addf %776, %783 : vector<16x128xf32>
    %c2_i32_307 = arith.constant 2 : i32
    %785 = arith.addi %c8_i32, %c2_i32_307 : i32
    %786 = arith.index_cast %785 : i32 to index
    %c2_308 = arith.constant 2 : index
    %c0_309 = arith.constant 0 : index
    %787 = vector.load %arg13[%786, %c2_308, %c0_309] : memref<18x18x128xf32, #tpu.memory_space<vmem>>, vector<1x16x128xf32>
    %788 = vector.shape_cast %787 : vector<1x16x128xf32> to vector<16x128xf32>
    %789 = vector.extract_strided_slice %22 {offsets = [8, 0], sizes = [1, 128], strides = [1, 1]} : vector<9x128xf32> to vector<1x128xf32>
    %790 = vector.broadcast %789 : vector<1x128xf32> to vector<16x128xf32>
    %791 = arith.mulf %788, %790 : vector<16x128xf32>
    %792 = arith.addf %784, %791 : vector<16x128xf32>
    %793 = vector.broadcast %23 : vector<1x128xf32> to vector<16x128xf32>
    %794 = arith.addf %792, %793 : vector<16x128xf32>
    %cst_310 = arith.constant 0.000000e+00 : f32
    %795 = vector.broadcast %cst_310 : f32 to vector<16x128xf32>
    %796 = arith.subf %795, %794 : vector<16x128xf32>
    %797 = math.exp %796 : vector<16x128xf32>
    %cst_311 = arith.constant 1.000000e+00 : f32
    %798 = vector.broadcast %cst_311 : f32 to vector<16x128xf32>
    %799 = arith.addf %798, %797 : vector<16x128xf32>
    %800 = tpu.reciprocal %799 {approx = true} : vector<16x128xf32> -> vector<16x128xf32>
    %801 = arith.mulf %794, %800 : vector<16x128xf32>
    %802 = arith.truncf %801 : vector<16x128xf32> to vector<16x128xbf16>
    %803 = arith.index_cast %c8_i32 : i32 to index
    %c0_312 = arith.constant 0 : index
    %c0_313 = arith.constant 0 : index
    %804 = vector.load %arg14[%803, %c0_312, %c0_313] : memref<16x16x128xbf16, #tpu.memory_space<vmem>>, vector<1x16x128xbf16>
    %805 = vector.shape_cast %804 : vector<1x16x128xbf16> to vector<16x128xbf16>
    %806 = vector.shape_cast %802 : vector<16x128xbf16> to vector<1x16x128xbf16>
    tpu.vector_store %arg14[%803, %c0_312, %c0_313], %806 {strides = array<i32>} : memref<16x16x128xbf16, #tpu.memory_space<vmem>>, vector<1x16x128xbf16>,
    %c9_i32 = arith.constant 9 : i32
    %cst_314 = arith.constant 0.000000e+00 : f32
    %807 = vector.broadcast %cst_314 : f32 to vector<16x128xf32>
    %c0_i32_315 = arith.constant 0 : i32
    %808 = arith.addi %c9_i32, %c0_i32_315 : i32
    %809 = arith.index_cast %808 : i32 to index
    %c0_316 = arith.constant 0 : index
    %c0_317 = arith.constant 0 : index
    %810 = vector.load %arg13[%809, %c0_316, %c0_317] : memref<18x18x128xf32, #tpu.memory_space<vmem>>, vector<1x16x128xf32>
    %811 = vector.shape_cast %810 : vector<1x16x128xf32> to vector<16x128xf32>
    %812 = vector.extract_strided_slice %22 {offsets = [0, 0], sizes = [1, 128], strides = [1, 1]} : vector<9x128xf32> to vector<1x128xf32>
    %813 = vector.broadcast %812 : vector<1x128xf32> to vector<16x128xf32>
    %814 = arith.mulf %811, %813 : vector<16x128xf32>
    %815 = arith.addf %807, %814 : vector<16x128xf32>
    %c0_i32_318 = arith.constant 0 : i32
    %816 = arith.addi %c9_i32, %c0_i32_318 : i32
    %817 = arith.index_cast %816 : i32 to index
    %c1_319 = arith.constant 1 : index
    %c0_320 = arith.constant 0 : index
    %818 = vector.load %arg13[%817, %c1_319, %c0_320] : memref<18x18x128xf32, #tpu.memory_space<vmem>>, vector<1x16x128xf32>
    %819 = vector.shape_cast %818 : vector<1x16x128xf32> to vector<16x128xf32>
    %820 = vector.extract_strided_slice %22 {offsets = [1, 0], sizes = [1, 128], strides = [1, 1]} : vector<9x128xf32> to vector<1x128xf32>
    %821 = vector.broadcast %820 : vector<1x128xf32> to vector<16x128xf32>
    %822 = arith.mulf %819, %821 : vector<16x128xf32>
    %823 = arith.addf %815, %822 : vector<16x128xf32>
    %c0_i32_321 = arith.constant 0 : i32
    %824 = arith.addi %c9_i32, %c0_i32_321 : i32
    %825 = arith.index_cast %824 : i32 to index
    %c2_322 = arith.constant 2 : index
    %c0_323 = arith.constant 0 : index
    %826 = vector.load %arg13[%825, %c2_322, %c0_323] : memref<18x18x128xf32, #tpu.memory_space<vmem>>, vector<1x16x128xf32>
    %827 = vector.shape_cast %826 : vector<1x16x128xf32> to vector<16x128xf32>
    %828 = vector.extract_strided_slice %22 {offsets = [2, 0], sizes = [1, 128], strides = [1, 1]} : vector<9x128xf32> to vector<1x128xf32>
    %829 = vector.broadcast %828 : vector<1x128xf32> to vector<16x128xf32>
    %830 = arith.mulf %827, %829 : vector<16x128xf32>
    %831 = arith.addf %823, %830 : vector<16x128xf32>
    %c1_i32_324 = arith.constant 1 : i32
    %832 = arith.addi %c9_i32, %c1_i32_324 : i32
    %833 = arith.index_cast %832 : i32 to index
    %c0_325 = arith.constant 0 : index
    %c0_326 = arith.constant 0 : index
    %834 = vector.load %arg13[%833, %c0_325, %c0_326] : memref<18x18x128xf32, #tpu.memory_space<vmem>>, vector<1x16x128xf32>
    %835 = vector.shape_cast %834 : vector<1x16x128xf32> to vector<16x128xf32>
    %836 = vector.extract_strided_slice %22 {offsets = [3, 0], sizes = [1, 128], strides = [1, 1]} : vector<9x128xf32> to vector<1x128xf32>
    %837 = vector.broadcast %836 : vector<1x128xf32> to vector<16x128xf32>
    %838 = arith.mulf %835, %837 : vector<16x128xf32>
    %839 = arith.addf %831, %838 : vector<16x128xf32>
    %c1_i32_327 = arith.constant 1 : i32
    %840 = arith.addi %c9_i32, %c1_i32_327 : i32
    %841 = arith.index_cast %840 : i32 to index
    %c1_328 = arith.constant 1 : index
    %c0_329 = arith.constant 0 : index
    %842 = vector.load %arg13[%841, %c1_328, %c0_329] : memref<18x18x128xf32, #tpu.memory_space<vmem>>, vector<1x16x128xf32>
    %843 = vector.shape_cast %842 : vector<1x16x128xf32> to vector<16x128xf32>
    %844 = vector.extract_strided_slice %22 {offsets = [4, 0], sizes = [1, 128], strides = [1, 1]} : vector<9x128xf32> to vector<1x128xf32>
    %845 = vector.broadcast %844 : vector<1x128xf32> to vector<16x128xf32>
    %846 = arith.mulf %843, %845 : vector<16x128xf32>
    %847 = arith.addf %839, %846 : vector<16x128xf32>
    %c1_i32_330 = arith.constant 1 : i32
    %848 = arith.addi %c9_i32, %c1_i32_330 : i32
    %849 = arith.index_cast %848 : i32 to index
    %c2_331 = arith.constant 2 : index
    %c0_332 = arith.constant 0 : index
    %850 = vector.load %arg13[%849, %c2_331, %c0_332] : memref<18x18x128xf32, #tpu.memory_space<vmem>>, vector<1x16x128xf32>
    %851 = vector.shape_cast %850 : vector<1x16x128xf32> to vector<16x128xf32>
    %852 = vector.extract_strided_slice %22 {offsets = [5, 0], sizes = [1, 128], strides = [1, 1]} : vector<9x128xf32> to vector<1x128xf32>
    %853 = vector.broadcast %852 : vector<1x128xf32> to vector<16x128xf32>
    %854 = arith.mulf %851, %853 : vector<16x128xf32>
    %855 = arith.addf %847, %854 : vector<16x128xf32>
    %c2_i32_333 = arith.constant 2 : i32
    %856 = arith.addi %c9_i32, %c2_i32_333 : i32
    %857 = arith.index_cast %856 : i32 to index
    %c0_334 = arith.constant 0 : index
    %c0_335 = arith.constant 0 : index
    %858 = vector.load %arg13[%857, %c0_334, %c0_335] : memref<18x18x128xf32, #tpu.memory_space<vmem>>, vector<1x16x128xf32>
    %859 = vector.shape_cast %858 : vector<1x16x128xf32> to vector<16x128xf32>
    %860 = vector.extract_strided_slice %22 {offsets = [6, 0], sizes = [1, 128], strides = [1, 1]} : vector<9x128xf32> to vector<1x128xf32>
    %861 = vector.broadcast %860 : vector<1x128xf32> to vector<16x128xf32>
    %862 = arith.mulf %859, %861 : vector<16x128xf32>
    %863 = arith.addf %855, %862 : vector<16x128xf32>
    %c2_i32_336 = arith.constant 2 : i32
    %864 = arith.addi %c9_i32, %c2_i32_336 : i32
    %865 = arith.index_cast %864 : i32 to index
    %c1_337 = arith.constant 1 : index
    %c0_338 = arith.constant 0 : index
    %866 = vector.load %arg13[%865, %c1_337, %c0_338] : memref<18x18x128xf32, #tpu.memory_space<vmem>>, vector<1x16x128xf32>
    %867 = vector.shape_cast %866 : vector<1x16x128xf32> to vector<16x128xf32>
    %868 = vector.extract_strided_slice %22 {offsets = [7, 0], sizes = [1, 128], strides = [1, 1]} : vector<9x128xf32> to vector<1x128xf32>
    %869 = vector.broadcast %868 : vector<1x128xf32> to vector<16x128xf32>
    %870 = arith.mulf %867, %869 : vector<16x128xf32>
    %871 = arith.addf %863, %870 : vector<16x128xf32>
    %c2_i32_339 = arith.constant 2 : i32
    %872 = arith.addi %c9_i32, %c2_i32_339 : i32
    %873 = arith.index_cast %872 : i32 to index
    %c2_340 = arith.constant 2 : index
    %c0_341 = arith.constant 0 : index
    %874 = vector.load %arg13[%873, %c2_340, %c0_341] : memref<18x18x128xf32, #tpu.memory_space<vmem>>, vector<1x16x128xf32>
    %875 = vector.shape_cast %874 : vector<1x16x128xf32> to vector<16x128xf32>
    %876 = vector.extract_strided_slice %22 {offsets = [8, 0], sizes = [1, 128], strides = [1, 1]} : vector<9x128xf32> to vector<1x128xf32>
    %877 = vector.broadcast %876 : vector<1x128xf32> to vector<16x128xf32>
    %878 = arith.mulf %875, %877 : vector<16x128xf32>
    %879 = arith.addf %871, %878 : vector<16x128xf32>
    %880 = vector.broadcast %23 : vector<1x128xf32> to vector<16x128xf32>
    %881 = arith.addf %879, %880 : vector<16x128xf32>
    %cst_342 = arith.constant 0.000000e+00 : f32
    %882 = vector.broadcast %cst_342 : f32 to vector<16x128xf32>
    %883 = arith.subf %882, %881 : vector<16x128xf32>
    %884 = math.exp %883 : vector<16x128xf32>
    %cst_343 = arith.constant 1.000000e+00 : f32
    %885 = vector.broadcast %cst_343 : f32 to vector<16x128xf32>
    %886 = arith.addf %885, %884 : vector<16x128xf32>
    %887 = tpu.reciprocal %886 {approx = true} : vector<16x128xf32> -> vector<16x128xf32>
    %888 = arith.mulf %881, %887 : vector<16x128xf32>
    %889 = arith.truncf %888 : vector<16x128xf32> to vector<16x128xbf16>
    %890 = arith.index_cast %c9_i32 : i32 to index
    %c0_344 = arith.constant 0 : index
    %c0_345 = arith.constant 0 : index
    %891 = vector.load %arg14[%890, %c0_344, %c0_345] : memref<16x16x128xbf16, #tpu.memory_space<vmem>>, vector<1x16x128xbf16>
    %892 = vector.shape_cast %891 : vector<1x16x128xbf16> to vector<16x128xbf16>
    %893 = vector.shape_cast %889 : vector<16x128xbf16> to vector<1x16x128xbf16>
    tpu.vector_store %arg14[%890, %c0_344, %c0_345], %893 {strides = array<i32>} : memref<16x16x128xbf16, #tpu.memory_space<vmem>>, vector<1x16x128xbf16>,
    %c10_i32 = arith.constant 10 : i32
    %cst_346 = arith.constant 0.000000e+00 : f32
    %894 = vector.broadcast %cst_346 : f32 to vector<16x128xf32>
    %c0_i32_347 = arith.constant 0 : i32
    %895 = arith.addi %c10_i32, %c0_i32_347 : i32
    %896 = arith.index_cast %895 : i32 to index
    %c0_348 = arith.constant 0 : index
    %c0_349 = arith.constant 0 : index
    %897 = vector.load %arg13[%896, %c0_348, %c0_349] : memref<18x18x128xf32, #tpu.memory_space<vmem>>, vector<1x16x128xf32>
    %898 = vector.shape_cast %897 : vector<1x16x128xf32> to vector<16x128xf32>
    %899 = vector.extract_strided_slice %22 {offsets = [0, 0], sizes = [1, 128], strides = [1, 1]} : vector<9x128xf32> to vector<1x128xf32>
    %900 = vector.broadcast %899 : vector<1x128xf32> to vector<16x128xf32>
    %901 = arith.mulf %898, %900 : vector<16x128xf32>
    %902 = arith.addf %894, %901 : vector<16x128xf32>
    %c0_i32_350 = arith.constant 0 : i32
    %903 = arith.addi %c10_i32, %c0_i32_350 : i32
    %904 = arith.index_cast %903 : i32 to index
    %c1_351 = arith.constant 1 : index
    %c0_352 = arith.constant 0 : index
    %905 = vector.load %arg13[%904, %c1_351, %c0_352] : memref<18x18x128xf32, #tpu.memory_space<vmem>>, vector<1x16x128xf32>
    %906 = vector.shape_cast %905 : vector<1x16x128xf32> to vector<16x128xf32>
    %907 = vector.extract_strided_slice %22 {offsets = [1, 0], sizes = [1, 128], strides = [1, 1]} : vector<9x128xf32> to vector<1x128xf32>
    %908 = vector.broadcast %907 : vector<1x128xf32> to vector<16x128xf32>
    %909 = arith.mulf %906, %908 : vector<16x128xf32>
    %910 = arith.addf %902, %909 : vector<16x128xf32>
    %c0_i32_353 = arith.constant 0 : i32
    %911 = arith.addi %c10_i32, %c0_i32_353 : i32
    %912 = arith.index_cast %911 : i32 to index
    %c2_354 = arith.constant 2 : index
    %c0_355 = arith.constant 0 : index
    %913 = vector.load %arg13[%912, %c2_354, %c0_355] : memref<18x18x128xf32, #tpu.memory_space<vmem>>, vector<1x16x128xf32>
    %914 = vector.shape_cast %913 : vector<1x16x128xf32> to vector<16x128xf32>
    %915 = vector.extract_strided_slice %22 {offsets = [2, 0], sizes = [1, 128], strides = [1, 1]} : vector<9x128xf32> to vector<1x128xf32>
    %916 = vector.broadcast %915 : vector<1x128xf32> to vector<16x128xf32>
    %917 = arith.mulf %914, %916 : vector<16x128xf32>
    %918 = arith.addf %910, %917 : vector<16x128xf32>
    %c1_i32_356 = arith.constant 1 : i32
    %919 = arith.addi %c10_i32, %c1_i32_356 : i32
    %920 = arith.index_cast %919 : i32 to index
    %c0_357 = arith.constant 0 : index
    %c0_358 = arith.constant 0 : index
    %921 = vector.load %arg13[%920, %c0_357, %c0_358] : memref<18x18x128xf32, #tpu.memory_space<vmem>>, vector<1x16x128xf32>
    %922 = vector.shape_cast %921 : vector<1x16x128xf32> to vector<16x128xf32>
    %923 = vector.extract_strided_slice %22 {offsets = [3, 0], sizes = [1, 128], strides = [1, 1]} : vector<9x128xf32> to vector<1x128xf32>
    %924 = vector.broadcast %923 : vector<1x128xf32> to vector<16x128xf32>
    %925 = arith.mulf %922, %924 : vector<16x128xf32>
    %926 = arith.addf %918, %925 : vector<16x128xf32>
    %c1_i32_359 = arith.constant 1 : i32
    %927 = arith.addi %c10_i32, %c1_i32_359 : i32
    %928 = arith.index_cast %927 : i32 to index
    %c1_360 = arith.constant 1 : index
    %c0_361 = arith.constant 0 : index
    %929 = vector.load %arg13[%928, %c1_360, %c0_361] : memref<18x18x128xf32, #tpu.memory_space<vmem>>, vector<1x16x128xf32>
    %930 = vector.shape_cast %929 : vector<1x16x128xf32> to vector<16x128xf32>
    %931 = vector.extract_strided_slice %22 {offsets = [4, 0], sizes = [1, 128], strides = [1, 1]} : vector<9x128xf32> to vector<1x128xf32>
    %932 = vector.broadcast %931 : vector<1x128xf32> to vector<16x128xf32>
    %933 = arith.mulf %930, %932 : vector<16x128xf32>
    %934 = arith.addf %926, %933 : vector<16x128xf32>
    %c1_i32_362 = arith.constant 1 : i32
    %935 = arith.addi %c10_i32, %c1_i32_362 : i32
    %936 = arith.index_cast %935 : i32 to index
    %c2_363 = arith.constant 2 : index
    %c0_364 = arith.constant 0 : index
    %937 = vector.load %arg13[%936, %c2_363, %c0_364] : memref<18x18x128xf32, #tpu.memory_space<vmem>>, vector<1x16x128xf32>
    %938 = vector.shape_cast %937 : vector<1x16x128xf32> to vector<16x128xf32>
    %939 = vector.extract_strided_slice %22 {offsets = [5, 0], sizes = [1, 128], strides = [1, 1]} : vector<9x128xf32> to vector<1x128xf32>
    %940 = vector.broadcast %939 : vector<1x128xf32> to vector<16x128xf32>
    %941 = arith.mulf %938, %940 : vector<16x128xf32>
    %942 = arith.addf %934, %941 : vector<16x128xf32>
    %c2_i32_365 = arith.constant 2 : i32
    %943 = arith.addi %c10_i32, %c2_i32_365 : i32
    %944 = arith.index_cast %943 : i32 to index
    %c0_366 = arith.constant 0 : index
    %c0_367 = arith.constant 0 : index
    %945 = vector.load %arg13[%944, %c0_366, %c0_367] : memref<18x18x128xf32, #tpu.memory_space<vmem>>, vector<1x16x128xf32>
    %946 = vector.shape_cast %945 : vector<1x16x128xf32> to vector<16x128xf32>
    %947 = vector.extract_strided_slice %22 {offsets = [6, 0], sizes = [1, 128], strides = [1, 1]} : vector<9x128xf32> to vector<1x128xf32>
    %948 = vector.broadcast %947 : vector<1x128xf32> to vector<16x128xf32>
    %949 = arith.mulf %946, %948 : vector<16x128xf32>
    %950 = arith.addf %942, %949 : vector<16x128xf32>
    %c2_i32_368 = arith.constant 2 : i32
    %951 = arith.addi %c10_i32, %c2_i32_368 : i32
    %952 = arith.index_cast %951 : i32 to index
    %c1_369 = arith.constant 1 : index
    %c0_370 = arith.constant 0 : index
    %953 = vector.load %arg13[%952, %c1_369, %c0_370] : memref<18x18x128xf32, #tpu.memory_space<vmem>>, vector<1x16x128xf32>
    %954 = vector.shape_cast %953 : vector<1x16x128xf32> to vector<16x128xf32>
    %955 = vector.extract_strided_slice %22 {offsets = [7, 0], sizes = [1, 128], strides = [1, 1]} : vector<9x128xf32> to vector<1x128xf32>
    %956 = vector.broadcast %955 : vector<1x128xf32> to vector<16x128xf32>
    %957 = arith.mulf %954, %956 : vector<16x128xf32>
    %958 = arith.addf %950, %957 : vector<16x128xf32>
    %c2_i32_371 = arith.constant 2 : i32
    %959 = arith.addi %c10_i32, %c2_i32_371 : i32
    %960 = arith.index_cast %959 : i32 to index
    %c2_372 = arith.constant 2 : index
    %c0_373 = arith.constant 0 : index
    %961 = vector.load %arg13[%960, %c2_372, %c0_373] : memref<18x18x128xf32, #tpu.memory_space<vmem>>, vector<1x16x128xf32>
    %962 = vector.shape_cast %961 : vector<1x16x128xf32> to vector<16x128xf32>
    %963 = vector.extract_strided_slice %22 {offsets = [8, 0], sizes = [1, 128], strides = [1, 1]} : vector<9x128xf32> to vector<1x128xf32>
    %964 = vector.broadcast %963 : vector<1x128xf32> to vector<16x128xf32>
    %965 = arith.mulf %962, %964 : vector<16x128xf32>
    %966 = arith.addf %958, %965 : vector<16x128xf32>
    %967 = vector.broadcast %23 : vector<1x128xf32> to vector<16x128xf32>
    %968 = arith.addf %966, %967 : vector<16x128xf32>
    %cst_374 = arith.constant 0.000000e+00 : f32
    %969 = vector.broadcast %cst_374 : f32 to vector<16x128xf32>
    %970 = arith.subf %969, %968 : vector<16x128xf32>
    %971 = math.exp %970 : vector<16x128xf32>
    %cst_375 = arith.constant 1.000000e+00 : f32
    %972 = vector.broadcast %cst_375 : f32 to vector<16x128xf32>
    %973 = arith.addf %972, %971 : vector<16x128xf32>
    %974 = tpu.reciprocal %973 {approx = true} : vector<16x128xf32> -> vector<16x128xf32>
    %975 = arith.mulf %968, %974 : vector<16x128xf32>
    %976 = arith.truncf %975 : vector<16x128xf32> to vector<16x128xbf16>
    %977 = arith.index_cast %c10_i32 : i32 to index
    %c0_376 = arith.constant 0 : index
    %c0_377 = arith.constant 0 : index
    %978 = vector.load %arg14[%977, %c0_376, %c0_377] : memref<16x16x128xbf16, #tpu.memory_space<vmem>>, vector<1x16x128xbf16>
    %979 = vector.shape_cast %978 : vector<1x16x128xbf16> to vector<16x128xbf16>
    %980 = vector.shape_cast %976 : vector<16x128xbf16> to vector<1x16x128xbf16>
    tpu.vector_store %arg14[%977, %c0_376, %c0_377], %980 {strides = array<i32>} : memref<16x16x128xbf16, #tpu.memory_space<vmem>>, vector<1x16x128xbf16>,
    %c11_i32 = arith.constant 11 : i32
    %cst_378 = arith.constant 0.000000e+00 : f32
    %981 = vector.broadcast %cst_378 : f32 to vector<16x128xf32>
    %c0_i32_379 = arith.constant 0 : i32
    %982 = arith.addi %c11_i32, %c0_i32_379 : i32
    %983 = arith.index_cast %982 : i32 to index
    %c0_380 = arith.constant 0 : index
    %c0_381 = arith.constant 0 : index
    %984 = vector.load %arg13[%983, %c0_380, %c0_381] : memref<18x18x128xf32, #tpu.memory_space<vmem>>, vector<1x16x128xf32>
    %985 = vector.shape_cast %984 : vector<1x16x128xf32> to vector<16x128xf32>
    %986 = vector.extract_strided_slice %22 {offsets = [0, 0], sizes = [1, 128], strides = [1, 1]} : vector<9x128xf32> to vector<1x128xf32>
    %987 = vector.broadcast %986 : vector<1x128xf32> to vector<16x128xf32>
    %988 = arith.mulf %985, %987 : vector<16x128xf32>
    %989 = arith.addf %981, %988 : vector<16x128xf32>
    %c0_i32_382 = arith.constant 0 : i32
    %990 = arith.addi %c11_i32, %c0_i32_382 : i32
    %991 = arith.index_cast %990 : i32 to index
    %c1_383 = arith.constant 1 : index
    %c0_384 = arith.constant 0 : index
    %992 = vector.load %arg13[%991, %c1_383, %c0_384] : memref<18x18x128xf32, #tpu.memory_space<vmem>>, vector<1x16x128xf32>
    %993 = vector.shape_cast %992 : vector<1x16x128xf32> to vector<16x128xf32>
    %994 = vector.extract_strided_slice %22 {offsets = [1, 0], sizes = [1, 128], strides = [1, 1]} : vector<9x128xf32> to vector<1x128xf32>
    %995 = vector.broadcast %994 : vector<1x128xf32> to vector<16x128xf32>
    %996 = arith.mulf %993, %995 : vector<16x128xf32>
    %997 = arith.addf %989, %996 : vector<16x128xf32>
    %c0_i32_385 = arith.constant 0 : i32
    %998 = arith.addi %c11_i32, %c0_i32_385 : i32
    %999 = arith.index_cast %998 : i32 to index
    %c2_386 = arith.constant 2 : index
    %c0_387 = arith.constant 0 : index
    %1000 = vector.load %arg13[%999, %c2_386, %c0_387] : memref<18x18x128xf32, #tpu.memory_space<vmem>>, vector<1x16x128xf32>
    %1001 = vector.shape_cast %1000 : vector<1x16x128xf32> to vector<16x128xf32>
    %1002 = vector.extract_strided_slice %22 {offsets = [2, 0], sizes = [1, 128], strides = [1, 1]} : vector<9x128xf32> to vector<1x128xf32>
    %1003 = vector.broadcast %1002 : vector<1x128xf32> to vector<16x128xf32>
    %1004 = arith.mulf %1001, %1003 : vector<16x128xf32>
    %1005 = arith.addf %997, %1004 : vector<16x128xf32>
    %c1_i32_388 = arith.constant 1 : i32
    %1006 = arith.addi %c11_i32, %c1_i32_388 : i32
    %1007 = arith.index_cast %1006 : i32 to index
    %c0_389 = arith.constant 0 : index
    %c0_390 = arith.constant 0 : index
    %1008 = vector.load %arg13[%1007, %c0_389, %c0_390] : memref<18x18x128xf32, #tpu.memory_space<vmem>>, vector<1x16x128xf32>
    %1009 = vector.shape_cast %1008 : vector<1x16x128xf32> to vector<16x128xf32>
    %1010 = vector.extract_strided_slice %22 {offsets = [3, 0], sizes = [1, 128], strides = [1, 1]} : vector<9x128xf32> to vector<1x128xf32>
    %1011 = vector.broadcast %1010 : vector<1x128xf32> to vector<16x128xf32>
    %1012 = arith.mulf %1009, %1011 : vector<16x128xf32>
    %1013 = arith.addf %1005, %1012 : vector<16x128xf32>
    %c1_i32_391 = arith.constant 1 : i32
    %1014 = arith.addi %c11_i32, %c1_i32_391 : i32
    %1015 = arith.index_cast %1014 : i32 to index
    %c1_392 = arith.constant 1 : index
    %c0_393 = arith.constant 0 : index
    %1016 = vector.load %arg13[%1015, %c1_392, %c0_393] : memref<18x18x128xf32, #tpu.memory_space<vmem>>, vector<1x16x128xf32>
    %1017 = vector.shape_cast %1016 : vector<1x16x128xf32> to vector<16x128xf32>
    %1018 = vector.extract_strided_slice %22 {offsets = [4, 0], sizes = [1, 128], strides = [1, 1]} : vector<9x128xf32> to vector<1x128xf32>
    %1019 = vector.broadcast %1018 : vector<1x128xf32> to vector<16x128xf32>
    %1020 = arith.mulf %1017, %1019 : vector<16x128xf32>
    %1021 = arith.addf %1013, %1020 : vector<16x128xf32>
    %c1_i32_394 = arith.constant 1 : i32
    %1022 = arith.addi %c11_i32, %c1_i32_394 : i32
    %1023 = arith.index_cast %1022 : i32 to index
    %c2_395 = arith.constant 2 : index
    %c0_396 = arith.constant 0 : index
    %1024 = vector.load %arg13[%1023, %c2_395, %c0_396] : memref<18x18x128xf32, #tpu.memory_space<vmem>>, vector<1x16x128xf32>
    %1025 = vector.shape_cast %1024 : vector<1x16x128xf32> to vector<16x128xf32>
    %1026 = vector.extract_strided_slice %22 {offsets = [5, 0], sizes = [1, 128], strides = [1, 1]} : vector<9x128xf32> to vector<1x128xf32>
    %1027 = vector.broadcast %1026 : vector<1x128xf32> to vector<16x128xf32>
    %1028 = arith.mulf %1025, %1027 : vector<16x128xf32>
    %1029 = arith.addf %1021, %1028 : vector<16x128xf32>
    %c2_i32_397 = arith.constant 2 : i32
    %1030 = arith.addi %c11_i32, %c2_i32_397 : i32
    %1031 = arith.index_cast %1030 : i32 to index
    %c0_398 = arith.constant 0 : index
    %c0_399 = arith.constant 0 : index
    %1032 = vector.load %arg13[%1031, %c0_398, %c0_399] : memref<18x18x128xf32, #tpu.memory_space<vmem>>, vector<1x16x128xf32>
    %1033 = vector.shape_cast %1032 : vector<1x16x128xf32> to vector<16x128xf32>
    %1034 = vector.extract_strided_slice %22 {offsets = [6, 0], sizes = [1, 128], strides = [1, 1]} : vector<9x128xf32> to vector<1x128xf32>
    %1035 = vector.broadcast %1034 : vector<1x128xf32> to vector<16x128xf32>
    %1036 = arith.mulf %1033, %1035 : vector<16x128xf32>
    %1037 = arith.addf %1029, %1036 : vector<16x128xf32>
    %c2_i32_400 = arith.constant 2 : i32
    %1038 = arith.addi %c11_i32, %c2_i32_400 : i32
    %1039 = arith.index_cast %1038 : i32 to index
    %c1_401 = arith.constant 1 : index
    %c0_402 = arith.constant 0 : index
    %1040 = vector.load %arg13[%1039, %c1_401, %c0_402] : memref<18x18x128xf32, #tpu.memory_space<vmem>>, vector<1x16x128xf32>
    %1041 = vector.shape_cast %1040 : vector<1x16x128xf32> to vector<16x128xf32>
    %1042 = vector.extract_strided_slice %22 {offsets = [7, 0], sizes = [1, 128], strides = [1, 1]} : vector<9x128xf32> to vector<1x128xf32>
    %1043 = vector.broadcast %1042 : vector<1x128xf32> to vector<16x128xf32>
    %1044 = arith.mulf %1041, %1043 : vector<16x128xf32>
    %1045 = arith.addf %1037, %1044 : vector<16x128xf32>
    %c2_i32_403 = arith.constant 2 : i32
    %1046 = arith.addi %c11_i32, %c2_i32_403 : i32
    %1047 = arith.index_cast %1046 : i32 to index
    %c2_404 = arith.constant 2 : index
    %c0_405 = arith.constant 0 : index
    %1048 = vector.load %arg13[%1047, %c2_404, %c0_405] : memref<18x18x128xf32, #tpu.memory_space<vmem>>, vector<1x16x128xf32>
    %1049 = vector.shape_cast %1048 : vector<1x16x128xf32> to vector<16x128xf32>
    %1050 = vector.extract_strided_slice %22 {offsets = [8, 0], sizes = [1, 128], strides = [1, 1]} : vector<9x128xf32> to vector<1x128xf32>
    %1051 = vector.broadcast %1050 : vector<1x128xf32> to vector<16x128xf32>
    %1052 = arith.mulf %1049, %1051 : vector<16x128xf32>
    %1053 = arith.addf %1045, %1052 : vector<16x128xf32>
    %1054 = vector.broadcast %23 : vector<1x128xf32> to vector<16x128xf32>
    %1055 = arith.addf %1053, %1054 : vector<16x128xf32>
    %cst_406 = arith.constant 0.000000e+00 : f32
    %1056 = vector.broadcast %cst_406 : f32 to vector<16x128xf32>
    %1057 = arith.subf %1056, %1055 : vector<16x128xf32>
    %1058 = math.exp %1057 : vector<16x128xf32>
    %cst_407 = arith.constant 1.000000e+00 : f32
    %1059 = vector.broadcast %cst_407 : f32 to vector<16x128xf32>
    %1060 = arith.addf %1059, %1058 : vector<16x128xf32>
    %1061 = tpu.reciprocal %1060 {approx = true} : vector<16x128xf32> -> vector<16x128xf32>
    %1062 = arith.mulf %1055, %1061 : vector<16x128xf32>
    %1063 = arith.truncf %1062 : vector<16x128xf32> to vector<16x128xbf16>
    %1064 = arith.index_cast %c11_i32 : i32 to index
    %c0_408 = arith.constant 0 : index
    %c0_409 = arith.constant 0 : index
    %1065 = vector.load %arg14[%1064, %c0_408, %c0_409] : memref<16x16x128xbf16, #tpu.memory_space<vmem>>, vector<1x16x128xbf16>
    %1066 = vector.shape_cast %1065 : vector<1x16x128xbf16> to vector<16x128xbf16>
    %1067 = vector.shape_cast %1063 : vector<16x128xbf16> to vector<1x16x128xbf16>
    tpu.vector_store %arg14[%1064, %c0_408, %c0_409], %1067 {strides = array<i32>} : memref<16x16x128xbf16, #tpu.memory_space<vmem>>, vector<1x16x128xbf16>,
    %c12_i32 = arith.constant 12 : i32
    %cst_410 = arith.constant 0.000000e+00 : f32
    %1068 = vector.broadcast %cst_410 : f32 to vector<16x128xf32>
    %c0_i32_411 = arith.constant 0 : i32
    %1069 = arith.addi %c12_i32, %c0_i32_411 : i32
    %1070 = arith.index_cast %1069 : i32 to index
    %c0_412 = arith.constant 0 : index
    %c0_413 = arith.constant 0 : index
    %1071 = vector.load %arg13[%1070, %c0_412, %c0_413] : memref<18x18x128xf32, #tpu.memory_space<vmem>>, vector<1x16x128xf32>
    %1072 = vector.shape_cast %1071 : vector<1x16x128xf32> to vector<16x128xf32>
    %1073 = vector.extract_strided_slice %22 {offsets = [0, 0], sizes = [1, 128], strides = [1, 1]} : vector<9x128xf32> to vector<1x128xf32>
    %1074 = vector.broadcast %1073 : vector<1x128xf32> to vector<16x128xf32>
    %1075 = arith.mulf %1072, %1074 : vector<16x128xf32>
    %1076 = arith.addf %1068, %1075 : vector<16x128xf32>
    %c0_i32_414 = arith.constant 0 : i32
    %1077 = arith.addi %c12_i32, %c0_i32_414 : i32
    %1078 = arith.index_cast %1077 : i32 to index
    %c1_415 = arith.constant 1 : index
    %c0_416 = arith.constant 0 : index
    %1079 = vector.load %arg13[%1078, %c1_415, %c0_416] : memref<18x18x128xf32, #tpu.memory_space<vmem>>, vector<1x16x128xf32>
    %1080 = vector.shape_cast %1079 : vector<1x16x128xf32> to vector<16x128xf32>
    %1081 = vector.extract_strided_slice %22 {offsets = [1, 0], sizes = [1, 128], strides = [1, 1]} : vector<9x128xf32> to vector<1x128xf32>
    %1082 = vector.broadcast %1081 : vector<1x128xf32> to vector<16x128xf32>
    %1083 = arith.mulf %1080, %1082 : vector<16x128xf32>
    %1084 = arith.addf %1076, %1083 : vector<16x128xf32>
    %c0_i32_417 = arith.constant 0 : i32
    %1085 = arith.addi %c12_i32, %c0_i32_417 : i32
    %1086 = arith.index_cast %1085 : i32 to index
    %c2_418 = arith.constant 2 : index
    %c0_419 = arith.constant 0 : index
    %1087 = vector.load %arg13[%1086, %c2_418, %c0_419] : memref<18x18x128xf32, #tpu.memory_space<vmem>>, vector<1x16x128xf32>
    %1088 = vector.shape_cast %1087 : vector<1x16x128xf32> to vector<16x128xf32>
    %1089 = vector.extract_strided_slice %22 {offsets = [2, 0], sizes = [1, 128], strides = [1, 1]} : vector<9x128xf32> to vector<1x128xf32>
    %1090 = vector.broadcast %1089 : vector<1x128xf32> to vector<16x128xf32>
    %1091 = arith.mulf %1088, %1090 : vector<16x128xf32>
    %1092 = arith.addf %1084, %1091 : vector<16x128xf32>
    %c1_i32_420 = arith.constant 1 : i32
    %1093 = arith.addi %c12_i32, %c1_i32_420 : i32
    %1094 = arith.index_cast %1093 : i32 to index
    %c0_421 = arith.constant 0 : index
    %c0_422 = arith.constant 0 : index
    %1095 = vector.load %arg13[%1094, %c0_421, %c0_422] : memref<18x18x128xf32, #tpu.memory_space<vmem>>, vector<1x16x128xf32>
    %1096 = vector.shape_cast %1095 : vector<1x16x128xf32> to vector<16x128xf32>
    %1097 = vector.extract_strided_slice %22 {offsets = [3, 0], sizes = [1, 128], strides = [1, 1]} : vector<9x128xf32> to vector<1x128xf32>
    %1098 = vector.broadcast %1097 : vector<1x128xf32> to vector<16x128xf32>
    %1099 = arith.mulf %1096, %1098 : vector<16x128xf32>
    %1100 = arith.addf %1092, %1099 : vector<16x128xf32>
    %c1_i32_423 = arith.constant 1 : i32
    %1101 = arith.addi %c12_i32, %c1_i32_423 : i32
    %1102 = arith.index_cast %1101 : i32 to index
    %c1_424 = arith.constant 1 : index
    %c0_425 = arith.constant 0 : index
    %1103 = vector.load %arg13[%1102, %c1_424, %c0_425] : memref<18x18x128xf32, #tpu.memory_space<vmem>>, vector<1x16x128xf32>
    %1104 = vector.shape_cast %1103 : vector<1x16x128xf32> to vector<16x128xf32>
    %1105 = vector.extract_strided_slice %22 {offsets = [4, 0], sizes = [1, 128], strides = [1, 1]} : vector<9x128xf32> to vector<1x128xf32>
    %1106 = vector.broadcast %1105 : vector<1x128xf32> to vector<16x128xf32>
    %1107 = arith.mulf %1104, %1106 : vector<16x128xf32>
    %1108 = arith.addf %1100, %1107 : vector<16x128xf32>
    %c1_i32_426 = arith.constant 1 : i32
    %1109 = arith.addi %c12_i32, %c1_i32_426 : i32
    %1110 = arith.index_cast %1109 : i32 to index
    %c2_427 = arith.constant 2 : index
    %c0_428 = arith.constant 0 : index
    %1111 = vector.load %arg13[%1110, %c2_427, %c0_428] : memref<18x18x128xf32, #tpu.memory_space<vmem>>, vector<1x16x128xf32>
    %1112 = vector.shape_cast %1111 : vector<1x16x128xf32> to vector<16x128xf32>
    %1113 = vector.extract_strided_slice %22 {offsets = [5, 0], sizes = [1, 128], strides = [1, 1]} : vector<9x128xf32> to vector<1x128xf32>
    %1114 = vector.broadcast %1113 : vector<1x128xf32> to vector<16x128xf32>
    %1115 = arith.mulf %1112, %1114 : vector<16x128xf32>
    %1116 = arith.addf %1108, %1115 : vector<16x128xf32>
    %c2_i32_429 = arith.constant 2 : i32
    %1117 = arith.addi %c12_i32, %c2_i32_429 : i32
    %1118 = arith.index_cast %1117 : i32 to index
    %c0_430 = arith.constant 0 : index
    %c0_431 = arith.constant 0 : index
    %1119 = vector.load %arg13[%1118, %c0_430, %c0_431] : memref<18x18x128xf32, #tpu.memory_space<vmem>>, vector<1x16x128xf32>
    %1120 = vector.shape_cast %1119 : vector<1x16x128xf32> to vector<16x128xf32>
    %1121 = vector.extract_strided_slice %22 {offsets = [6, 0], sizes = [1, 128], strides = [1, 1]} : vector<9x128xf32> to vector<1x128xf32>
    %1122 = vector.broadcast %1121 : vector<1x128xf32> to vector<16x128xf32>
    %1123 = arith.mulf %1120, %1122 : vector<16x128xf32>
    %1124 = arith.addf %1116, %1123 : vector<16x128xf32>
    %c2_i32_432 = arith.constant 2 : i32
    %1125 = arith.addi %c12_i32, %c2_i32_432 : i32
    %1126 = arith.index_cast %1125 : i32 to index
    %c1_433 = arith.constant 1 : index
    %c0_434 = arith.constant 0 : index
    %1127 = vector.load %arg13[%1126, %c1_433, %c0_434] : memref<18x18x128xf32, #tpu.memory_space<vmem>>, vector<1x16x128xf32>
    %1128 = vector.shape_cast %1127 : vector<1x16x128xf32> to vector<16x128xf32>
    %1129 = vector.extract_strided_slice %22 {offsets = [7, 0], sizes = [1, 128], strides = [1, 1]} : vector<9x128xf32> to vector<1x128xf32>
    %1130 = vector.broadcast %1129 : vector<1x128xf32> to vector<16x128xf32>
    %1131 = arith.mulf %1128, %1130 : vector<16x128xf32>
    %1132 = arith.addf %1124, %1131 : vector<16x128xf32>
    %c2_i32_435 = arith.constant 2 : i32
    %1133 = arith.addi %c12_i32, %c2_i32_435 : i32
    %1134 = arith.index_cast %1133 : i32 to index
    %c2_436 = arith.constant 2 : index
    %c0_437 = arith.constant 0 : index
    %1135 = vector.load %arg13[%1134, %c2_436, %c0_437] : memref<18x18x128xf32, #tpu.memory_space<vmem>>, vector<1x16x128xf32>
    %1136 = vector.shape_cast %1135 : vector<1x16x128xf32> to vector<16x128xf32>
    %1137 = vector.extract_strided_slice %22 {offsets = [8, 0], sizes = [1, 128], strides = [1, 1]} : vector<9x128xf32> to vector<1x128xf32>
    %1138 = vector.broadcast %1137 : vector<1x128xf32> to vector<16x128xf32>
    %1139 = arith.mulf %1136, %1138 : vector<16x128xf32>
    %1140 = arith.addf %1132, %1139 : vector<16x128xf32>
    %1141 = vector.broadcast %23 : vector<1x128xf32> to vector<16x128xf32>
    %1142 = arith.addf %1140, %1141 : vector<16x128xf32>
    %cst_438 = arith.constant 0.000000e+00 : f32
    %1143 = vector.broadcast %cst_438 : f32 to vector<16x128xf32>
    %1144 = arith.subf %1143, %1142 : vector<16x128xf32>
    %1145 = math.exp %1144 : vector<16x128xf32>
    %cst_439 = arith.constant 1.000000e+00 : f32
    %1146 = vector.broadcast %cst_439 : f32 to vector<16x128xf32>
    %1147 = arith.addf %1146, %1145 : vector<16x128xf32>
    %1148 = tpu.reciprocal %1147 {approx = true} : vector<16x128xf32> -> vector<16x128xf32>
    %1149 = arith.mulf %1142, %1148 : vector<16x128xf32>
    %1150 = arith.truncf %1149 : vector<16x128xf32> to vector<16x128xbf16>
    %1151 = arith.index_cast %c12_i32 : i32 to index
    %c0_440 = arith.constant 0 : index
    %c0_441 = arith.constant 0 : index
    %1152 = vector.load %arg14[%1151, %c0_440, %c0_441] : memref<16x16x128xbf16, #tpu.memory_space<vmem>>, vector<1x16x128xbf16>
    %1153 = vector.shape_cast %1152 : vector<1x16x128xbf16> to vector<16x128xbf16>
    %1154 = vector.shape_cast %1150 : vector<16x128xbf16> to vector<1x16x128xbf16>
    tpu.vector_store %arg14[%1151, %c0_440, %c0_441], %1154 {strides = array<i32>} : memref<16x16x128xbf16, #tpu.memory_space<vmem>>, vector<1x16x128xbf16>,
    %c13_i32 = arith.constant 13 : i32
    %cst_442 = arith.constant 0.000000e+00 : f32
    %1155 = vector.broadcast %cst_442 : f32 to vector<16x128xf32>
    %c0_i32_443 = arith.constant 0 : i32
    %1156 = arith.addi %c13_i32, %c0_i32_443 : i32
    %1157 = arith.index_cast %1156 : i32 to index
    %c0_444 = arith.constant 0 : index
    %c0_445 = arith.constant 0 : index
    %1158 = vector.load %arg13[%1157, %c0_444, %c0_445] : memref<18x18x128xf32, #tpu.memory_space<vmem>>, vector<1x16x128xf32>
    %1159 = vector.shape_cast %1158 : vector<1x16x128xf32> to vector<16x128xf32>
    %1160 = vector.extract_strided_slice %22 {offsets = [0, 0], sizes = [1, 128], strides = [1, 1]} : vector<9x128xf32> to vector<1x128xf32>
    %1161 = vector.broadcast %1160 : vector<1x128xf32> to vector<16x128xf32>
    %1162 = arith.mulf %1159, %1161 : vector<16x128xf32>
    %1163 = arith.addf %1155, %1162 : vector<16x128xf32>
    %c0_i32_446 = arith.constant 0 : i32
    %1164 = arith.addi %c13_i32, %c0_i32_446 : i32
    %1165 = arith.index_cast %1164 : i32 to index
    %c1_447 = arith.constant 1 : index
    %c0_448 = arith.constant 0 : index
    %1166 = vector.load %arg13[%1165, %c1_447, %c0_448] : memref<18x18x128xf32, #tpu.memory_space<vmem>>, vector<1x16x128xf32>
    %1167 = vector.shape_cast %1166 : vector<1x16x128xf32> to vector<16x128xf32>
    %1168 = vector.extract_strided_slice %22 {offsets = [1, 0], sizes = [1, 128], strides = [1, 1]} : vector<9x128xf32> to vector<1x128xf32>
    %1169 = vector.broadcast %1168 : vector<1x128xf32> to vector<16x128xf32>
    %1170 = arith.mulf %1167, %1169 : vector<16x128xf32>
    %1171 = arith.addf %1163, %1170 : vector<16x128xf32>
    %c0_i32_449 = arith.constant 0 : i32
    %1172 = arith.addi %c13_i32, %c0_i32_449 : i32
    %1173 = arith.index_cast %1172 : i32 to index
    %c2_450 = arith.constant 2 : index
    %c0_451 = arith.constant 0 : index
    %1174 = vector.load %arg13[%1173, %c2_450, %c0_451] : memref<18x18x128xf32, #tpu.memory_space<vmem>>, vector<1x16x128xf32>
    %1175 = vector.shape_cast %1174 : vector<1x16x128xf32> to vector<16x128xf32>
    %1176 = vector.extract_strided_slice %22 {offsets = [2, 0], sizes = [1, 128], strides = [1, 1]} : vector<9x128xf32> to vector<1x128xf32>
    %1177 = vector.broadcast %1176 : vector<1x128xf32> to vector<16x128xf32>
    %1178 = arith.mulf %1175, %1177 : vector<16x128xf32>
    %1179 = arith.addf %1171, %1178 : vector<16x128xf32>
    %c1_i32_452 = arith.constant 1 : i32
    %1180 = arith.addi %c13_i32, %c1_i32_452 : i32
    %1181 = arith.index_cast %1180 : i32 to index
    %c0_453 = arith.constant 0 : index
    %c0_454 = arith.constant 0 : index
    %1182 = vector.load %arg13[%1181, %c0_453, %c0_454] : memref<18x18x128xf32, #tpu.memory_space<vmem>>, vector<1x16x128xf32>
    %1183 = vector.shape_cast %1182 : vector<1x16x128xf32> to vector<16x128xf32>
    %1184 = vector.extract_strided_slice %22 {offsets = [3, 0], sizes = [1, 128], strides = [1, 1]} : vector<9x128xf32> to vector<1x128xf32>
    %1185 = vector.broadcast %1184 : vector<1x128xf32> to vector<16x128xf32>
    %1186 = arith.mulf %1183, %1185 : vector<16x128xf32>
    %1187 = arith.addf %1179, %1186 : vector<16x128xf32>
    %c1_i32_455 = arith.constant 1 : i32
    %1188 = arith.addi %c13_i32, %c1_i32_455 : i32
    %1189 = arith.index_cast %1188 : i32 to index
    %c1_456 = arith.constant 1 : index
    %c0_457 = arith.constant 0 : index
    %1190 = vector.load %arg13[%1189, %c1_456, %c0_457] : memref<18x18x128xf32, #tpu.memory_space<vmem>>, vector<1x16x128xf32>
    %1191 = vector.shape_cast %1190 : vector<1x16x128xf32> to vector<16x128xf32>
    %1192 = vector.extract_strided_slice %22 {offsets = [4, 0], sizes = [1, 128], strides = [1, 1]} : vector<9x128xf32> to vector<1x128xf32>
    %1193 = vector.broadcast %1192 : vector<1x128xf32> to vector<16x128xf32>
    %1194 = arith.mulf %1191, %1193 : vector<16x128xf32>
    %1195 = arith.addf %1187, %1194 : vector<16x128xf32>
    %c1_i32_458 = arith.constant 1 : i32
    %1196 = arith.addi %c13_i32, %c1_i32_458 : i32
    %1197 = arith.index_cast %1196 : i32 to index
    %c2_459 = arith.constant 2 : index
    %c0_460 = arith.constant 0 : index
    %1198 = vector.load %arg13[%1197, %c2_459, %c0_460] : memref<18x18x128xf32, #tpu.memory_space<vmem>>, vector<1x16x128xf32>
    %1199 = vector.shape_cast %1198 : vector<1x16x128xf32> to vector<16x128xf32>
    %1200 = vector.extract_strided_slice %22 {offsets = [5, 0], sizes = [1, 128], strides = [1, 1]} : vector<9x128xf32> to vector<1x128xf32>
    %1201 = vector.broadcast %1200 : vector<1x128xf32> to vector<16x128xf32>
    %1202 = arith.mulf %1199, %1201 : vector<16x128xf32>
    %1203 = arith.addf %1195, %1202 : vector<16x128xf32>
    %c2_i32_461 = arith.constant 2 : i32
    %1204 = arith.addi %c13_i32, %c2_i32_461 : i32
    %1205 = arith.index_cast %1204 : i32 to index
    %c0_462 = arith.constant 0 : index
    %c0_463 = arith.constant 0 : index
    %1206 = vector.load %arg13[%1205, %c0_462, %c0_463] : memref<18x18x128xf32, #tpu.memory_space<vmem>>, vector<1x16x128xf32>
    %1207 = vector.shape_cast %1206 : vector<1x16x128xf32> to vector<16x128xf32>
    %1208 = vector.extract_strided_slice %22 {offsets = [6, 0], sizes = [1, 128], strides = [1, 1]} : vector<9x128xf32> to vector<1x128xf32>
    %1209 = vector.broadcast %1208 : vector<1x128xf32> to vector<16x128xf32>
    %1210 = arith.mulf %1207, %1209 : vector<16x128xf32>
    %1211 = arith.addf %1203, %1210 : vector<16x128xf32>
    %c2_i32_464 = arith.constant 2 : i32
    %1212 = arith.addi %c13_i32, %c2_i32_464 : i32
    %1213 = arith.index_cast %1212 : i32 to index
    %c1_465 = arith.constant 1 : index
    %c0_466 = arith.constant 0 : index
    %1214 = vector.load %arg13[%1213, %c1_465, %c0_466] : memref<18x18x128xf32, #tpu.memory_space<vmem>>, vector<1x16x128xf32>
    %1215 = vector.shape_cast %1214 : vector<1x16x128xf32> to vector<16x128xf32>
    %1216 = vector.extract_strided_slice %22 {offsets = [7, 0], sizes = [1, 128], strides = [1, 1]} : vector<9x128xf32> to vector<1x128xf32>
    %1217 = vector.broadcast %1216 : vector<1x128xf32> to vector<16x128xf32>
    %1218 = arith.mulf %1215, %1217 : vector<16x128xf32>
    %1219 = arith.addf %1211, %1218 : vector<16x128xf32>
    %c2_i32_467 = arith.constant 2 : i32
    %1220 = arith.addi %c13_i32, %c2_i32_467 : i32
    %1221 = arith.index_cast %1220 : i32 to index
    %c2_468 = arith.constant 2 : index
    %c0_469 = arith.constant 0 : index
    %1222 = vector.load %arg13[%1221, %c2_468, %c0_469] : memref<18x18x128xf32, #tpu.memory_space<vmem>>, vector<1x16x128xf32>
    %1223 = vector.shape_cast %1222 : vector<1x16x128xf32> to vector<16x128xf32>
    %1224 = vector.extract_strided_slice %22 {offsets = [8, 0], sizes = [1, 128], strides = [1, 1]} : vector<9x128xf32> to vector<1x128xf32>
    %1225 = vector.broadcast %1224 : vector<1x128xf32> to vector<16x128xf32>
    %1226 = arith.mulf %1223, %1225 : vector<16x128xf32>
    %1227 = arith.addf %1219, %1226 : vector<16x128xf32>
    %1228 = vector.broadcast %23 : vector<1x128xf32> to vector<16x128xf32>
    %1229 = arith.addf %1227, %1228 : vector<16x128xf32>
    %cst_470 = arith.constant 0.000000e+00 : f32
    %1230 = vector.broadcast %cst_470 : f32 to vector<16x128xf32>
    %1231 = arith.subf %1230, %1229 : vector<16x128xf32>
    %1232 = math.exp %1231 : vector<16x128xf32>
    %cst_471 = arith.constant 1.000000e+00 : f32
    %1233 = vector.broadcast %cst_471 : f32 to vector<16x128xf32>
    %1234 = arith.addf %1233, %1232 : vector<16x128xf32>
    %1235 = tpu.reciprocal %1234 {approx = true} : vector<16x128xf32> -> vector<16x128xf32>
    %1236 = arith.mulf %1229, %1235 : vector<16x128xf32>
    %1237 = arith.truncf %1236 : vector<16x128xf32> to vector<16x128xbf16>
    %1238 = arith.index_cast %c13_i32 : i32 to index
    %c0_472 = arith.constant 0 : index
    %c0_473 = arith.constant 0 : index
    %1239 = vector.load %arg14[%1238, %c0_472, %c0_473] : memref<16x16x128xbf16, #tpu.memory_space<vmem>>, vector<1x16x128xbf16>
    %1240 = vector.shape_cast %1239 : vector<1x16x128xbf16> to vector<16x128xbf16>
    %1241 = vector.shape_cast %1237 : vector<16x128xbf16> to vector<1x16x128xbf16>
    tpu.vector_store %arg14[%1238, %c0_472, %c0_473], %1241 {strides = array<i32>} : memref<16x16x128xbf16, #tpu.memory_space<vmem>>, vector<1x16x128xbf16>,
    %c14_i32 = arith.constant 14 : i32
    %cst_474 = arith.constant 0.000000e+00 : f32
    %1242 = vector.broadcast %cst_474 : f32 to vector<16x128xf32>
    %c0_i32_475 = arith.constant 0 : i32
    %1243 = arith.addi %c14_i32, %c0_i32_475 : i32
    %1244 = arith.index_cast %1243 : i32 to index
    %c0_476 = arith.constant 0 : index
    %c0_477 = arith.constant 0 : index
    %1245 = vector.load %arg13[%1244, %c0_476, %c0_477] : memref<18x18x128xf32, #tpu.memory_space<vmem>>, vector<1x16x128xf32>
    %1246 = vector.shape_cast %1245 : vector<1x16x128xf32> to vector<16x128xf32>
    %1247 = vector.extract_strided_slice %22 {offsets = [0, 0], sizes = [1, 128], strides = [1, 1]} : vector<9x128xf32> to vector<1x128xf32>
    %1248 = vector.broadcast %1247 : vector<1x128xf32> to vector<16x128xf32>
    %1249 = arith.mulf %1246, %1248 : vector<16x128xf32>
    %1250 = arith.addf %1242, %1249 : vector<16x128xf32>
    %c0_i32_478 = arith.constant 0 : i32
    %1251 = arith.addi %c14_i32, %c0_i32_478 : i32
    %1252 = arith.index_cast %1251 : i32 to index
    %c1_479 = arith.constant 1 : index
    %c0_480 = arith.constant 0 : index
    %1253 = vector.load %arg13[%1252, %c1_479, %c0_480] : memref<18x18x128xf32, #tpu.memory_space<vmem>>, vector<1x16x128xf32>
    %1254 = vector.shape_cast %1253 : vector<1x16x128xf32> to vector<16x128xf32>
    %1255 = vector.extract_strided_slice %22 {offsets = [1, 0], sizes = [1, 128], strides = [1, 1]} : vector<9x128xf32> to vector<1x128xf32>
    %1256 = vector.broadcast %1255 : vector<1x128xf32> to vector<16x128xf32>
    %1257 = arith.mulf %1254, %1256 : vector<16x128xf32>
    %1258 = arith.addf %1250, %1257 : vector<16x128xf32>
    %c0_i32_481 = arith.constant 0 : i32
    %1259 = arith.addi %c14_i32, %c0_i32_481 : i32
    %1260 = arith.index_cast %1259 : i32 to index
    %c2_482 = arith.constant 2 : index
    %c0_483 = arith.constant 0 : index
    %1261 = vector.load %arg13[%1260, %c2_482, %c0_483] : memref<18x18x128xf32, #tpu.memory_space<vmem>>, vector<1x16x128xf32>
    %1262 = vector.shape_cast %1261 : vector<1x16x128xf32> to vector<16x128xf32>
    %1263 = vector.extract_strided_slice %22 {offsets = [2, 0], sizes = [1, 128], strides = [1, 1]} : vector<9x128xf32> to vector<1x128xf32>
    %1264 = vector.broadcast %1263 : vector<1x128xf32> to vector<16x128xf32>
    %1265 = arith.mulf %1262, %1264 : vector<16x128xf32>
    %1266 = arith.addf %1258, %1265 : vector<16x128xf32>
    %c1_i32_484 = arith.constant 1 : i32
    %1267 = arith.addi %c14_i32, %c1_i32_484 : i32
    %1268 = arith.index_cast %1267 : i32 to index
    %c0_485 = arith.constant 0 : index
    %c0_486 = arith.constant 0 : index
    %1269 = vector.load %arg13[%1268, %c0_485, %c0_486] : memref<18x18x128xf32, #tpu.memory_space<vmem>>, vector<1x16x128xf32>
    %1270 = vector.shape_cast %1269 : vector<1x16x128xf32> to vector<16x128xf32>
    %1271 = vector.extract_strided_slice %22 {offsets = [3, 0], sizes = [1, 128], strides = [1, 1]} : vector<9x128xf32> to vector<1x128xf32>
    %1272 = vector.broadcast %1271 : vector<1x128xf32> to vector<16x128xf32>
    %1273 = arith.mulf %1270, %1272 : vector<16x128xf32>
    %1274 = arith.addf %1266, %1273 : vector<16x128xf32>
    %c1_i32_487 = arith.constant 1 : i32
    %1275 = arith.addi %c14_i32, %c1_i32_487 : i32
    %1276 = arith.index_cast %1275 : i32 to index
    %c1_488 = arith.constant 1 : index
    %c0_489 = arith.constant 0 : index
    %1277 = vector.load %arg13[%1276, %c1_488, %c0_489] : memref<18x18x128xf32, #tpu.memory_space<vmem>>, vector<1x16x128xf32>
    %1278 = vector.shape_cast %1277 : vector<1x16x128xf32> to vector<16x128xf32>
    %1279 = vector.extract_strided_slice %22 {offsets = [4, 0], sizes = [1, 128], strides = [1, 1]} : vector<9x128xf32> to vector<1x128xf32>
    %1280 = vector.broadcast %1279 : vector<1x128xf32> to vector<16x128xf32>
    %1281 = arith.mulf %1278, %1280 : vector<16x128xf32>
    %1282 = arith.addf %1274, %1281 : vector<16x128xf32>
    %c1_i32_490 = arith.constant 1 : i32
    %1283 = arith.addi %c14_i32, %c1_i32_490 : i32
    %1284 = arith.index_cast %1283 : i32 to index
    %c2_491 = arith.constant 2 : index
    %c0_492 = arith.constant 0 : index
    %1285 = vector.load %arg13[%1284, %c2_491, %c0_492] : memref<18x18x128xf32, #tpu.memory_space<vmem>>, vector<1x16x128xf32>
    %1286 = vector.shape_cast %1285 : vector<1x16x128xf32> to vector<16x128xf32>
    %1287 = vector.extract_strided_slice %22 {offsets = [5, 0], sizes = [1, 128], strides = [1, 1]} : vector<9x128xf32> to vector<1x128xf32>
    %1288 = vector.broadcast %1287 : vector<1x128xf32> to vector<16x128xf32>
    %1289 = arith.mulf %1286, %1288 : vector<16x128xf32>
    %1290 = arith.addf %1282, %1289 : vector<16x128xf32>
    %c2_i32_493 = arith.constant 2 : i32
    %1291 = arith.addi %c14_i32, %c2_i32_493 : i32
    %1292 = arith.index_cast %1291 : i32 to index
    %c0_494 = arith.constant 0 : index
    %c0_495 = arith.constant 0 : index
    %1293 = vector.load %arg13[%1292, %c0_494, %c0_495] : memref<18x18x128xf32, #tpu.memory_space<vmem>>, vector<1x16x128xf32>
    %1294 = vector.shape_cast %1293 : vector<1x16x128xf32> to vector<16x128xf32>
    %1295 = vector.extract_strided_slice %22 {offsets = [6, 0], sizes = [1, 128], strides = [1, 1]} : vector<9x128xf32> to vector<1x128xf32>
    %1296 = vector.broadcast %1295 : vector<1x128xf32> to vector<16x128xf32>
    %1297 = arith.mulf %1294, %1296 : vector<16x128xf32>
    %1298 = arith.addf %1290, %1297 : vector<16x128xf32>
    %c2_i32_496 = arith.constant 2 : i32
    %1299 = arith.addi %c14_i32, %c2_i32_496 : i32
    %1300 = arith.index_cast %1299 : i32 to index
    %c1_497 = arith.constant 1 : index
    %c0_498 = arith.constant 0 : index
    %1301 = vector.load %arg13[%1300, %c1_497, %c0_498] : memref<18x18x128xf32, #tpu.memory_space<vmem>>, vector<1x16x128xf32>
    %1302 = vector.shape_cast %1301 : vector<1x16x128xf32> to vector<16x128xf32>
    %1303 = vector.extract_strided_slice %22 {offsets = [7, 0], sizes = [1, 128], strides = [1, 1]} : vector<9x128xf32> to vector<1x128xf32>
    %1304 = vector.broadcast %1303 : vector<1x128xf32> to vector<16x128xf32>
    %1305 = arith.mulf %1302, %1304 : vector<16x128xf32>
    %1306 = arith.addf %1298, %1305 : vector<16x128xf32>
    %c2_i32_499 = arith.constant 2 : i32
    %1307 = arith.addi %c14_i32, %c2_i32_499 : i32
    %1308 = arith.index_cast %1307 : i32 to index
    %c2_500 = arith.constant 2 : index
    %c0_501 = arith.constant 0 : index
    %1309 = vector.load %arg13[%1308, %c2_500, %c0_501] : memref<18x18x128xf32, #tpu.memory_space<vmem>>, vector<1x16x128xf32>
    %1310 = vector.shape_cast %1309 : vector<1x16x128xf32> to vector<16x128xf32>
    %1311 = vector.extract_strided_slice %22 {offsets = [8, 0], sizes = [1, 128], strides = [1, 1]} : vector<9x128xf32> to vector<1x128xf32>
    %1312 = vector.broadcast %1311 : vector<1x128xf32> to vector<16x128xf32>
    %1313 = arith.mulf %1310, %1312 : vector<16x128xf32>
    %1314 = arith.addf %1306, %1313 : vector<16x128xf32>
    %1315 = vector.broadcast %23 : vector<1x128xf32> to vector<16x128xf32>
    %1316 = arith.addf %1314, %1315 : vector<16x128xf32>
    %cst_502 = arith.constant 0.000000e+00 : f32
    %1317 = vector.broadcast %cst_502 : f32 to vector<16x128xf32>
    %1318 = arith.subf %1317, %1316 : vector<16x128xf32>
    %1319 = math.exp %1318 : vector<16x128xf32>
    %cst_503 = arith.constant 1.000000e+00 : f32
    %1320 = vector.broadcast %cst_503 : f32 to vector<16x128xf32>
    %1321 = arith.addf %1320, %1319 : vector<16x128xf32>
    %1322 = tpu.reciprocal %1321 {approx = true} : vector<16x128xf32> -> vector<16x128xf32>
    %1323 = arith.mulf %1316, %1322 : vector<16x128xf32>
    %1324 = arith.truncf %1323 : vector<16x128xf32> to vector<16x128xbf16>
    %1325 = arith.index_cast %c14_i32 : i32 to index
    %c0_504 = arith.constant 0 : index
    %c0_505 = arith.constant 0 : index
    %1326 = vector.load %arg14[%1325, %c0_504, %c0_505] : memref<16x16x128xbf16, #tpu.memory_space<vmem>>, vector<1x16x128xbf16>
    %1327 = vector.shape_cast %1326 : vector<1x16x128xbf16> to vector<16x128xbf16>
    %1328 = vector.shape_cast %1324 : vector<16x128xbf16> to vector<1x16x128xbf16>
    tpu.vector_store %arg14[%1325, %c0_504, %c0_505], %1328 {strides = array<i32>} : memref<16x16x128xbf16, #tpu.memory_space<vmem>>, vector<1x16x128xbf16>,
    %c15_i32 = arith.constant 15 : i32
    %cst_506 = arith.constant 0.000000e+00 : f32
    %1329 = vector.broadcast %cst_506 : f32 to vector<16x128xf32>
    %c0_i32_507 = arith.constant 0 : i32
    %1330 = arith.addi %c15_i32, %c0_i32_507 : i32
    %1331 = arith.index_cast %1330 : i32 to index
    %c0_508 = arith.constant 0 : index
    %c0_509 = arith.constant 0 : index
    %1332 = vector.load %arg13[%1331, %c0_508, %c0_509] : memref<18x18x128xf32, #tpu.memory_space<vmem>>, vector<1x16x128xf32>
    %1333 = vector.shape_cast %1332 : vector<1x16x128xf32> to vector<16x128xf32>
    %1334 = vector.extract_strided_slice %22 {offsets = [0, 0], sizes = [1, 128], strides = [1, 1]} : vector<9x128xf32> to vector<1x128xf32>
    %1335 = vector.broadcast %1334 : vector<1x128xf32> to vector<16x128xf32>
    %1336 = arith.mulf %1333, %1335 : vector<16x128xf32>
    %1337 = arith.addf %1329, %1336 : vector<16x128xf32>
    %c0_i32_510 = arith.constant 0 : i32
    %1338 = arith.addi %c15_i32, %c0_i32_510 : i32
    %1339 = arith.index_cast %1338 : i32 to index
    %c1_511 = arith.constant 1 : index
    %c0_512 = arith.constant 0 : index
    %1340 = vector.load %arg13[%1339, %c1_511, %c0_512] : memref<18x18x128xf32, #tpu.memory_space<vmem>>, vector<1x16x128xf32>
    %1341 = vector.shape_cast %1340 : vector<1x16x128xf32> to vector<16x128xf32>
    %1342 = vector.extract_strided_slice %22 {offsets = [1, 0], sizes = [1, 128], strides = [1, 1]} : vector<9x128xf32> to vector<1x128xf32>
    %1343 = vector.broadcast %1342 : vector<1x128xf32> to vector<16x128xf32>
    %1344 = arith.mulf %1341, %1343 : vector<16x128xf32>
    %1345 = arith.addf %1337, %1344 : vector<16x128xf32>
    %c0_i32_513 = arith.constant 0 : i32
    %1346 = arith.addi %c15_i32, %c0_i32_513 : i32
    %1347 = arith.index_cast %1346 : i32 to index
    %c2_514 = arith.constant 2 : index
    %c0_515 = arith.constant 0 : index
    %1348 = vector.load %arg13[%1347, %c2_514, %c0_515] : memref<18x18x128xf32, #tpu.memory_space<vmem>>, vector<1x16x128xf32>
    %1349 = vector.shape_cast %1348 : vector<1x16x128xf32> to vector<16x128xf32>
    %1350 = vector.extract_strided_slice %22 {offsets = [2, 0], sizes = [1, 128], strides = [1, 1]} : vector<9x128xf32> to vector<1x128xf32>
    %1351 = vector.broadcast %1350 : vector<1x128xf32> to vector<16x128xf32>
    %1352 = arith.mulf %1349, %1351 : vector<16x128xf32>
    %1353 = arith.addf %1345, %1352 : vector<16x128xf32>
    %c1_i32_516 = arith.constant 1 : i32
    %1354 = arith.addi %c15_i32, %c1_i32_516 : i32
    %1355 = arith.index_cast %1354 : i32 to index
    %c0_517 = arith.constant 0 : index
    %c0_518 = arith.constant 0 : index
    %1356 = vector.load %arg13[%1355, %c0_517, %c0_518] : memref<18x18x128xf32, #tpu.memory_space<vmem>>, vector<1x16x128xf32>
    %1357 = vector.shape_cast %1356 : vector<1x16x128xf32> to vector<16x128xf32>
    %1358 = vector.extract_strided_slice %22 {offsets = [3, 0], sizes = [1, 128], strides = [1, 1]} : vector<9x128xf32> to vector<1x128xf32>
    %1359 = vector.broadcast %1358 : vector<1x128xf32> to vector<16x128xf32>
    %1360 = arith.mulf %1357, %1359 : vector<16x128xf32>
    %1361 = arith.addf %1353, %1360 : vector<16x128xf32>
    %c1_i32_519 = arith.constant 1 : i32
    %1362 = arith.addi %c15_i32, %c1_i32_519 : i32
    %1363 = arith.index_cast %1362 : i32 to index
    %c1_520 = arith.constant 1 : index
    %c0_521 = arith.constant 0 : index
    %1364 = vector.load %arg13[%1363, %c1_520, %c0_521] : memref<18x18x128xf32, #tpu.memory_space<vmem>>, vector<1x16x128xf32>
    %1365 = vector.shape_cast %1364 : vector<1x16x128xf32> to vector<16x128xf32>
    %1366 = vector.extract_strided_slice %22 {offsets = [4, 0], sizes = [1, 128], strides = [1, 1]} : vector<9x128xf32> to vector<1x128xf32>
    %1367 = vector.broadcast %1366 : vector<1x128xf32> to vector<16x128xf32>
    %1368 = arith.mulf %1365, %1367 : vector<16x128xf32>
    %1369 = arith.addf %1361, %1368 : vector<16x128xf32>
    %c1_i32_522 = arith.constant 1 : i32
    %1370 = arith.addi %c15_i32, %c1_i32_522 : i32
    %1371 = arith.index_cast %1370 : i32 to index
    %c2_523 = arith.constant 2 : index
    %c0_524 = arith.constant 0 : index
    %1372 = vector.load %arg13[%1371, %c2_523, %c0_524] : memref<18x18x128xf32, #tpu.memory_space<vmem>>, vector<1x16x128xf32>
    %1373 = vector.shape_cast %1372 : vector<1x16x128xf32> to vector<16x128xf32>
    %1374 = vector.extract_strided_slice %22 {offsets = [5, 0], sizes = [1, 128], strides = [1, 1]} : vector<9x128xf32> to vector<1x128xf32>
    %1375 = vector.broadcast %1374 : vector<1x128xf32> to vector<16x128xf32>
    %1376 = arith.mulf %1373, %1375 : vector<16x128xf32>
    %1377 = arith.addf %1369, %1376 : vector<16x128xf32>
    %c2_i32_525 = arith.constant 2 : i32
    %1378 = arith.addi %c15_i32, %c2_i32_525 : i32
    %1379 = arith.index_cast %1378 : i32 to index
    %c0_526 = arith.constant 0 : index
    %c0_527 = arith.constant 0 : index
    %1380 = vector.load %arg13[%1379, %c0_526, %c0_527] : memref<18x18x128xf32, #tpu.memory_space<vmem>>, vector<1x16x128xf32>
    %1381 = vector.shape_cast %1380 : vector<1x16x128xf32> to vector<16x128xf32>
    %1382 = vector.extract_strided_slice %22 {offsets = [6, 0], sizes = [1, 128], strides = [1, 1]} : vector<9x128xf32> to vector<1x128xf32>
    %1383 = vector.broadcast %1382 : vector<1x128xf32> to vector<16x128xf32>
    %1384 = arith.mulf %1381, %1383 : vector<16x128xf32>
    %1385 = arith.addf %1377, %1384 : vector<16x128xf32>
    %c2_i32_528 = arith.constant 2 : i32
    %1386 = arith.addi %c15_i32, %c2_i32_528 : i32
    %1387 = arith.index_cast %1386 : i32 to index
    %c1_529 = arith.constant 1 : index
    %c0_530 = arith.constant 0 : index
    %1388 = vector.load %arg13[%1387, %c1_529, %c0_530] : memref<18x18x128xf32, #tpu.memory_space<vmem>>, vector<1x16x128xf32>
    %1389 = vector.shape_cast %1388 : vector<1x16x128xf32> to vector<16x128xf32>
    %1390 = vector.extract_strided_slice %22 {offsets = [7, 0], sizes = [1, 128], strides = [1, 1]} : vector<9x128xf32> to vector<1x128xf32>
    %1391 = vector.broadcast %1390 : vector<1x128xf32> to vector<16x128xf32>
    %1392 = arith.mulf %1389, %1391 : vector<16x128xf32>
    %1393 = arith.addf %1385, %1392 : vector<16x128xf32>
    %c2_i32_531 = arith.constant 2 : i32
    %1394 = arith.addi %c15_i32, %c2_i32_531 : i32
    %1395 = arith.index_cast %1394 : i32 to index
    %c2_532 = arith.constant 2 : index
    %c0_533 = arith.constant 0 : index
    %1396 = vector.load %arg13[%1395, %c2_532, %c0_533] : memref<18x18x128xf32, #tpu.memory_space<vmem>>, vector<1x16x128xf32>
    %1397 = vector.shape_cast %1396 : vector<1x16x128xf32> to vector<16x128xf32>
    %1398 = vector.extract_strided_slice %22 {offsets = [8, 0], sizes = [1, 128], strides = [1, 1]} : vector<9x128xf32> to vector<1x128xf32>
    %1399 = vector.broadcast %1398 : vector<1x128xf32> to vector<16x128xf32>
    %1400 = arith.mulf %1397, %1399 : vector<16x128xf32>
    %1401 = arith.addf %1393, %1400 : vector<16x128xf32>
    %1402 = vector.broadcast %23 : vector<1x128xf32> to vector<16x128xf32>
    %1403 = arith.addf %1401, %1402 : vector<16x128xf32>
    %cst_534 = arith.constant 0.000000e+00 : f32
    %1404 = vector.broadcast %cst_534 : f32 to vector<16x128xf32>
    %1405 = arith.subf %1404, %1403 : vector<16x128xf32>
    %1406 = math.exp %1405 : vector<16x128xf32>
    %cst_535 = arith.constant 1.000000e+00 : f32
    %1407 = vector.broadcast %cst_535 : f32 to vector<16x128xf32>
    %1408 = arith.addf %1407, %1406 : vector<16x128xf32>
    %1409 = tpu.reciprocal %1408 {approx = true} : vector<16x128xf32> -> vector<16x128xf32>
    %1410 = arith.mulf %1403, %1409 : vector<16x128xf32>
    %1411 = arith.truncf %1410 : vector<16x128xf32> to vector<16x128xbf16>
    %1412 = arith.index_cast %c15_i32 : i32 to index
    %c0_536 = arith.constant 0 : index
    %c0_537 = arith.constant 0 : index
    %1413 = vector.load %arg14[%1412, %c0_536, %c0_537] : memref<16x16x128xbf16, #tpu.memory_space<vmem>>, vector<1x16x128xbf16>
    %1414 = vector.shape_cast %1413 : vector<1x16x128xbf16> to vector<16x128xbf16>
    %1415 = vector.shape_cast %1411 : vector<16x128xbf16> to vector<1x16x128xbf16>
    tpu.vector_store %arg14[%1412, %c0_536, %c0_537], %1415 {strides = array<i32>} : memref<16x16x128xbf16, #tpu.memory_space<vmem>>, vector<1x16x128xbf16>,
    %c16_i32 = arith.constant 16 : i32
    %c0_538 = arith.constant 0 : index
    %c0_539 = arith.constant 0 : index
    %c0_540 = arith.constant 0 : index
    %1416 = vector.load %arg14[%c0_538, %c0_539, %c0_540] : memref<16x16x128xbf16, #tpu.memory_space<vmem>>, vector<16x16x128xbf16>
    %1417 = vector.shape_cast %1416 : vector<16x16x128xbf16> to vector<256x128xbf16>
    %1418 = arith.extf %1417 : vector<256x128xbf16> to vector<256x128xf32>
    %cst_541 = arith.constant dense<0.000000e+00> : vector<128xf32>
    %1419 = vector.multi_reduction <add>, %1418, %cst_541 [0] : vector<256x128xf32> to vector<128xf32>
    %1420 = vector.shape_cast %1419 : vector<128xf32> to vector<1x128xf32>
    %cst_542 = arith.constant 3.906250e-03 : f32
    %1421 = vector.broadcast %cst_542 : f32 to vector<1x128xf32>
    %1422 = arith.mulf %1420, %1421 : vector<1x128xf32>
    %1423 = vector.shape_cast %1422 : vector<1x128xf32> to vector<1x128xf32>
    %1424 = vector.broadcast %1423 : vector<1x128xf32> to vector<8x128xf32>
    %1425 = arith.truncf %1424 : vector<8x128xf32> to vector<8x128xbf16>
    %c0_543 = arith.constant 0 : index
    %c0_544 = arith.constant 0 : index
    %1426 = vector.load %arg6[%c0_543, %c0_544] : memref<128x32xbf16, #tpu.memory_space<vmem>>, vector<128x32xbf16>
    %cst_545 = arith.constant dense<0.000000e+00> : vector<8x32xf32>
    %1427 = tpu.matmul %1425, %1426, %cst_545 {dimension_numbers = #tpu.dot_dimension_numbers<[1], [0], [0], [1], [0, 0, 1, 1], [], []>} : vector<8x128xbf16>, vector<128x32xbf16>, vector<8x32xf32> -> vector<8x32xf32>
    %c0_546 = arith.constant 0 : index
    %c0_547 = arith.constant 0 : index
    %1428 = vector.load %arg7[%c0_546, %c0_547] : memref<1x32xf32, #tpu.memory_space<vmem>>, vector<1x32xf32>
    %1429 = vector.broadcast %1428 : vector<1x32xf32> to vector<8x32xf32>
    %1430 = arith.addf %1427, %1429 : vector<8x32xf32>
    %cst_548 = arith.constant 0.000000e+00 : f32
    %1431 = vector.broadcast %cst_548 : f32 to vector<8x32xf32>
    %1432 = arith.subf %1431, %1430 : vector<8x32xf32>
    %1433 = math.exp %1432 : vector<8x32xf32>
    %cst_549 = arith.constant 1.000000e+00 : f32
    %1434 = vector.broadcast %cst_549 : f32 to vector<8x32xf32>
    %1435 = arith.addf %1434, %1433 : vector<8x32xf32>
    %1436 = tpu.reciprocal %1435 {approx = true} : vector<8x32xf32> -> vector<8x32xf32>
    %1437 = arith.mulf %1430, %1436 : vector<8x32xf32>
    %1438 = arith.truncf %1437 : vector<8x32xf32> to vector<8x32xbf16>
    %c0_550 = arith.constant 0 : index
    %c0_551 = arith.constant 0 : index
    %1439 = vector.load %arg8[%c0_550, %c0_551] : memref<32x128xbf16, #tpu.memory_space<vmem>>, vector<32x128xbf16>
    %cst_552 = arith.constant dense<0.000000e+00> : vector<8x128xf32>
    %1440 = tpu.matmul %1438, %1439, %cst_552 {dimension_numbers = #tpu.dot_dimension_numbers<[1], [0], [0], [1], [0, 0, 1, 1], [], []>} : vector<8x32xbf16>, vector<32x128xbf16>, vector<8x128xf32> -> vector<8x128xf32>
    %c0_553 = arith.constant 0 : index
    %c0_554 = arith.constant 0 : index
    %1441 = vector.load %arg9[%c0_553, %c0_554] : memref<1x128xf32, #tpu.memory_space<vmem>>, vector<1x128xf32>
    %1442 = vector.broadcast %1441 : vector<1x128xf32> to vector<8x128xf32>
    %1443 = arith.addf %1440, %1442 : vector<8x128xf32>
    %cst_555 = arith.constant 0.000000e+00 : f32
    %1444 = vector.broadcast %cst_555 : f32 to vector<8x128xf32>
    %1445 = arith.subf %1444, %1443 : vector<8x128xf32>
    %1446 = math.exp %1445 : vector<8x128xf32>
    %cst_556 = arith.constant 1.000000e+00 : f32
    %1447 = vector.broadcast %cst_556 : f32 to vector<8x128xf32>
    %1448 = arith.addf %1447, %1446 : vector<8x128xf32>
    %1449 = tpu.reciprocal %1448 {approx = true} : vector<8x128xf32> -> vector<8x128xf32>
    %1450 = vector.extract_strided_slice %1449 {offsets = [0, 0], sizes = [1, 128], strides = [1, 1]} : vector<8x128xf32> to vector<1x128xf32>
    %1451 = arith.truncf %1450 : vector<1x128xf32> to vector<1x128xbf16>
    %1452 = vector.broadcast %1451 : vector<1x128xbf16> to vector<256x128xbf16>
    %1453 = arith.mulf %1417, %1452 : vector<256x128xbf16>
    %c0_557 = arith.constant 0 : index
    %c0_558 = arith.constant 0 : index
    %1454 = vector.load %arg10[%c0_557, %c0_558] : memref<128x32xbf16, #tpu.memory_space<vmem>>, vector<128x32xbf16>
    %cst_559 = arith.constant dense<0.000000e+00> : vector<256x32xf32>
    %1455 = tpu.matmul %1453, %1454, %cst_559 {dimension_numbers = #tpu.dot_dimension_numbers<[1], [0], [0], [1], [0, 0, 1, 1], [], []>} : vector<256x128xbf16>, vector<128x32xbf16>, vector<256x32xf32> -> vector<256x32xf32>
    %c0_560 = arith.constant 0 : index
    %c0_561 = arith.constant 0 : index
    %1456 = vector.load %arg11[%c0_560, %c0_561] : memref<1x32xf32, #tpu.memory_space<vmem>>, vector<1x32xf32>
    %1457 = vector.broadcast %1456 : vector<1x32xf32> to vector<256x32xf32>
    %1458 = arith.addf %1455, %1457 : vector<256x32xf32>
    %1459 = arith.extf %1 : vector<256x32xbf16> to vector<256x32xf32>
    %1460 = arith.addf %1458, %1459 : vector<256x32xf32>
    %1461 = arith.truncf %1460 : vector<256x32xf32> to vector<256x32xbf16>
    %c0_562 = arith.constant 0 : index
    %c0_563 = arith.constant 0 : index
    %c0_564 = arith.constant 0 : index
    %1462 = vector.load %arg12[%c0_562, %c0_563, %c0_564] : memref<1x256x32xbf16, #tpu.memory_space<vmem>>, vector<1x256x32xbf16>
    %1463 = vector.shape_cast %1462 : vector<1x256x32xbf16> to vector<256x32xbf16>
    %1464 = vector.shape_cast %1461 : vector<256x32xbf16> to vector<1x256x32xbf16>
    tpu.vector_store %arg12[%c0_562, %c0_563, %c0_564], %1464 {strides = array<i32>} : memref<1x256x32xbf16, #tpu.memory_space<vmem>>, vector<1x256x32xbf16>,
    return
  }
  func.func @transform_0(%arg0: i32) -> (i32, i32, i32) {
    %c0_i32 = arith.constant 0 : i32
    %c0_i32_0 = arith.constant 0 : i32
    %c0_i32_1 = arith.constant 0 : i32
    return %arg0, %c0_i32, %c0_i32_0 : i32, i32, i32
  }
  func.func @transform_1(%arg0: i32) -> (i32, i32) {
    %c0_i32 = arith.constant 0 : i32
    %c0_i32_0 = arith.constant 0 : i32
    %c0_i32_1 = arith.constant 0 : i32
    return %c0_i32, %c0_i32_0 : i32, i32
  }
  func.func @transform_2(%arg0: i32) -> (i32, i32) {
    %c0_i32 = arith.constant 0 : i32
    %c0_i32_0 = arith.constant 0 : i32
    %c0_i32_1 = arith.constant 0 : i32
    return %c0_i32, %c0_i32_0 : i32, i32
  }
  func.func @transform_3(%arg0: i32) -> (i32, i32) {
    %c0_i32 = arith.constant 0 : i32
    %c0_i32_0 = arith.constant 0 : i32
    %c0_i32_1 = arith.constant 0 : i32
    return %c0_i32, %c0_i32_0 : i32, i32
  }
  func.func @transform_4(%arg0: i32) -> (i32, i32) {
    %c0_i32 = arith.constant 0 : i32
    %c0_i32_0 = arith.constant 0 : i32
    %c0_i32_1 = arith.constant 0 : i32
    return %c0_i32, %c0_i32_0 : i32, i32
  }
  func.func @transform_5(%arg0: i32) -> (i32, i32) {
    %c0_i32 = arith.constant 0 : i32
    %c0_i32_0 = arith.constant 0 : i32
    %c0_i32_1 = arith.constant 0 : i32
    return %c0_i32, %c0_i32_0 : i32, i32
  }
  func.func @transform_6(%arg0: i32) -> (i32, i32) {
    %c0_i32 = arith.constant 0 : i32
    %c0_i32_0 = arith.constant 0 : i32
    %c0_i32_1 = arith.constant 0 : i32
    return %c0_i32, %c0_i32_0 : i32, i32
  }
  func.func @transform_7(%arg0: i32) -> (i32, i32) {
    %c0_i32 = arith.constant 0 : i32
    %c0_i32_0 = arith.constant 0 : i32
    %c0_i32_1 = arith.constant 0 : i32
    return %c0_i32, %c0_i32_0 : i32, i32
  }
  func.func @transform_8(%arg0: i32) -> (i32, i32) {
    %c0_i32 = arith.constant 0 : i32
    %c0_i32_0 = arith.constant 0 : i32
    %c0_i32_1 = arith.constant 0 : i32
    return %c0_i32, %c0_i32_0 : i32, i32
  }
  func.func @transform_9(%arg0: i32) -> (i32, i32) {
    %c0_i32 = arith.constant 0 : i32
    %c0_i32_0 = arith.constant 0 : i32
    %c0_i32_1 = arith.constant 0 : i32
    return %c0_i32, %c0_i32_0 : i32, i32
  }
  func.func @transform_10(%arg0: i32) -> (i32, i32) {
    %c0_i32 = arith.constant 0 : i32
    %c0_i32_0 = arith.constant 0 : i32
    %c0_i32_1 = arith.constant 0 : i32
    return %c0_i32, %c0_i32_0 : i32, i32
  }
  func.func @transform_11(%arg0: i32) -> (i32, i32, i32) {
    %c0_i32 = arith.constant 0 : i32
    %c0_i32_0 = arith.constant 0 : i32
    %c0_i32_1 = arith.constant 0 : i32
    return %arg0, %c0_i32, %c0_i32_0 : i32, i32, i32
  }
}

</mosaic_0001>

<bundles_post_ra>
// kernel: mbconv_forward.1
= control target key start
LH: loop header
LB: loop body
LE: loop exit
PB: predicated region body
PF: predicated region fallthrough
CT: control target
= control target key end

     0   :  { %s4149_s17 = smov 0   ;;  %s5692_s0 = inlined_call_operand.vmem [shape: bf16[2,256,32], index: 0, kind: input, shape index: {}]   ;;  %s5693_s1 = inlined_call_operand.vmem [shape: bf16[32,128], index: 1, kind: input, shape index: {}]   ;;  %s5694_s2 = inlined_call_operand.vmem [shape: f32[1,128], index: 2, kind: input, shape index: {}]   ;;  %s5695_s3 = inlined_call_operand.vmem [shape: f32[9,128], index: 3, kind: input, shape index: {}]   ;;  %s5696_s4 = inlined_call_operand.vmem [shape: f32[1,128], index: 4, kind: input, shape index: {}]   ;;  %s5697_s5 = inlined_call_operand.vmem [shape: bf16[128,32], index: 5, kind: input, shape index: {}]   ;;  %s5698_s6 = inlined_call_operand.vmem [shape: f32[1,32], index: 6, kind: input, shape index: {}]   ;;  %s5699_s7 = inlined_call_operand.vmem [shape: bf16[32,128], index: 7, kind: input, shape index: {}]   ;;  %s5700_s8 = inlined_call_operand.vmem [shape: f32[1,128], index: 8, kind: input, shape index: {}]   ;;  %s5701_s9 = inlined_call_operand.vmem [shape: bf16[128,32], index: 9, kind: input, shape index: {}]   ;;  %s5702_s10 = inlined_call_operand.vmem [shape: f32[1,32], index: 10, kind: input, shape index: {}]   ;;  %s5703_s11 = inlined_call_operand.vmem [shape: bf16[2,256,32], index: 11, kind: output, shape index: {}]  }
   0x1 LB: > { %s3268_s18 = sadd.s32 4294967295, %s4085_s17   ;;  %p3272_p0 = scmp.ge.s32.totalorder %s4085_s17, 1  ;;  %s4085_s17 = sphi %s4149_s17, %s21_s17  }
   0x2   : > { %p337_p1 = scmp.lt.s32.totalorder %s4085_s17, 3 }
   0x4   : > { %p338_p2 = pnand %p3272_p0, %p337_p1 }
   0x6   : > { %341 = sbr.rel (%p338_p2) target bundleno = 1320 (0x528), region = 64 }
   0xb   : > { %v3741_v0 = vld [vmem:[%s5693_s1 + $0x8] sm:$0xff]   ;;  %p377_p3 = scmp.lt.s32.totalorder %s3268_s18, 1  ;;  %v3742_v1 = vld [vmem:[%s5693_s1] sm:$0xff]   ;;  %vm523_vm0 = vcmask 261120   ;;  %v4087_v18 = vmov 0.0   ;;  %vm4088_vm1 = vmmov 0  }
   0xc   : > { %3619 = vmatprep.subr.bf16.mxu1 %v3741_v0  ;;  %934 = vst [vmem:[#allocation2 + $0x30] sm:$0x1] %v4087_v18  ;;  %925 = vst [vmem:[#allocation2] sm:$0xff] %v4087_v18  ;;  %v4208_v19 = vld [vmem:[%s5694_s2] ss:$0 sm:$0xff]  ;;  %vm3180_vm2 = vcmask 257024  }
   0xd   : > { %s5783_s18 = smov (!%p377_p3, %s3268_s18), 1  ;;  %3620 = vmatpush3.bf16.msra.mxu1 %v3741_v0  ;;  %926 = vst [vmem:[#allocation2 + $0x8] sm:$0xff] %v4087_v18  ;;  %927 = vst [vmem:[#allocation2 + $0x10] sm:$0x3] %v4087_v18 }
   0xe   : > { %3621 = vmatprep.subr.bf16.mxu1 %v3742_v1  ;;  %s3419_s23 = sshll.u32 %s5783_s18, 7  ;;  %929 = vst [vmem:[#allocation2 + $0x198] sm:$0xff] %v4087_v18  ;;  %930 = vst [vmem:[#allocation2 + $0x1a0] sm:$0xff] %v4087_v18 }
   0xf   : > { %s4171_s26 = scalar_lea.vmem %s5692_s0, %s3419_s23  ;;  %931 = vst [vmem:[#allocation2 + $0x1a8] sm:$0x3] %v4087_v18  ;;  %933 = vst [vmem:[#allocation2 + $0x18] sm:$0x1] %v4087_v18  ;;  %s5579_s29 = scalar_lea.vmem %s5703_s11, %s3419_s23 }
  0x10   : > { %v388_v2 = vld [vmem:[%s4171_s26] sm:$0xff]   ;;  %v390_v3 = vld [vmem:[%s4171_s26 + $0x8] sm:$0xff]   ;;  %v392_v4 = vld [vmem:[%s4171_s26 + $0x10] sm:$0xff]   ;;  %935 = vst [vmem:[#allocation2 + $0x48] sm:$0x1] %v4087_v18 }
  0x11   : > { %3622 = vmatpush3.bf16.msra.mxu1 %v3742_v1  ;;  %3623 = vmatprep.mubr.msk.bf16.mxu1 %vm523_vm0, %v388_v2  ;;  %v394_v5 = vld [vmem:[%s4171_s26 + $0x18] sm:$0xff]   ;;  %v396_v6 = vld [vmem:[%s4171_s26 + $0x20] sm:$0xff]   ;;  %v398_v7 = vld [vmem:[%s4171_s26 + $0x28] sm:$0xff]   ;;  %936 = vst [vmem:[#allocation2 + $0x60] sm:$0x1] %v4087_v18 }
  0x12   : > { %v400_v8 = vld [vmem:[%s4171_s26 + $0x30] sm:$0xff]   ;;  %v402_v9 = vld [vmem:[%s4171_s26 + $0x38] sm:$0xff]   ;;  %v404_v10 = vld [vmem:[%s4171_s26 + $0x40] sm:$0xff]   ;;  %937 = vst [vmem:[#allocation2 + $0x78] sm:$0x1] %v4087_v18  ;;  %3655 = vmatprep.subr.bf16.mxu1 %v4087_v18 }
  0x13   : > { %v406_v11 = vld [vmem:[%s4171_s26 + $0x48] sm:$0xff]   ;;  %v408_v12 = vld [vmem:[%s4171_s26 + $0x50] sm:$0xff]   ;;  %v410_v13 = vld [vmem:[%s4171_s26 + $0x58] sm:$0xff]   ;;  %938 = vst [vmem:[#allocation2 + $0x90] sm:$0x1] %v4087_v18 }
  0x14   : > { %3624 = vmatmul.mubr.msk.bf16.vlgmr.msra.gmra.mxu1 %vm523_vm0, %v390_v3  ;;  %v412_v14 = vld [vmem:[%s4171_s26 + $0x60] sm:$0xff]   ;;  %v414_v15 = vld [vmem:[%s4171_s26 + $0x68] sm:$0xff]   ;;  %v416_v16 = vld [vmem:[%s4171_s26 + $0x70] sm:$0xff]   ;;  %939 = vst [vmem:[#allocation2 + $0xa8] sm:$0x1] %v4087_v18  ;;  %v1006_v3 = vlaneseq }
  0x15   : > { %3627 = vmatprep.mubr.msk.bf16.mxu1 %vm523_vm0, %v392_v4  ;;  %v418_v17 = vld [vmem:[%s4171_s26 + $0x78] sm:$0xff]   ;;  %940 = vst [vmem:[#allocation2 + $0xc0] sm:$0x1] %v4087_v18  ;;  %941 = vst [vmem:[#allocation2 + $0xd8] sm:$0x1] %v4087_v18 }
  0x16   : > { %942 = vst [vmem:[#allocation2 + $0xf0] sm:$0x1] %v4087_v18  ;;  %943 = vst [vmem:[#allocation2 + $0x108] sm:$0x1] %v4087_v18 }
  0x17   : > { %944 = vst [vmem:[#allocation2 + $0x120] sm:$0x1] %v4087_v18  ;;  %945 = vst [vmem:[#allocation2 + $0x138] sm:$0x1] %v4087_v18 }
  0x18   : > { %946 = vst [vmem:[#allocation2 + $0x150] sm:$0x1] %v4087_v18  ;;  %947 = vst [vmem:[#allocation2 + $0x168] sm:$0x1] %v4087_v18 }
  0x19   : > { %948 = vst [vmem:[#allocation2 + $0x180] sm:$0x1] %v4087_v18  ;;  %951 = vst [vmem:[#allocation2 + $0x29] sm:$0x1] %v4087_v18 }
  0x1a   : > { %952 = vst [vmem:[#allocation2 + $0x41] sm:$0x1] %v4087_v18  ;;  %953 = vst [vmem:[#allocation2 + $0x59] sm:$0x1] %v4087_v18 }
  0x1b   : > { %954 = vst [vmem:[#allocation2 + $0x71] sm:$0x1] %v4087_v18  ;;  %955 = vst [vmem:[#allocation2 + $0x89] sm:$0x1] %v4087_v18 }
  0x1c   : > { %3628 = vmatmul.mubr.msk.bf16.gmra.mxu1 %vm523_vm0, %v394_v5  ;;  %956 = vst [vmem:[#allocation2 + $0xa1] sm:$0x1] %v4087_v18  ;;  %957 = vst [vmem:[#allocation2 + $0xb9] sm:$0x1] %v4087_v18 }
  0x1d   : > { %3631 = vmatprep.mubr.msk.bf16.mxu1 %vm523_vm0, %v396_v6  ;;  %958 = vst [vmem:[#allocation2 + $0xd1] sm:$0x1] %v4087_v18  ;;  %959 = vst [vmem:[#allocation2 + $0xe9] sm:$0x1] %v4087_v18 }
  0x1e   : > { %960 = vst [vmem:[#allocation2 + $0x101] sm:$0x1] %v4087_v18  ;;  %961 = vst [vmem:[#allocation2 + $0x119] sm:$0x1] %v4087_v18 }
  0x1f   : > { %962 = vst [vmem:[#allocation2 + $0x131] sm:$0x1] %v4087_v18  ;;  %963 = vst [vmem:[#allocation2 + $0x149] sm:$0x1] %v4087_v18 }
  0x20   : > { %964 = vst [vmem:[#allocation2 + $0x161] sm:$0x1] %v4087_v18  ;;  %965 = vst [vmem:[#allocation2 + $0x179] sm:$0x1] %v4087_v18 }
  0x21   : > { %966 = vst [vmem:[#allocation2 + $0x191] sm:$0x1] %v4087_v18  ;;  %932 = vst [vmem:[#allocation2] sm:$0x1] %v4087_v18 }
  0x22   : > { %949 = vst [vmem:[#allocation2 + $0x198] sm:$0x1] %v4087_v18  ;;  %950 = vst [vmem:[#allocation2 + $0x11] sm:$0x1] %v4087_v18 }
  0x23   : > { %967 = vst [vmem:[#allocation2 + $0x1a9] sm:$0x1] %v4087_v18 }
  0x24   : > { %3632 = vmatmul.mubr.msk.bf16.gmra.mxu1 %vm523_vm0, %v398_v7 }
  0x25   : > { %3635 = vmatprep.mubr.msk.bf16.mxu1 %vm523_vm0, %v400_v8 }
  0x2c   : > { %3636 = vmatmul.mubr.msk.bf16.gmra.mxu1 %vm523_vm0, %v402_v9 }
  0x2d   : > { %3639 = vmatprep.mubr.msk.bf16.mxu1 %vm523_vm0, %v404_v10 }
  0x34   : > { %3640 = vmatmul.mubr.msk.bf16.gmra.mxu1 %vm523_vm0, %v406_v11 }
  0x35   : > { %3643 = vmatprep.mubr.msk.bf16.mxu1 %vm523_vm0, %v408_v12 }
  0x3c   : > { %3644 = vmatmul.mubr.msk.bf16.gmra.mxu1 %vm523_vm0, %v410_v13 }
  0x3d   : > { %3647 = vmatprep.mubr.msk.bf16.mxu1 %vm523_vm0, %v412_v14 }
  0x44   : > { %3648 = vmatmul.mubr.msk.bf16.gmra.mxu1 %vm523_vm0, %v414_v15  ;;  %v4261_v15 = vshrl.u32 %v1006_v3, 7 }
  0x45   : > { %3651 = vmatprep.mubr.msk.bf16.mxu1 %vm523_vm0, %v416_v16 }
  0x46   : > { %5729 = vst [vmem:[#allocation4_spill] sm:$0xff] %v4261_v15 }
  0x4c   : > { %3652 = vmatmul.mubr.msk.bf16.gmra.mxu1 %vm523_vm0, %v418_v17 }
  0xd4   : > { %v3625_v20 = vpop.f32.mrf.mxu1 }
  0xd5   : > { %v4211_v21 = vadd.f32 %v3625_v20, %v4208_v19 }
  0xd6   : > { %v606_v22 = vpop.f32.mrf.mxu1 }
  0xd7   : > { %v735_v23 = vsub.f32 0.0, %v4211_v21  ;;  %v4215_v24 = vadd.f32 %v4208_v19, %v606_v22  ;;  %v5704_v22 = vsub.s32 0, %v4261_v15 }
  0xd8   : > { %v3626_v25 = vpop.f32.mrf.mxu1 }
  0xd9   : > { %v769_v26 = vmul.f32 1.442695, %v735_v23  ;;  %v733_v27 = vsub.f32 0.0, %v4215_v24  ;;  %v4219_v28 = vadd.f32 %v3626_v25, %v4208_v19 }
  0xda   : > { %v609_v29 = vpop.f32.mrf.mxu1 }
  0xdb   : > { %3793 = vpow2.f32 %v769_v26  ;;  %v765_v30 = vmul.f32 1.442695, %v733_v27  ;;  %v736_v31 = vsub.f32 0.0, %v4219_v28  ;;  %v4223_v32 = vadd.f32 %v4208_v19, %v609_v29  ;;  %v4268_v29 = vld [vmem:[%s5695_s3] sm:$0xff] }
  0xdc   : > { %v3629_v33 = vpop.f32.mrf.mxu1 }
  0xdd   : > { %3795 = vpow2.f32 %v765_v30  ;;  %v771_v34 = vmul.f32 1.442695, %v736_v31  ;;  %v734_v35 = vsub.f32 0.0, %v4223_v32  ;;  %v4227_v36 = vadd.f32 %v3629_v33, %v4208_v19 }
  0xde   : > { %v622_v37 = vpop.f32.mrf.mxu1  ;;  %v1018_v30 = vsub.s32 1, %v4261_v15 }
  0xdf   : > { %3797 = vpow2.f32 %v771_v34  ;;  %v767_v38 = vmul.f32 1.442695, %v734_v35  ;;  %v739_v39 = vsub.f32 0.0, %v4227_v36  ;;  %v4231_v40 = vadd.f32 %v4208_v19, %v622_v37 }
  0xe0   : > { %v3630_v41 = vpop.f32.mrf.mxu1  ;;  %v4274_v34 = vrot.slane %v4268_v29, %v5704_v22 }
  0xe1   : > { %3799 = vpow2.f32 %v767_v38  ;;  %v777_v42 = vmul.f32 1.442695, %v739_v39  ;;  %v737_v43 = vsub.f32 0.0, %v4231_v40  ;;  %v4235_v44 = vadd.f32 %v3630_v41, %v4208_v19  ;;  %v1004_v38 = vld [vmem:[#allocation2] sm:$0xff] }
  0xe2   : > { %v625_v45 = vpop.f32.mrf.mxu1  ;;  %v1028_v39 = vsub.s32 2, %v4261_v15 }
  0xe3   : > { %3801 = vpow2.f32 %v777_v42  ;;  %v773_v46 = vmul.f32 1.442695, %v737_v43  ;;  %v740_v47 = vsub.f32 0.0, %v4235_v44  ;;  %v4239_v48 = vadd.f32 %v4208_v19, %v625_v45  ;;  %v1014_v43 = vld [vmem:[#allocation2 + $0x1] sm:$0xff] }
  0xe4   : > { %v3633_v49 = vpop.f32.mrf.mxu1 }
  0xe5   : > { %3803 = vpow2.f32 %v773_v46  ;;  %v779_v50 = vmul.f32 1.442695, %v740_v47  ;;  %v4242_v51 = vadd.f32 %v3633_v49, %v4208_v19  ;;  %v738_v52 = vsub.f32 0.0, %v4239_v48 }
  0xe6   : > { %v638_v53 = vpop.f32.mrf.mxu1  ;;  %v4287_v46 = vrot.slane %v4268_v29, %v1018_v30 }
  0xe7   : > { %3805 = vpow2.f32 %v779_v50  ;;  %v4246_v54 = vadd.f32 %v4208_v19, %v638_v53  ;;  %v743_v56 = vsub.f32 0.0, %v4242_v51  ;;  %v775_v60 = vmul.f32 1.442695, %v738_v52  ;;  %v1015_v53 = vld [vmem:[#allocation2 + $0x9] sm:$0xff] }
  0xe8   : > { %v3794_v55 = vpop.eup %3793  ;;  %v3634_v57 = vpop.f32.mrf.mxu1  ;;  %v1010_v52 = vmul.f32 %v4274_v34, %v1004_v38 }
  0xe9   : > { %v831_v58 = vadd.f32 1.0, %v3794_v55  ;;  %v741_v61 = vsub.f32 0.0, %v4246_v54  ;;  %v4251_v62 = vadd.f32 %v3634_v57, %v4208_v19  ;;  %v785_v4 = vmul.f32 1.442695, %v743_v56 }
  0xea   : > { %v3796_v59 = vpop.eup %3795  ;;  %v641_v63 = vpop.f32.mrf.mxu1  ;;  %v1020_v57 = vmul.f32 %v4287_v46, %v1014_v43 }
  0xeb   : > { %3807 = vrcp.f32 %v831_v58  ;;  %v829_v0 = vadd.f32 1.0, %v3796_v59  ;;  %v4254_v1 = vadd.f32 %v4208_v19, %v641_v63  ;;  %v744_v5 = vsub.f32 0.0, %v4251_v62 }
  0xec   : > { %v3798_v2 = vpop.eup %3797  ;;  %v3637_v6 = vpop.f32.mrf.mxu1  ;;  %v781_v9 = vmul.f32 1.442695, %v741_v61  ;;  %v4300_v58 = vrot.slane %v4268_v29, %v1028_v39  ;;  %v1048_v61 = vsub.s32 4, %v4261_v15  ;;  %v1079_v63 = vsub.s32 7, %v4261_v15 }
  0xed   : > { %3809 = vrcp.f32 %v829_v0  ;;  %v832_v7 = vadd.f32 1.0, %v3798_v2  ;;  %v742_v10 = vsub.f32 0.0, %v4254_v1  ;;  %v4259_v11 = vadd.f32 %v3637_v6, %v4208_v19  ;;  %v1024_v0 = vld [vmem:[#allocation2 + $0x2] sm:$0xff] }
  0xee   : > { %v3800_v8 = vpop.eup %3799  ;;  %3811 = vpow2.f32 %v775_v60  ;;  %v654_v12 = vpop.f32.mrf.mxu1  ;;  %v787_v16 = vmul.f32 1.442695, %v744_v5 }
  0xef   : > { %3813 = vrcp.f32 %v832_v7  ;;  %v830_v13 = vadd.f32 1.0, %v3800_v8  ;;  %v783_v23 = vmul.f32 1.442695, %v742_v10  ;;  %v747_v25 = vsub.f32 0.0, %v4259_v11 }
  0xf0   : > { %v3802_v14 = vpop.eup %3801  ;;  %3815 = vpow2.f32 %v785_v4  ;;  %v3638_v18 = vpop.f32.mrf.mxu1  ;;  %v4277_v37 = vadd.f32 %v4208_v19, %v654_v12  ;;  %v1021_v4 = vmul.f32 %v4287_v46, %v1015_v53  ;;  %v1038_v8 = vsub.s32 3, %v4261_v15 }
  0xf1   : > { %3817 = vrcp.f32 %v830_v13  ;;  %v835_v17 = vadd.f32 1.0, %v3802_v14  ;;  %v793_v35 = vmul.f32 1.442695, %v747_v25  ;;  %v4281_v41 = vadd.f32 %v3638_v18, %v4208_v19 }
  0xf2   : > { %v3804_v20 = vpop.eup %3803  ;;  %3819 = vpow2.f32 %v781_v9  ;;  %v657_v33 = vpop.f32.mrf.mxu1  ;;  %v745_v55 = vsub.f32 0.0, %v4277_v37  ;;  %v1069_v9 = vsub.s32 6, %v4261_v15  ;;  %v1022_v14 = vadd.f32 %v1020_v57, %v1010_v52 }
  0xf3   : > { %3821 = vrcp.f32 %v835_v17  ;;  %v833_v26 = vadd.f32 1.0, %v3804_v20  ;;  %5730 = vst [vmem:[#allocation5_spill] sm:$0xff] %v4281_v41  ;;  %v4290_v47 = vadd.f32 %v4208_v19, %v657_v33  ;;  %v748_v59 = vsub.f32 0.0, %v4281_v41  ;;  %v1025_v17 = vld [vmem:[#allocation2 + $0xa] sm:$0xff] }
  0xf4   : > { %v3806_v27 = vpop.eup %3805  ;;  %3823 = vpow2.f32 %v787_v16  ;;  %v3641_v49 = vpop.f32.mrf.mxu1  ;;  %v789_v10 = vmul.f32 1.442695, %v745_v55  ;;  %v4326_v25 = vrot.slane %v4268_v29, %v1079_v63  ;;  %v1031_v39 = vmul.f32 %v4300_v58, %v1025_v17 }
  0xf5   : > { %3825 = vrcp.f32 %v833_v26  ;;  %v836_v31 = vadd.f32 1.0, %v3806_v27  ;;  %5731 = vst [vmem:[#allocation6_spill] sm:$0xff] %v4290_v47  ;;  %v746_v5 = vsub.f32 0.0, %v4290_v47  ;;  %v4315_v12 = vadd.f32 %v3641_v49, %v4208_v19 }
  0xf6   : > { %3827 = vpow2.f32 %v783_v23  ;;  %v670_v6 = vpop.f32.mrf.mxu1  ;;  %v795_v18 = vmul.f32 1.442695, %v748_v59  ;;  %v4323_v23 = vrot.slane %v4268_v29, %v1048_v61  ;;  %v4342_v52 = vrot.slane %v4268_v29, %v1069_v9 }
  0xf7   : > { %3829 = vrcp.f32 %v836_v31  ;;  %5732 = vst [vmem:[#allocation7_spill] sm:$0xff] %v4315_v12  ;;  %v4329_v27 = vadd.f32 %v4208_v19, %v670_v6  ;;  %v1058_v31 = vsub.s32 5, %v4261_v15  ;;  %v751_v43 = vsub.f32 0.0, %v4315_v12 }
  0xf8   : > { %v3808_v42 = vpop.eup %3807  ;;  %3831 = vpow2.f32 %v793_v35  ;;  %v791_v35 = vmul.f32 1.442695, %v746_v5 }
  0xf9   : > { %v4284_v45 = vmul.f32 %v3808_v42, %v4211_v21  ;;  %5733 = vst [vmem:[#allocation8_spill] sm:$0xff] %v4329_v27  ;;  %3833 = vpow2.f32 %v789_v10  ;;  %v749_v59 = vsub.f32 0.0, %v4329_v27 }
  0xfa   : > { %v3810_v50 = vpop.eup %3809  ;;  %3835 = vpow2.f32 %v795_v18 }
  0xfb   : > { %v3812_v56 = vpop.eup %3811  ;;  %971 = vst [vmem:[#allocation2 + $0x31] sm:$0xff] %v4284_v45  ;;  %v4296_v21 = vmul.f32 %v3810_v50, %v4215_v24  ;;  %v1011_v24 = vmul.f32 0.0, %v4274_v34  ;;  %v4339_v50 = vrot.slane %v4268_v29, %v1038_v8  ;;  %v1213_v8 = vmul.f32 %v4287_v46, %v4284_v45 }
  0xfc   : > { %v3814_v60 = vpop.eup %3813  ;;  %v834_v26 = vadd.f32 1.0, %v3812_v56  ;;  %v4371_v17 = vmul.f32 1.442695, %v749_v59 }
  0xfd   : > { %v3816_v2 = vpop.eup %3815  ;;  %969 = vst [vmem:[#allocation2 + $0x19] sm:$0xff] %v4296_v21  ;;  %v4307_v3 = vmul.f32 %v3814_v60, %v4219_v28  ;;  %v1030_v28 = vmul.f32 %v4300_v58, %v1024_v0  ;;  %v4354_v0 = vrot.slane %v4268_v29, %v1058_v31  ;;  %v1050_v5 = vmul.f32 %v4323_v23, %v4296_v21 }
  0xfe   : > { %v3818_v7 = vpop.eup %3817  ;;  %v839_v42 = vadd.f32 1.0, %v3816_v2  ;;  %3837 = vrcp.f32 %v834_v26  ;;  %v1081_v29 = vmul.f32 %v4326_v25, %v4284_v45 }
  0xff   : > { %v3820_v13 = vpop.eup %3819  ;;  %972 = vst [vmem:[#allocation2 + $0x39] sm:$0xff] %v4307_v3  ;;  %v4320_v16 = vmul.f32 %v3818_v7, %v4223_v32  ;;  %v1023_v32 = vadd.f32 %v1021_v4, %v1011_v24  ;;  %v1032_v53 = vadd.f32 %v1030_v28, %v1022_v14  ;;  %3839 = vpow2.f32 %v791_v35 }
 0x100   : > { %v3822_v20 = vpop.eup %3821  ;;  %v837_v57 = vadd.f32 1.0, %v3820_v13  ;;  %3841 = vrcp.f32 %v839_v42  ;;  %v1151_v7 = vmul.f32 %v4323_v23, %v4284_v45  ;;  %v1133_v28 = vmul.f32 %v4287_v46, %v4296_v21 }
 0x101   : > { %v3824_v30 = vpop.eup %3823  ;;  %970 = vst [vmem:[#allocation2 + $0x21] sm:$0xff] %v4320_v16  ;;  %v4334_v33 = vmul.f32 %v3822_v20, %v4227_v36  ;;  %v1033_v2 = vadd.f32 %v1031_v39, %v1023_v32  ;;  %v1134_v32 = vmul.f32 %v4287_v46, %v4320_v16  ;;  %v1051_v39 = vmul.f32 %v4323_v23, %v4320_v16 }
 0x102   : > { %v3826_v38 = vpop.eup %3825  ;;  %v840_v63 = vadd.f32 1.0, %v3824_v30  ;;  %3843 = vrcp.f32 %v837_v57  ;;  %v1065_v13 = vld [vmem:[#allocation2 + $0x30] sm:$0xff] }
 0x103   : > { %v3828_v49 = vpop.eup %3827  ;;  %975 = vst [vmem:[#allocation2 + $0x61] sm:$0xff] %v4334_v33  ;;  %v4346_v56 = vmul.f32 %v3826_v38, %v4231_v40  ;;  %v4357_v40 = vmul.f32 1.442695, %v751_v43  ;;  %v1071_v21 = vmul.f32 %v4342_v52, %v1065_v13  ;;  %v1145_v43 = vmul.f32 %v1065_v13, %v4339_v50 }
 0x104   : > { %v3830_v36 = vpop.eup %3829  ;;  %v1034_v55 = vld [vmem:[#allocation2 + $0x18] sm:$0xff]  ;;  %3845 = vrcp.f32 %v840_v63 }
 0x105   : > { %v1040_v60 = vmul.f32 %v4339_v50, %v1034_v55  ;;  %v4351_v61 = vmul.f32 %v3830_v36, %v4235_v44  ;;  %973 = vst [vmem:[#allocation2 + $0x49] sm:$0xff] %v4346_v56  ;;  %v3832_v24 = vpop.eup %3831  ;;  %v1127_v6 = vmul.f32 %v1034_v55, %v4274_v34  ;;  %v838_v44 = vadd.f32 1.0, %v3828_v49  ;;  %v4386_v49 = vld [vmem:[%s5695_s3 + $0x8] ss:$0 sm:$0xff] }
 0x106   : > { %v843_v30 = vadd.f32 1.0, %v3832_v24  ;;  %v1082_v36 = vmul.f32 %v4326_v25, %v4307_v3  ;;  %v1085_v55 = vld [vmem:[#allocation2 + $0x32] sm:$0xff]  ;;  %v4391_v16 = vpop.eup %3833  ;;  %v1207_v24 = vmul.f32 %v1065_v13, %v4274_v34  ;;  %v4406_v13 = vld [vmem:[%s5696_s4] ss:$0 sm:$0xff] }
 0x107   : > { %v1042_v4 = vadd.f32 %v1040_v60, %v1032_v53  ;;  %976 = vst [vmem:[#allocation2 + $0x69] sm:$0xff] %v4351_v61  ;;  %v1135_v31 = vadd.f32 %v1133_v28, %v1127_v6  ;;  %3847 = vrcp.f32 %v838_v44  ;;  %v1066_v53 = vld [vmem:[#allocation2 + $0x38] sm:$0xff]  ;;  %v4397_v44 = vpop.eup %3835 }
 0x108   : > { %v1035_v9 = vld [vmem:[#allocation2 + $0x20] sm:$0xff]  ;;  %3849 = vrcp.f32 %v843_v30  ;;  %5734 = vst [vmem:[#allocation9_spill] sm:$0xff] %v4397_v44 }
 0x109   : > { %v1054_v10 = vld [vmem:[#allocation2 + $0x1a] sm:$0xff]  ;;  %v1052_v14 = vadd.f32 %v1050_v5, %v1042_v4  ;;  %v1041_v18 = vmul.f32 %v4339_v50, %v1035_v9  ;;  %v1128_v26 = vmul.f32 %v1035_v9, %v4274_v34  ;;  %v1055_v45 = vld [vmem:[#allocation2 + $0x22] sm:$0xff]  ;;  %v1152_v4 = vmul.f32 %v4323_v23, %v4307_v3 }
 0x10a   : > { %v1060_v20 = vmul.f32 %v4354_v0, %v1054_v10  ;;  %v1139_v35 = vmul.f32 %v1054_v10, %v4300_v58  ;;  %v1061_v63 = vmul.f32 %v4354_v0, %v1055_v45  ;;  %v1140_v5 = vmul.f32 %v1055_v45, %v4300_v58 }
 0x10b   : > { %v1043_v38 = vadd.f32 %v1041_v18, %v1033_v2  ;;  %v1136_v57 = vadd.f32 %v1134_v32, %v1128_v26  ;;  %v1072_v9 = vmul.f32 %v4342_v52, %v1066_v53  ;;  %v1091_v10 = vmul.f32 %v4386_v49, %v1085_v55  ;;  %v3838_v18 = vpop.eup %3837 }
 0x10c   : > { %v1062_v42 = vadd.f32 %v1060_v20, %v1052_v14  ;;  %v1141_v59 = vadd.f32 %v1139_v35, %v1135_v31  ;;  %v1086_v20 = vld [vmem:[#allocation2 + $0x3a] sm:$0xff]  ;;  %v1214_v26 = vmul.f32 %v4287_v46, %v4307_v3  ;;  %v4410_v31 = vmul.f32 %v4326_v25, %v4334_v33  ;;  %v4412_v32 = vpop.eup %3839 }
 0x10d   : > { %v1053_v60 = vadd.f32 %v1051_v39, %v1043_v38  ;;  %v1142_v30 = vadd.f32 %v1140_v5, %v1136_v57  ;;  %5735 = vst [vmem:[#allocation10_spill] sm:$0xff] %v4412_v32  ;;  %v1373_v3 = vmul.f32 %v4287_v46, %v4334_v33  ;;  %v3842_v38 = vpop.eup %3841  ;;  %v1215_v39 = vadd.f32 %v1213_v8, %v1207_v24 }
 0x10e   : > { %v1073_v2 = vadd.f32 %v1071_v21, %v1062_v42  ;;  %v1147_v6 = vadd.f32 %v1145_v43, %v1141_v59  ;;  %v4416_v21 = vmul.f32 %v4323_v23, %v4334_v33  ;;  %v1146_v42 = vmul.f32 %v1066_v53, %v4339_v50  ;;  %v1242_v33 = vld [vmem:[#allocation2 + $0x60] sm:$0xff] }
 0x10f   : > { %v1063_v14 = vadd.f32 %v1061_v63, %v1053_v60  ;;  %v1157_v43 = vmul.f32 %v1085_v55, %v4354_v0  ;;  %v1208_v57 = vmul.f32 %v1066_v53, %v4274_v34  ;;  %v1219_v59 = vmul.f32 %v1085_v55, %v4300_v58  ;;  %v3844_v5 = vpop.eup %3843 }
 0x110   : > { %v1083_v28 = vadd.f32 %v1081_v29, %v1073_v2  ;;  %v1153_v45 = vadd.f32 %v1151_v7, %v1147_v6  ;;  %v1092_v7 = vmul.f32 %v4386_v49, %v1086_v20  ;;  %v1162_v2 = vld [vmem:[#allocation2 + $0x48] sm:$0xff]  ;;  %v1148_v6 = vadd.f32 %v1146_v42, %v1142_v30 }
 0x111   : > { %v1074_v35 = vadd.f32 %v1072_v9, %v1063_v14  ;;  %v1170_v8 = vmul.f32 %v4326_v25, %v4346_v56  ;;  %v1231_v24 = vmul.f32 %v4323_v23, %v4346_v56  ;;  %v3846_v53 = vpop.eup %3845  ;;  %v898_v55 = vmul.f32 %v3838_v18, %v4239_v48 }
 0x112   : > { %v1093_v29 = vadd.f32 %v1091_v10, %v1083_v28  ;;  %v1159_v9 = vadd.f32 %v1157_v43, %v1153_v45  ;;  %v1216_v28 = vadd.f32 %v1214_v26, %v1208_v57  ;;  %v1220_v30 = vmul.f32 %v1086_v20, %v4300_v58  ;;  %v4448_v57 = vld [vmem:[#allocation2 + $0x68] sm:$0xff] }
 0x113   : > { %v1084_v60 = vadd.f32 %v1082_v36, %v1074_v35  ;;  %v1293_v36 = vmul.f32 %v4287_v46, %v4346_v56  ;;  %v1164_v45 = vmul.f32 %v1162_v2, %v4342_v52  ;;  %v1225_v35 = vmul.f32 %v1162_v2, %v4339_v50  ;;  %974 = vst [vmem:[#allocation2 + $0x51] sm:$0xff] %v898_v55 }
 0x114   : > { %v4426_v63 = vadd.f32 %v4406_v13, %v1093_v29  ;;  %v3848_v29 = vpop.eup %3847  ;;  %v1221_v42 = vadd.f32 %v1219_v59, %v1215_v39  ;;  %v1287_v56 = vmul.f32 %v1162_v2, %v4274_v34  ;;  %v1154_v48 = vadd.f32 %v1152_v4, %v1148_v6  ;;  %v4466_v6 = vld [vmem:[#allocation2 + $0x6a] sm:$0xff] }
 0x115   : > { %v1094_v10 = vadd.f32 %v1092_v7, %v1084_v60  ;;  %v1367_v60 = vmul.f32 %v1242_v33, %v4274_v34  ;;  %v1166_v22 = vadd.f32 %v1164_v45, %v1159_v9  ;;  %v4445_v18 = vmul.f32 %v3842_v38, %v4242_v51 }
 0x116   : > { %v1103_v14 = vsub.f32 0.0, %v4426_v63  ;;  %v4451_v39 = vmul.f32 %v3844_v5, %v4246_v54  ;;  %v4454_v59 = vmul.f32 %v3846_v53, %v4251_v62  ;;  %v1158_v9 = vmul.f32 %v1086_v20, %v4354_v0  ;;  %v1254_v62 = vld [vmem:[#allocation2 + $0x62] sm:$0xff] }
 0x117   : > { %v4440_v43 = vadd.f32 %v4406_v13, %v1094_v10  ;;  %v3850_v10 = vpop.eup %3849  ;;  %979 = vst [vmem:[#allocation2 + $0x91] sm:$0xff] %v4445_v18  ;;  %v4459_v51 = vmul.f32 %v3848_v29, %v4254_v1  ;;  %v4462_v4 = vadd.f32 1.0, %v4391_v16  ;;  %v1222_v38 = vadd.f32 %v1220_v30, %v1216_v28 }
 0x118   : > { %v1105_v7 = vmul.f32 1.442695, %v1103_v14  ;;  %v1227_v14 = vadd.f32 %v1225_v35, %v1221_v42  ;;  %v1244_v54 = vmul.f32 %v1242_v33, %v4342_v52  ;;  %v1305_v5 = vmul.f32 %v1242_v33, %v4339_v50  ;;  %977 = vst [vmem:[#allocation2 + $0x79] sm:$0xff] %v4451_v39  ;;  %980 = vst [vmem:[#allocation2 + $0x99] sm:$0xff] %v4454_v59 }
 0x119   : > { %v1104_v26 = vsub.f32 0.0, %v4440_v43  ;;  %v1375_v20 = vadd.f32 %v1373_v3, %v1367_v60  ;;  %v1295_v53 = vadd.f32 %v1293_v36, %v1287_v56  ;;  %v1245_v1 = vmul.f32 %v4448_v57, %v4342_v52  ;;  %978 = vst [vmem:[#allocation2 + $0x81] sm:$0xff] %v4459_v51 }
 0x11a   : > { %3851 = vpow2.f32 %v1105_v7  ;;  %v1251_v16 = vmul.f32 %v4326_v25, %v4351_v61  ;;  %v1172_v28 = vadd.f32 %v1170_v8, %v1166_v22  ;;  %v1160_v33 = vadd.f32 %v1158_v9, %v1154_v48  ;;  %v1163_v29 = vld [vmem:[#allocation2 + $0x50] sm:$0xff] }
 0x11b   : > { %v1107_v2 = vmul.f32 1.442695, %v1104_v26  ;;  %v4476_v30 = vmul.f32 %v3850_v10, %v4259_v11  ;;  %v1233_v45 = vadd.f32 %v1231_v24, %v1227_v14  ;;  %v1256_v35 = vmul.f32 %v4386_v49, %v1254_v62  ;;  %v1174_v42 = vld [vmem:[#allocation2 + $0x4a] sm:$0xff]  ;;  %v1175_v22 = vld [vmem:[#allocation2 + $0x52] sm:$0xff] }
 0x11c   : > { %v1257_v3 = vmul.f32 %v4386_v49, %v4466_v6  ;;  %v1306_v36 = vmul.f32 %v4448_v57, %v4339_v50  ;;  %v1165_v7 = vmul.f32 %v1163_v29, %v4342_v52  ;;  %v1171_v60 = vmul.f32 %v4326_v25, %v898_v55 }
 0x11d   : > { %3853 = vpow2.f32 %v1107_v2  ;;  %5736 = vst [vmem:[#allocation11_spill] sm:$0xff] %v4476_v30  ;;  %v1176_v8 = vmul.f32 %v4386_v49, %v1174_v42  ;;  %v1226_v11 = vmul.f32 %v1163_v29, %v4339_v50  ;;  %983 = vst [vmem:[#allocation2 + $0xc1] sm:$0xff] %v4476_v30  ;;  %v1237_v24 = vmul.f32 %v1174_v42, %v4354_v0 }
 0x11e   : > { %v1288_v56 = vmul.f32 %v1163_v29, %v4274_v34  ;;  %v1294_v48 = vmul.f32 %v4287_v46, %v898_v55  ;;  %v1299_v26 = vmul.f32 %v1174_v42, %v4300_v58  ;;  %v1167_v10 = vadd.f32 %v1165_v7, %v1160_v33 }
 0x11f   : > { %v1178_v9 = vadd.f32 %v1176_v8, %v1172_v28  ;;  %v1228_v14 = vadd.f32 %v1226_v11, %v1222_v38  ;;  %v1232_v2 = vmul.f32 %v4323_v23, %v898_v55  ;;  %v1177_v15 = vmul.f32 %v4386_v49, %v1175_v22 }
 0x120   : > { %v1239_v27 = vadd.f32 %v1237_v24, %v1233_v45  ;;  %v1296_v12 = vadd.f32 %v1294_v48, %v1288_v56  ;;  %v1301_v47 = vadd.f32 %v1299_v26, %v1295_v53  ;;  %v1173_v41 = vadd.f32 %v1171_v60, %v1167_v10  ;;  %v4502_v53 = vld [vmem:[#allocation2 + $0x78] sm:$0xff] }
 0x121   : > { %v4495_v30 = vadd.f32 %v4406_v13, %v1178_v9  ;;  %v1234_v32 = vadd.f32 %v1232_v2, %v1228_v14  ;;  %v1238_v29 = vmul.f32 %v1175_v22, %v4354_v0  ;;  %v1317_v44 = vmul.f32 %v1254_v62, %v4354_v0 }
 0x122   : > { %v1246_v42 = vadd.f32 %v1244_v54, %v1239_v27  ;;  %v1300_v28 = vmul.f32 %v1175_v22, %v4300_v58  ;;  %v1307_v38 = vadd.f32 %v1305_v5, %v1301_v47  ;;  %v1379_v55 = vmul.f32 %v1254_v62, %v4300_v58 }
 0x123   : > { %v1179_v33 = vadd.f32 %v1177_v15, %v1173_v41  ;;  %v1182_v45 = vsub.f32 0.0, %v4495_v30  ;;  %v1240_v7 = vadd.f32 %v1238_v29, %v1234_v32  ;;  %v1368_v8 = vmul.f32 %v4448_v57, %v4274_v34 }
 0x124   : > { %v1252_v11 = vadd.f32 %v4410_v31, %v1246_v42  ;;  %v1302_v24 = vadd.f32 %v1300_v28, %v1296_v12  ;;  %v1313_v27 = vadd.f32 %v4416_v21, %v1307_v38  ;;  %v1324_v32 = vmul.f32 %v4502_v53, %v4342_v52  ;;  %v4530_v42 = vld [vmem:[#allocation2 + $0x7a] sm:$0xff] }
 0x125   : > { %v4509_v47 = vadd.f32 %v4406_v13, %v1179_v33  ;;  %v1184_v5 = vmul.f32 1.442695, %v1182_v45  ;;  %v1247_v15 = vadd.f32 %v1245_v1, %v1240_v7  ;;  %v1385_v22 = vmul.f32 %v4502_v53, %v4339_v50  ;;  %v4542_v33 = vld [vmem:[#allocation2 + $0x90] sm:$0xff] }
 0x126   : > { %v1258_v41 = vadd.f32 %v1256_v35, %v1252_v11  ;;  %v1319_v62 = vadd.f32 %v1317_v44, %v1313_v27  ;;  %v1374_v31 = vmul.f32 %v4287_v46, %v4351_v61  ;;  %v1381_v12 = vadd.f32 %v1379_v55, %v1375_v20  ;;  %v4549_v27 = vld [vmem:[#allocation2 + $0x82] sm:$0xff] }
 0x127   : > { %v3852_v60 = vpop.eup %3851  ;;  %v1183_v21 = vsub.f32 0.0, %v4509_v47  ;;  %v1253_v57 = vadd.f32 %v1251_v16, %v1247_v15  ;;  %3855 = vpow2.f32 %v1184_v5  ;;  %v1330_v44 = vmul.f32 %v4326_v25, %v4451_v39 }
 0x128   : > { %v1109_v54 = vadd.f32 1.0, %v3852_v60  ;;  %v4519_v48 = vadd.f32 %v4406_v13, %v1258_v41  ;;  %v1326_v1 = vadd.f32 %v1324_v32, %v1319_v62  ;;  %v1308_v14 = vadd.f32 %v1306_v36, %v1302_v24  ;;  %v4534_v36 = vld [vmem:[#allocation2 + $0x80] sm:$0xff]  ;;  %v4561_v62 = vld [vmem:[#allocation2 + $0x98] sm:$0xff] }
 0x129   : > { %v1186_v26 = vmul.f32 1.442695, %v1183_v21  ;;  %v1259_v10 = vadd.f32 %v1257_v3, %v1253_v57  ;;  %v1387_v20 = vadd.f32 %v1385_v22, %v1381_v12  ;;  %v1312_v16 = vmul.f32 %v4323_v23, %v4351_v61 }
 0x12a   : > { %v3854_v56 = vpop.eup %3853  ;;  %3857 = vrcp.f32 %v1109_v54  ;;  %v1262_v9 = vsub.f32 0.0, %v4519_v48  ;;  %v1376_v2 = vadd.f32 %v1374_v31, %v1368_v8  ;;  %v1332_v38 = vadd.f32 %v1330_v44, %v1326_v1 }
 0x12b   : > { %v1110_v35 = vadd.f32 1.0, %v3854_v56  ;;  %3859 = vrcp.f32 %v4462_v4  ;;  %v4528_v29 = vadd.f32 %v4406_v13, %v1259_v10  ;;  %v1391_v3 = vmul.f32 %v4323_v23, %v4451_v39  ;;  %v4570_v56 = vld [vmem:[#allocation2 + $0x92] sm:$0xff]  ;;  %v3642_v10 = vpop.f32.mrf.mxu1 }
 0x12c   : > { %v1264_v28 = vmul.f32 1.442695, %v1262_v9  ;;  %v1318_v4 = vmul.f32 %v4466_v6, %v4354_v0  ;;  %v1380_v61 = vmul.f32 %v4466_v6, %v4300_v58  ;;  %v1314_v7 = vadd.f32 %v1312_v16, %v1308_v14  ;;  %v4577_v16 = vld [vmem:[#allocation2 + $0x9a] sm:$0xff] }
 0x12d   : > { %3861 = vrcp.f32 %v1110_v35  ;;  %v1263_v55 = vsub.f32 0.0, %v4528_v29  ;;  %v1393_v45 = vadd.f32 %v1391_v3, %v1387_v20  ;;  %v1336_v60 = vmul.f32 %v4386_v49, %v4530_v42 }
 0x12e   : > { %3863 = vpow2.f32 %v1186_v26  ;;  %v1382_v8 = vadd.f32 %v1380_v61, %v1376_v2  ;;  %v1325_v24 = vmul.f32 %v4534_v36, %v4342_v52  ;;  %v1320_v6 = vadd.f32 %v1318_v4, %v1314_v7 }
 0x12f   : > { %3865 = vpow2.f32 %v4357_v40  ;;  %v1266_v11 = vmul.f32 1.442695, %v1263_v55  ;;  %v1338_v54 = vadd.f32 %v1336_v60, %v1332_v38  ;;  %v1386_v40 = vmul.f32 %v4534_v36, %v4339_v50 }
 0x130   : > { %3867 = vpow2.f32 %v1264_v28  ;;  %v1397_v5 = vmul.f32 %v4530_v42, %v4354_v0  ;;  %v1404_v15 = vmul.f32 %v4542_v33, %v4342_v52  ;;  %v1331_v41 = vmul.f32 %v4326_v25, %v4459_v51 }
 0x131   : > { %3869 = vpow2.f32 %v4371_v17  ;;  %v1392_v17 = vmul.f32 %v4323_v23, %v4459_v51  ;;  %v1327_v32 = vadd.f32 %v1325_v24, %v1320_v6  ;;  %v4564_v22 = vadd.f32 %v4406_v13, %v1338_v54 }
 0x132   : > { %3871 = vpow2.f32 %v1266_v11  ;;  %v1388_v31 = vadd.f32 %v1386_v40, %v1382_v8  ;;  %v1399_v12 = vadd.f32 %v1397_v5, %v1393_v45  ;;  %v1337_v21 = vmul.f32 %v4386_v49, %v4549_v27 }
 0x133   : > { %v1398_v57 = vmul.f32 %v4549_v27, %v4354_v0  ;;  %v1333_v1 = vadd.f32 %v1331_v41, %v1327_v32  ;;  %v1342_v44 = vsub.f32 0.0, %v4564_v22  ;;  %v1410_v14 = vmul.f32 %v4326_v25, %v4445_v18 }
 0x134   : > { %v1394_v35 = vadd.f32 %v1392_v17, %v1388_v31  ;;  %v1406_v26 = vadd.f32 %v1404_v15, %v1399_v12  ;;  %v3856_v9 = vpop.eup %3855  ;;  %v1405_v20 = vmul.f32 %v4561_v62, %v4342_v52  ;;  %v1416_v55 = vmul.f32 %v4386_v49, %v4570_v56 }
 0x135   : > { %v1188_v28 = vadd.f32 1.0, %v3856_v9  ;;  %v1339_v38 = vadd.f32 %v1337_v21, %v1333_v1  ;;  %v1344_v3 = vmul.f32 1.442695, %v1342_v44  ;;  %v4582_v7 = vadd.f32 %v3642_v10, %v4208_v19  ;;  %v5737_v44 = vld [vmem:[#allocation9_spill] sm:$0xff] }
 0x136   : > { %v1400_v4 = vadd.f32 %v1398_v57, %v1394_v35  ;;  %v1412_v45 = vadd.f32 %v1410_v14, %v1406_v26  ;;  %v1411_v8 = vmul.f32 %v4326_v25, %v4454_v59  ;;  %v1417_v11 = vmul.f32 %v4386_v49, %v4577_v16  ;;  %v673_v35 = vpop.f32.mrf.mxu1 }
 0x137   : > { %v3858_v2 = vpop.eup %3857  ;;  %v4589_v24 = vadd.f32 %v4406_v13, %v1339_v38  ;;  %3873 = vpow2.f32 %v1344_v3  ;;  %v1447_v3 = vmul.f32 %v4502_v53, %v4274_v34 }
 0x138   : > { %v3860_v61 = vpop.eup %3859  ;;  %v1407_v6 = vadd.f32 %v1405_v20, %v1400_v4  ;;  %v1113_v40 = vmul.f32 %v3858_v2, %v4426_v63  ;;  %v1418_v15 = vadd.f32 %v1416_v55, %v1412_v45  ;;  %3875 = vrcp.f32 %v1188_v28 }
 0x139   : > { %v1343_v32 = vsub.f32 0.0, %v4589_v24  ;;  %v4598_v1 = vmul.f32 %v3860_v61, %v4277_v37  ;;  %v844_v63 = vadd.f32 1.0, %v5737_v44  ;;  %v5738_v37 = vld [vmem:[#allocation10_spill] sm:$0xff]  ;;  %v3645_v61 = vpop.f32.mrf.mxu1  ;;  %v752_v45 = vsub.f32 0.0, %v4582_v7 }
 0x13a   : > { %v3862_v60 = vpop.eup %3861  ;;  %v1413_v31 = vadd.f32 %v1411_v8, %v1407_v6  ;;  %v4595_v57 = vadd.f32 %v4406_v13, %v1418_v15  ;;  %v842_v28 = vadd.f32 1.0, %v5738_v37  ;;  %v1453_v8 = vmul.f32 %v4287_v46, %v4451_v39 }
 0x13b   : > { %v3864_v54 = vpop.eup %3863  ;;  %v1114_v5 = vmul.f32 %v3862_v60, %v4440_v43  ;;  %v1346_v10 = vmul.f32 1.442695, %v1343_v32  ;;  %981 = vst [vmem:[#allocation2 + $0xa9] sm:$0xff] %v4598_v1  ;;  %v4612_v60 = vadd.f32 %v4208_v19, %v673_v35  ;;  %v1448_v15 = vmul.f32 %v4534_v36, %v4274_v34 }
 0x13c   : > { %v3866_v41 = vpop.eup %3865  ;;  %v1189_v17 = vadd.f32 1.0, %v3864_v54  ;;  %v1419_v9 = vadd.f32 %v1417_v11, %v1413_v31  ;;  %v1422_v14 = vsub.f32 0.0, %v4595_v57  ;;  %v1459_v11 = vmul.f32 %v4530_v42, %v4300_v58 }
 0x13d   : > { %v3868_v12 = vpop.eup %3867  ;;  %v3488_v21 = vpack.c.bf16 %v1114_v5, %v1113_v40  ;;  %v847_v6 = vadd.f32 1.0, %v3866_v41  ;;  %v1455_v40 = vadd.f32 %v1453_v8, %v1447_v3  ;;  %v686_v5 = vpop.f32.mrf.mxu1  ;;  %v750_v31 = vsub.f32 0.0, %v4612_v60 }
 0x13e   : > { %v3870_v43 = vpop.eup %3869  ;;  %3877 = vrcp.f32 %v1189_v17  ;;  %v1268_v26 = vadd.f32 1.0, %v3868_v12  ;;  %v4604_v2 = vadd.f32 %v4406_v13, %v1419_v9  ;;  %v1424_v4 = vmul.f32 1.442695, %v1422_v14 }
 0x13f   : > { %3489 = vst [vmem:[#allocation3] sm:$0xff] %v3488_v21   ;;  %v3872_v20 = vpop.eup %3871  ;;  %v845_v54 = vadd.f32 1.0, %v3870_v43  ;;  %v803_v17 = vmul.f32 1.442695, %v752_v45  ;;  %v1461_v32 = vadd.f32 %v1459_v11, %v1455_v40  ;;  %v1454_v42 = vmul.f32 %v4287_v46, %v4459_v51  ;;  %v3646_v44 = vpop.f32.mrf.mxu1  ;;  %v4652_v11 = vld [vmem:[%s5694_s2] ss:$0 sm:$0xff] }
 0x140   : > { %3879 = vrcp.f32 %v1268_v26  ;;  %v1269_v38 = vadd.f32 1.0, %v3872_v20  ;;  %v1423_v55 = vsub.f32 0.0, %v4604_v2  ;;  %v4624_v41 = vadd.f32 %v3645_v61, %v4208_v19  ;;  %5739 = vst [vmem:[#allocation9_spill] sm:$0xff] %v4652_v11  ;;  %v5740_v40 = vld [vmem:[#allocation5_spill] sm:$0xff] }
 0x141   : > { %3881 = vpow2.f32 %v1346_v10  ;;  %v1465_v21 = vmul.f32 %v4542_v33, %v4339_v50  ;;  %v1527_v36 = vmul.f32 %v4542_v33, %v4274_v34  ;;  %v1533_v43 = vmul.f32 %v4287_v46, %v4445_v18 }
 0x142   : > { %3883 = vrcp.f32 %v844_v63  ;;  %v1426_v53 = vmul.f32 1.442695, %v1423_v55  ;;  %v1456_v63 = vadd.f32 %v1454_v42, %v1448_v15  ;;  %v4632_v10 = vmul.f32 1.442695, %v750_v31  ;;  %v4668_v31 = vld [vmem:[#allocation2 + $0xa8] sm:$0xff] }
 0x143   : > { %3885 = vrcp.f32 %v1269_v38  ;;  %v1467_v51 = vadd.f32 %v1465_v21, %v1461_v32  ;;  %v1460_v14 = vmul.f32 %v4549_v27, %v4300_v58  ;;  %v755_v33 = vsub.f32 0.0, %v4624_v41 }
 0x144   : > { %3887 = vpow2.f32 %v1424_v4  ;;  %v3874_v39 = vpop.eup %3873  ;;  %v1471_v37 = vmul.f32 %v4323_v23, %v4445_v18  ;;  %v1472_v38 = vmul.f32 %v4323_v23, %v4454_v59  ;;  %v1534_v3 = vmul.f32 %v4287_v46, %v4454_v59  ;;  %v689_v4 = vpop.f32.mrf.mxu1 }
 0x145   : > { %3889 = vrcp.f32 %v842_v28  ;;  %v3876_v12 = vpop.eup %3875  ;;  %v1348_v26 = vadd.f32 1.0, %v3874_v39  ;;  %v1535_v28 = vadd.f32 %v1533_v43, %v1527_v36  ;;  %v1528_v27 = vmul.f32 %v4561_v62, %v4274_v34 }
 0x146   : > { %3891 = vpow2.f32 %v1426_v53  ;;  %v1192_v19 = vmul.f32 %v3876_v12, %v4495_v30  ;;  %v1462_v55 = vadd.f32 %v1460_v14, %v1456_v63  ;;  %v1473_v18 = vadd.f32 %v1471_v37, %v1467_v51  ;;  %v3649_v42 = vpop.f32.mrf.mxu1 }
 0x147   : > { %3893 = vrcp.f32 %v847_v6  ;;  %v4655_v59 = vadd.f32 %v4652_v11, %v686_v5  ;;  %v1477_v53 = vmul.f32 %v4570_v56, %v4354_v0  ;;  %v4671_v39 = vadd.f32 %v4652_v11, %v3646_v44 }
 0x148   : > { %3895 = vrcp.f32 %v845_v54  ;;  %v1540_v54 = vmul.f32 %v4577_v16, %v4300_v58  ;;  %v4675_v63 = vadd.f32 %v4652_v11, %v689_v4  ;;  %v4684_v14 = vadd.f32 %v4652_v11, %v3649_v42  ;;  %v5742_v4 = vld [vmem:[#allocation7_spill] sm:$0xff] }
 0x149   : > { %3897 = vpow2.f32 %v803_v17  ;;  %v1479_v43 = vadd.f32 %v1477_v53, %v1473_v18  ;;  %v753_v51 = vsub.f32 0.0, %v4655_v59 }
 0x14a   : > { %3899 = vrcp.f32 %v1348_v26 }
 0x14b   : > { %v3878_v35 = vpop.eup %3877 }
 0x14c   : > { %v1193_v9 = vmul.f32 %v3878_v35, %v4509_v47  ;;  %v1466_v47 = vmul.f32 %v4561_v62, %v4339_v50  ;;  %v1539_v62 = vmul.f32 %v4570_v56, %v4300_v58  ;;  %v1536_v56 = vadd.f32 %v1534_v3, %v1528_v27  ;;  %v5743_v27 = vld [vmem:[#allocation8_spill] sm:$0xff] }
 0x14d   : > { %v3880_v20 = vpop.eup %3879  ;;  %v1484_v3 = vmul.f32 %v4668_v31, %v4342_v52 }
 0x14e   : > { %v3882_v30 = vpop.eup %3881  ;;  %v3493_v61 = vpack.c.bf16 %v1193_v9, %v1192_v19  ;;  %v1272_v32 = vmul.f32 %v3880_v20, %v4519_v48  ;;  %v1468_v36 = vadd.f32 %v1466_v47, %v1462_v55  ;;  %v1545_v9 = vmul.f32 %v4668_v31, %v4339_v50  ;;  %v702_v47 = vpop.f32.mrf.mxu1 }
 0x14f   : > { %v3884_v45 = vpop.eup %3883  ;;  %v1349_v8 = vadd.f32 1.0, %v3882_v30  ;;  %v1541_v37 = vadd.f32 %v1539_v62, %v1535_v28  ;;  %v1478_v28 = vmul.f32 %v4577_v16, %v4354_v0  ;;  %v1486_v53 = vadd.f32 %v1484_v3, %v1479_v43 }
 0x150   : > { %v3886_v6 = vpop.eup %3885  ;;  %3494 = vst [vmem:[#allocation3 + $0x8] sm:$0xff] %v3493_v61   ;;  %v4664_v15 = vmul.f32 %v3884_v45, %v5740_v40  ;;  %v756_v61 = vsub.f32 0.0, %v4671_v39  ;;  %v809_v45 = vmul.f32 1.442695, %v755_v33  ;;  %v1474_v62 = vadd.f32 %v1472_v38, %v1468_v36  ;;  %v3650_v38 = vpop.f32.mrf.mxu1  ;;  %v5745_v36 = vld [vmem:[#allocation11_spill] sm:$0xff] }
 0x151   : > { %v3888_v17 = vpop.eup %3887  ;;  %v1273_v5 = vmul.f32 %v3886_v6, %v4528_v29  ;;  %3901 = vrcp.f32 %v1349_v8  ;;  %v5741_v29 = vld [vmem:[#allocation6_spill] sm:$0xff]  ;;  %v754_v8 = vsub.f32 0.0, %v4675_v63  ;;  %v805_v40 = vmul.f32 1.442695, %v753_v51 }
 0x152   : > { %v3890_v12 = vpop.eup %3889  ;;  %v1428_v21 = vadd.f32 1.0, %v3888_v17  ;;  %984 = vst [vmem:[#allocation2 + $0xc9] sm:$0xff] %v4664_v15  ;;  %v4699_v6 = vld [vmem:[#allocation2 + $0xc0] sm:$0xff]  ;;  %v1542_v17 = vadd.f32 %v1540_v54, %v1536_v56  ;;  %v759_v33 = vsub.f32 0.0, %v4684_v14  ;;  %v811_v16 = vmul.f32 1.442695, %v756_v61 }
 0x153   : > { %v3892_v35 = vpop.eup %3891  ;;  %v3498_v48 = vpack.c.bf16 %v1273_v5, %v1272_v32  ;;  %v4678_v26 = vmul.f32 %v3890_v12, %v5741_v29  ;;  %v1490_v32 = vmul.f32 %v4326_v25, %v4598_v1  ;;  %v1547_v5 = vadd.f32 %v1545_v9, %v1541_v37 }
 0x154   : > { %v3894_v44 = vpop.eup %3893  ;;  %v1429_v19 = vadd.f32 1.0, %v3892_v35  ;;  %3903 = vrcp.f32 %v1428_v21  ;;  %v4708_v12 = vadd.f32 %v4652_v11, %v702_v47  ;;  %v1564_v21 = vmul.f32 %v4699_v6, %v4342_v52 }
 0x155   : > { %v3896_v20 = vpop.eup %3895  ;;  %3499 = vst [vmem:[#allocation3 + $0x10] sm:$0xff] %v3498_v48   ;;  %982 = vst [vmem:[#allocation2 + $0xb1] sm:$0xff] %v4678_v26  ;;  %v4690_v30 = vmul.f32 %v3894_v44, %v5742_v4  ;;  %v1551_v54 = vmul.f32 %v4323_v23, %v4598_v1  ;;  %v807_v56 = vmul.f32 1.442695, %v754_v8  ;;  %v1570_v35 = vmul.f32 %v4326_v25, %v5745_v36 }
 0x156   : > { %3905 = vrcp.f32 %v1429_v19  ;;  %v4694_v55 = vmul.f32 %v3896_v20, %v5743_v27  ;;  %v3898_v18 = vpop.eup %3897  ;;  %5744 = vst [vmem:[#allocation10_spill] sm:$0xff] %v4708_v12  ;;  %v1492_v48 = vadd.f32 %v1490_v32, %v1486_v53  ;;  %v1480_v43 = vadd.f32 %v1478_v28, %v1474_v62 }
 0x157   : > { %987 = vst [vmem:[#allocation2 + $0xf1] sm:$0xff] %v4690_v30  ;;  %v848_v42 = vadd.f32 1.0, %v3898_v18  ;;  %3907 = vpow2.f32 %v4632_v10  ;;  %v3900_v10 = vpop.eup %3899  ;;  %v1553_v29 = vadd.f32 %v1551_v54, %v1547_v5  ;;  %v817_v19 = vmul.f32 1.442695, %v759_v33 }
 0x158   : > { %985 = vst [vmem:[#allocation2 + $0xd9] sm:$0xff] %v4694_v55  ;;  %3909 = vpow2.f32 %v809_v45  ;;  %v4721_v9 = vadd.f32 %v4652_v11, %v3650_v38  ;;  %v757_v3 = vsub.f32 0.0, %v4708_v12  ;;  %v1491_v61 = vmul.f32 %v4326_v25, %v4678_v26 }
 0x159   : > { %3911 = vpow2.f32 %v805_v40  ;;  %v1352_v8 = vmul.f32 %v3900_v10, %v4564_v22  ;;  %v4738_v62 = vld [vmem:[#allocation2 + $0xc8] sm:$0xff]  ;;  %v1552_v5 = vmul.f32 %v4323_v23, %v4678_v26 }
 0x15a   : > { %3913 = vrcp.f32 %v848_v42  ;;  %5746 = vst [vmem:[#allocation5_spill] sm:$0xff] %v4721_v9  ;;  %v4740_v40 = vld [vmem:[#allocation2 + $0xc2] sm:$0xff]  ;;  %v760_v42 = vsub.f32 0.0, %v4721_v9 }
 0x15b   : > { %3915 = vpow2.f32 %v811_v16 }
 0x15c   : > { %v4716_v51 = vld [vmem:[#allocation2 + $0xb0] sm:$0xff]  ;;  %3917 = vpow2.f32 %v807_v56 }
 0x15d   : > { %v4718_v44 = vld [vmem:[#allocation2 + $0xaa] sm:$0xff]  ;;  %v1485_v20 = vmul.f32 %v4716_v51, %v4342_v52  ;;  %v4730_v47 = vld [vmem:[#allocation2 + $0xb2] sm:$0xff]  ;;  %v1546_v27 = vmul.f32 %v4716_v51, %v4339_v50  ;;  %3919 = vpow2.f32 %v817_v19 }
 0x15e   : > { %v1496_v37 = vmul.f32 %v4386_v49, %v4718_v44  ;;  %v3902_v4 = vpop.eup %3901  ;;  %v1557_v45 = vmul.f32 %v4718_v44, %v4354_v0  ;;  %v1497_v22 = vmul.f32 %v4386_v49, %v4730_v47 }
 0x15f   : > { %v1353_v18 = vmul.f32 %v3902_v4, %v4589_v24  ;;  %v1487_v28 = vadd.f32 %v1485_v20, %v1480_v43  ;;  %v1548_v32 = vadd.f32 %v1546_v27, %v1542_v17  ;;  %v705_v43 = vpop.f32.mrf.mxu1  ;;  %v1576_v20 = vmul.f32 %v4386_v49, %v4740_v40 }
 0x160   : > { %v1498_v53 = vadd.f32 %v1496_v37, %v1492_v48  ;;  %v1559_v33 = vadd.f32 %v1557_v45, %v1553_v29  ;;  %v1558_v48 = vmul.f32 %v4730_v47, %v4354_v0  ;;  %v1565_v29 = vmul.f32 %v4738_v62, %v4342_v52 }
 0x161   : > { %v3904_v16 = vpop.eup %3903  ;;  %v3503_v38 = vpack.c.bf16 %v1353_v18, %v1352_v8  ;;  %v1493_v54 = vadd.f32 %v1491_v61, %v1487_v28  ;;  %v1554_v56 = vadd.f32 %v1552_v5, %v1548_v32  ;;  %v813_v28 = vmul.f32 1.442695, %v757_v3 }
 0x162   : > { %v4748_v24 = vadd.f32 %v4406_v13, %v1498_v53  ;;  %v1566_v17 = vadd.f32 %v1564_v21, %v1559_v33  ;;  %v1432_v61 = vmul.f32 %v3904_v16, %v4595_v57  ;;  %v4759_v21 = vld [vmem:[#allocation2 + $0xca] sm:$0xff]  ;;  %v1571_v5 = vmul.f32 %v4326_v25, %v4664_v15 }
 0x163   : > { %v3906_v10 = vpop.eup %3905  ;;  %3504 = vst [vmem:[#allocation3 + $0x18] sm:$0xff] %v3503_v38   ;;  %v1499_v37 = vadd.f32 %v1497_v22, %v1493_v54  ;;  %v1560_v45 = vadd.f32 %v1558_v48, %v1554_v56  ;;  %v3653_v54 = vpop.f32.mrf.mxu1  ;;  %v1577_v3 = vmul.f32 %v4386_v49, %v4759_v21  ;;  %v819_v48 = vmul.f32 1.442695, %v760_v42 }
 0x164   : > { %v1502_v4 = vsub.f32 0.0, %v4748_v24  ;;  %v1433_v27 = vmul.f32 %v3906_v10, %v4604_v2  ;;  %v1572_v8 = vadd.f32 %v1570_v35, %v1566_v17  ;;  %v3908_v53 = vpop.eup %3907  ;;  %v1607_v2 = vmul.f32 %v4668_v31, %v4274_v34 }
 0x165   : > { %v4762_v19 = vadd.f32 %v4406_v13, %v1499_v37  ;;  %v1567_v33 = vadd.f32 %v1565_v29, %v1560_v45  ;;  %v3910_v57 = vpop.eup %3909  ;;  %v1613_v10 = vmul.f32 %v4287_v46, %v4598_v1 }
 0x166   : > { %v1504_v18 = vmul.f32 1.442695, %v1502_v4  ;;  %v3508_v32 = vpack.c.bf16 %v1433_v27, %v1432_v61  ;;  %v1578_v38 = vadd.f32 %v1576_v20, %v1572_v8  ;;  %v3912_v16 = vpop.eup %3911  ;;  %v846_v20 = vadd.f32 1.0, %v3908_v53  ;;  %v718_v27 = vpop.f32.mrf.mxu1 }
 0x167   : > { %v1503_v35 = vsub.f32 0.0, %v4762_v19  ;;  %v1573_v22 = vadd.f32 %v1571_v5, %v1567_v33  ;;  %v3914_v17 = vpop.eup %3913  ;;  %v1619_v61 = vmul.f32 %v4718_v44, %v4300_v58  ;;  %v851_v42 = vadd.f32 1.0, %v3910_v57 }
 0x168   : > { %3921 = vpow2.f32 %v1504_v18  ;;  %3509 = vst [vmem:[#allocation3 + $0x20] sm:$0xff] %v3508_v32   ;;  %v4772_v56 = vadd.f32 %v4406_v13, %v1578_v38  ;;  %v3916_v31 = vpop.eup %3915  ;;  %v4780_v49 = vmul.f32 %v3914_v17, %v4582_v7  ;;  %v1615_v8 = vadd.f32 %v1613_v10, %v1607_v2 }
 0x169   : > { %v1506_v29 = vmul.f32 1.442695, %v1503_v35  ;;  %3923 = vpow2.f32 %v813_v28  ;;  %v1579_v37 = vadd.f32 %v1577_v3, %v1573_v22  ;;  %v3918_v45 = vpop.eup %3917  ;;  %v4787_v28 = vadd.f32 %v4652_v11, %v705_v43 }
 0x16a   : > { %v1582_v4 = vsub.f32 0.0, %v4772_v56  ;;  %988 = vst [vmem:[#allocation2 + $0xf9] sm:$0xff] %v4780_v49  ;;  %v4790_v44 = vadd.f32 %v4652_v11, %v3653_v54  ;;  %v4793_v7 = vadd.f32 %v4652_v11, %v718_v27  ;;  %v1621_v32 = vadd.f32 %v1619_v61, %v1615_v8  ;;  %v3920_v5 = vpop.eup %3919 }
 0x16b   : > { %3925 = vpow2.f32 %v1506_v29  ;;  %v4783_v1 = vadd.f32 %v4406_v13, %v1579_v37  ;;  %5747 = vst [vmem:[#allocation6_spill] sm:$0xff] %v4787_v28  ;;  %v849_v13 = vadd.f32 1.0, %v3912_v16  ;;  %v1608_v33 = vmul.f32 %v4716_v51, %v4274_v34  ;;  %v3654_v29 = vpop.f32.mrf.mxu1 }
 0x16c   : > { %v1584_v18 = vmul.f32 1.442695, %v1582_v4  ;;  %3927 = vpow2.f32 %v819_v48  ;;  %5748 = vst [vmem:[#allocation7_spill] sm:$0xff] %v4790_v44  ;;  %5749 = vst [vmem:[#allocation8_spill] sm:$0xff] %v4793_v7  ;;  %v852_v38 = vadd.f32 1.0, %v3916_v31  ;;  %v850_v57 = vadd.f32 1.0, %v3918_v45 }
 0x16d   : > { %3929 = vrcp.f32 %v846_v20  ;;  %v1583_v53 = vsub.f32 0.0, %v4783_v1  ;;  %v1625_v43 = vmul.f32 %v4699_v6, %v4339_v50  ;;  %v1687_v2 = vmul.f32 %v4699_v6, %v4274_v34 }
 0x16e   : > { %3931 = vpow2.f32 %v1584_v18  ;;  %v1614_v35 = vmul.f32 %v4287_v46, %v4678_v26  ;;  %v758_v16 = vsub.f32 0.0, %v4787_v28  ;;  %v1693_v51 = vmul.f32 %v4287_v46, %v5745_v36 }
 0x16f   : > { %3933 = vrcp.f32 %v851_v42  ;;  %v1586_v54 = vmul.f32 1.442695, %v1583_v53  ;;  %v1627_v3 = vadd.f32 %v1625_v43, %v1621_v32  ;;  %v855_v22 = vadd.f32 1.0, %v3920_v5  ;;  %v1642_v42 = vld [vmem:[#allocation2 + $0xd8] sm:$0xff] }
 0x170   : > { %3935 = vrcp.f32 %v849_v13  ;;  %v1616_v48 = vadd.f32 %v1614_v35, %v1608_v33  ;;  %v763_v17 = vsub.f32 0.0, %v4790_v44  ;;  %v761_v10 = vsub.f32 0.0, %v4793_v7 }
 0x171   : > { %3937 = vrcp.f32 %v852_v38  ;;  %v1631_v26 = vmul.f32 %v4323_v23, %v5745_v36  ;;  %v1695_v20 = vadd.f32 %v1693_v51, %v1687_v2  ;;  %v1620_v37 = vmul.f32 %v4730_v47, %v4300_v58  ;;  %v1722_v51 = vld [vmem:[#allocation2 + $0xf0] sm:$0xff] }
 0x172   : > { %3939 = vpow2.f32 %v1586_v54  ;;  %v4813_v4 = vmul.f32 1.442695, %v758_v16  ;;  %v1688_v27 = vmul.f32 %v4738_v62, %v4274_v34  ;;  %v4820_v8 = vadd.f32 %v4652_v11, %v3654_v29 }
 0x173   : > { %3941 = vrcp.f32 %v850_v57  ;;  %v1633_v45 = vadd.f32 %v1631_v26, %v1627_v3  ;;  %v1699_v36 = vmul.f32 %v4740_v40, %v4300_v58  ;;  %v1622_v18 = vadd.f32 %v1620_v37, %v1616_v48 }
 0x174   : > { %3943 = vrcp.f32 %v855_v22  ;;  %v4824_v53 = vmul.f32 1.442695, %v763_v17  ;;  %v4826_v47 = vmul.f32 1.442695, %v761_v10  ;;  %v1632_v13 = vmul.f32 %v4323_v23, %v4664_v15 }
 0x175   : > { %v3922_v6 = vpop.eup %3921  ;;  %v1637_v5 = vmul.f32 %v4740_v40, %v4354_v0  ;;  %v1694_v33 = vmul.f32 %v4287_v46, %v4664_v15  ;;  %v1626_v57 = vmul.f32 %v4738_v62, %v4339_v50  ;;  %v4838_v54 = vmul.f32 %v4326_v25, %v4690_v30 }
 0x176   : > { %v1508_v31 = vadd.f32 1.0, %v3922_v6  ;;  %v4815_v61 = vpop.eup %3923  ;;  %5750 = vst [vmem:[#allocation11_spill] sm:$0xff] %v4824_v53  ;;  %5751 = vst [vmem:[#allocation12_spill] sm:$0xff] %v4826_v47  ;;  %v1705_v2 = vmul.f32 %v1642_v42, %v4339_v50  ;;  %v4843_v40 = vmul.f32 %v4323_v23, %v4690_v30  ;;  %v1853_v15 = vmul.f32 %v4287_v46, %v4690_v30 }
 0x177   : > { %v1696_v16 = vadd.f32 %v1694_v33, %v1688_v27  ;;  %v1639_v3 = vadd.f32 %v1637_v5, %v1633_v45  ;;  %v1701_v62 = vadd.f32 %v1699_v36, %v1695_v20  ;;  %v1628_v48 = vadd.f32 %v1626_v57, %v1622_v18 }
 0x178   : > { %v3926_v32 = vpop.eup %3925  ;;  %3945 = vrcp.f32 %v1508_v31  ;;  %v1700_v29 = vmul.f32 %v4759_v21, %v4300_v58  ;;  %v1644_v26 = vmul.f32 %v1642_v42, %v4342_v52  ;;  %v1650_v31 = vmul.f32 %v4326_v25, %v4694_v55 }
 0x179   : > { %v3928_v38 = vpop.eup %3927  ;;  %v1509_v43 = vadd.f32 1.0, %v3926_v32  ;;  %v1847_v30 = vmul.f32 %v1722_v51, %v4274_v34  ;;  %v1707_v27 = vadd.f32 %v1705_v2, %v1701_v62  ;;  %v1767_v20 = vmul.f32 %v1642_v42, %v4274_v34  ;;  %v4879_v62 = vld [vmem:[#allocation2 + $0xfa] sm:$0xff] }
 0x17a   : > { %v3930_v35 = vpop.eup %3929  ;;  %v1646_v36 = vadd.f32 %v1644_v26, %v1639_v3  ;;  %v1711_v18 = vmul.f32 %v4323_v23, %v4694_v55  ;;  %v1773_v32 = vmul.f32 %v4287_v46, %v4694_v55  ;;  %v1638_v42 = vmul.f32 %v4759_v21, %v4354_v0 }
 0x17b   : > { %v3932_v22 = vpop.eup %3931  ;;  %3947 = vrcp.f32 %v1509_v43  ;;  %v4848_v17 = vmul.f32 %v3930_v35, %v4612_v60  ;;  %v1702_v57 = vadd.f32 %v1700_v29, %v1696_v16  ;;  %v1634_v43 = vadd.f32 %v1632_v13, %v1628_v48  ;;  %v1734_v13 = vld [vmem:[#allocation2 + $0xf2] sm:$0xff] }
 0x17c   : > { %v3934_v10 = vpop.eup %3933  ;;  %v1588_v6 = vadd.f32 1.0, %v3932_v22  ;;  %v1724_v3 = vmul.f32 %v1722_v51, %v4342_v52  ;;  %v1785_v55 = vmul.f32 %v1722_v51, %v4339_v50  ;;  %v4877_v22 = vadd.f32 %v1853_v15, %v1847_v30 }
 0x17d   : > { %v3936_v37 = vpop.eup %3935  ;;  %986 = vst [vmem:[#allocation2 + $0xe1] sm:$0xff] %v4848_v17  ;;  %v4859_v60 = vmul.f32 %v3934_v10, %v4624_v41  ;;  %v1713_v21 = vadd.f32 %v1711_v18, %v1707_v27  ;;  %v1775_v16 = vadd.f32 %v1773_v32, %v1767_v20  ;;  %v1652_v48 = vadd.f32 %v1650_v31, %v1646_v36  ;;  %v4903_v31 = vld [vmem:[%s5695_s3 + $0x8] ss:$0 sm:$0xff] }
 0x17e   : > { %v3938_v45 = vpop.eup %3937  ;;  %v4866_v5 = vmul.f32 %v3936_v37, %v4655_v59  ;;  %3949 = vrcp.f32 %v1588_v6  ;;  %v1723_v59 = vld [vmem:[#allocation2 + $0xf8] sm:$0xff]  ;;  %v4887_v51 = vmul.f32 %v4326_v25, %v4780_v49  ;;  %v4891_v15 = vmul.f32 %v4287_v46, %v4780_v49 }
 0x17f   : > { %5752 = vst [vmem:[#allocation13_spill] sm:$0xff] %v4859_v60  ;;  %v3940_v33 = vpop.eup %3939  ;;  %991 = vst [vmem:[#allocation2 + $0x121] sm:$0xff] %v4859_v60  ;;  %v4872_v41 = vmul.f32 %v3938_v45, %v4671_v39  ;;  %v1725_v29 = vmul.f32 %v1723_v59, %v4342_v52  ;;  %v1640_v6 = vadd.f32 %v1638_v42, %v1634_v43  ;;  %v4896_v26 = vadd.f32 1.0, %v4815_v61 }
 0x180   : > { %v3942_v2 = vpop.eup %3941  ;;  %v1589_v35 = vadd.f32 1.0, %v3940_v33  ;;  %989 = vst [vmem:[#allocation2 + $0x109] sm:$0xff] %v4866_v5  ;;  %v1736_v37 = vmul.f32 %v4903_v31, %v1734_v13  ;;  %v4908_v30 = vmul.f32 %v4903_v31, %v4879_v62  ;;  %v4911_v27 = vmul.f32 %v1723_v59, %v4339_v50 }
 0x181   : > { %5753 = vst [vmem:[#allocation14_spill] sm:$0xff] %v4872_v41  ;;  %992 = vst [vmem:[#allocation2 + $0x129] sm:$0xff] %v4872_v41  ;;  %v4883_v39 = vmul.f32 %v3942_v2, %v4675_v63  ;;  %v3944_v10 = vpop.eup %3943  ;;  %v4898_v63 = vadd.f32 1.0, %v3928_v38  ;;  %v1797_v36 = vmul.f32 %v1734_v13, %v4354_v0  ;;  %v1651_v32 = vmul.f32 %v4326_v25, %v4848_v17 }
 0x182   : > { %3951 = vrcp.f32 %v1589_v35  ;;  %v4914_v61 = vmul.f32 %v3944_v10, %v4684_v14  ;;  %v1712_v2 = vmul.f32 %v4323_v23, %v4848_v17  ;;  %v1774_v44 = vmul.f32 %v4287_v46, %v4848_v17 }
 0x183   : > { %990 = vst [vmem:[#allocation2 + $0x111] sm:$0xff] %v4883_v39 }
 0x184   : > { %v1643_v20 = vld [vmem:[#allocation2 + $0xe0] sm:$0xff]  ;;  %995 = vst [vmem:[#allocation2 + $0x151] sm:$0xff] %v4914_v61 }
 0x185   : > { %v1654_v45 = vld [vmem:[#allocation2 + $0xda] sm:$0xff]  ;;  %v3946_v38 = vpop.eup %3945  ;;  %v1645_v18 = vmul.f32 %v1643_v20, %v4342_v52  ;;  %v1655_v33 = vld [vmem:[#allocation2 + $0xe2] sm:$0xff]  ;;  %v1706_v43 = vmul.f32 %v1643_v20, %v4339_v50  ;;  %v1768_v14 = vmul.f32 %v1643_v20, %v4274_v34 }
 0x186   : > { %v1656_v42 = vmul.f32 %v4903_v31, %v1654_v45  ;;  %v1717_v35 = vmul.f32 %v1654_v45, %v4354_v0  ;;  %v1779_v28 = vmul.f32 %v1654_v45, %v4300_v58  ;;  %v1512_v9 = vmul.f32 %v3946_v38, %v4748_v24 }
 0x187   : > { %v1647_v10 = vadd.f32 %v1645_v18, %v1640_v6  ;;  %v1657_v12 = vmul.f32 %v4903_v31, %v1655_v33  ;;  %v1708_v41 = vadd.f32 %v1706_v43, %v1702_v57  ;;  %v4936_v6 = vld [vmem:[%s5696_s4] ss:$0 sm:$0xff]  ;;  %v1718_v45 = vmul.f32 %v1655_v33, %v4354_v0 }
 0x188   : > { %v1658_v7 = vadd.f32 %v1656_v42, %v1652_v48  ;;  %v3948_v11 = vpop.eup %3947  ;;  %v1719_v47 = vadd.f32 %v1717_v35, %v1713_v21  ;;  %v1781_v17 = vadd.f32 %v1779_v28, %v1775_v16  ;;  %v1776_v38 = vadd.f32 %v1774_v44, %v1768_v14 }
 0x189   : > { %v1513_v60 = vmul.f32 %v3948_v11, %v4762_v19  ;;  %v1653_v53 = vadd.f32 %v1651_v32, %v1647_v10  ;;  %v1714_v20 = vadd.f32 %v1712_v2, %v1708_v41  ;;  %v4943_v19 = vld [vmem:[#allocation2 + $0x108] sm:$0xff]  ;;  %v1848_v32 = vmul.f32 %v1723_v59, %v4274_v34 }
 0x18a   : > { %v4939_v48 = vadd.f32 %v4936_v6, %v1658_v7  ;;  %v1726_v24 = vadd.f32 %v1724_v3, %v1719_v47  ;;  %v1787_v11 = vadd.f32 %v1785_v55, %v1781_v17  ;;  %v1780_v7 = vmul.f32 %v1655_v33, %v4300_v58 }
 0x18b   : > { %v3513_v18 = vpack.c.bf16 %v1513_v60, %v1512_v9  ;;  %v1659_v57 = vadd.f32 %v1657_v12, %v1653_v53  ;;  %v1720_v42 = vadd.f32 %v1718_v45, %v1714_v20  ;;  %v3950_v28 = vpop.eup %3949  ;;  %v1859_v41 = vmul.f32 %v1734_v13, %v4300_v58 }
 0x18c   : > { %v1662_v21 = vsub.f32 0.0, %v4939_v48  ;;  %v1732_v43 = vadd.f32 %v4838_v54, %v1726_v24  ;;  %v1793_v9 = vadd.f32 %v4843_v40, %v1787_v11  ;;  %v1782_v60 = vadd.f32 %v1780_v7, %v1776_v38  ;;  %v4984_v38 = vld [vmem:[#allocation2 + $0x110] sm:$0xff] }
 0x18d   : > { %3514 = vst [vmem:[#allocation3 + $0x28] sm:$0xff] %v3513_v18   ;;  %v4950_v44 = vadd.f32 %v4936_v6, %v1659_v57  ;;  %v1727_v53 = vadd.f32 %v1725_v29, %v1720_v42  ;;  %v1804_v3 = vmul.f32 %v4943_v19, %v4342_v52  ;;  %v1865_v16 = vmul.f32 %v4943_v19, %v4339_v50 }
 0x18e   : > { %v1664_v12 = vmul.f32 1.442695, %v1662_v21  ;;  %v1738_v47 = vadd.f32 %v1736_v37, %v1732_v43  ;;  %v1799_v59 = vadd.f32 %v1797_v36, %v1793_v9  ;;  %v1592_v13 = vmul.f32 %v3950_v28, %v4772_v56  ;;  %v4993_v43 = vld [vmem:[#allocation2 + $0x120] sm:$0xff] }
 0x18f   : > { %v3952_v55 = vpop.eup %3951  ;;  %v1663_v54 = vsub.f32 0.0, %v4950_v44  ;;  %v1733_v40 = vadd.f32 %v4887_v51, %v1727_v53  ;;  %v1861_v37 = vadd.f32 %v1859_v41, %v4877_v22  ;;  %v1788_v56 = vadd.f32 %v4911_v27, %v1782_v60  ;;  %v5001_v41 = vld [vmem:[#allocation2 + $0x112] sm:$0xff] }
 0x190   : > { %3953 = vpow2.f32 %v1664_v12  ;;  %v1593_v33 = vmul.f32 %v3952_v55, %v4783_v1  ;;  %v4962_v29 = vadd.f32 %v4936_v6, %v1738_v47  ;;  %v1806_v35 = vadd.f32 %v1804_v3, %v1799_v59  ;;  %v5010_v55 = vld [vmem:[#allocation2 + $0x128] sm:$0xff] }
 0x191   : > { %v1666_v2 = vmul.f32 1.442695, %v1663_v54  ;;  %3955 = vrcp.f32 %v4896_v26  ;;  %v1739_v36 = vadd.f32 %v4908_v30, %v1733_v40  ;;  %v1856_v1 = vadd.f32 %v4891_v15, %v1848_v32  ;;  %v4977_v30 = vld [vmem:[#allocation2 + $0x10a] sm:$0xff] }
 0x192   : > { %v3518_v14 = vpack.c.bf16 %v1593_v33, %v1592_v13  ;;  %v1742_v10 = vsub.f32 0.0, %v4962_v29  ;;  %v1810_v51 = vmul.f32 %v4326_v25, %v4866_v5  ;;  %v1867_v17 = vadd.f32 %v1865_v16, %v1861_v37  ;;  %v5015_v33 = vld [vmem:[#allocation2 + $0x122] sm:$0xff] }
 0x193   : > { %3957 = vpow2.f32 %v1666_v2  ;;  %v1792_v22 = vmul.f32 %v4323_v23, %v4780_v49  ;;  %v4975_v26 = vadd.f32 %v4936_v6, %v1739_v36  ;;  %v764_v45 = vsub.f32 0.0, %v4820_v8  ;;  %v5755_v36 = vld [vmem:[#allocation13_spill] sm:$0xff] }
 0x194   : > { %3519 = vst [vmem:[#allocation3 + $0x30] sm:$0xff] %v3518_v14   ;;  %v1744_v20 = vmul.f32 1.442695, %v1742_v10  ;;  %v1860_v15 = vmul.f32 %v4879_v62, %v4300_v58  ;;  %v1812_v27 = vadd.f32 %v1810_v51, %v1806_v35  ;;  %v1871_v24 = vmul.f32 %v4323_v23, %v4866_v5 }
 0x195   : > { %3959 = vrcp.f32 %v4898_v63  ;;  %v1798_v49 = vmul.f32 %v4879_v62, %v4354_v0  ;;  %v1743_v18 = vsub.f32 0.0, %v4975_v26  ;;  %v1794_v57 = vadd.f32 %v1792_v22, %v1788_v56 }
 0x196   : > { %3961 = vpow2.f32 %v1744_v20  ;;  %v1862_v21 = vadd.f32 %v1860_v15, %v1856_v1  ;;  %v1873_v11 = vadd.f32 %v1871_v24, %v1867_v17  ;;  %v1816_v32 = vmul.f32 %v4903_v31, %v4977_v30  ;;  %v5027_v15 = vld [vmem:[#allocation2 + $0x12a] sm:$0xff] }
 0x197   : > { %3963 = vpow2.f32 %v4813_v4  ;;  %v1746_v42 = vmul.f32 1.442695, %v1743_v18  ;;  %v1800_v7 = vadd.f32 %v1798_v49, %v1794_v57  ;;  %v1805_v63 = vmul.f32 %v4984_v38, %v4342_v52  ;;  %v5754_v4 = vld [vmem:[#allocation11_spill] sm:$0xff]  ;;  %v5757_v57 = vld [vmem:[#allocation14_spill] sm:$0xff] }
 0x198   : > { %v1866_v62 = vmul.f32 %v4984_v38, %v4339_v50  ;;  %v1811_v28 = vmul.f32 %v4326_v25, %v4883_v39  ;;  %v1818_v12 = vadd.f32 %v1816_v32, %v1812_v27  ;;  %v1877_v9 = vmul.f32 %v4977_v30, %v4354_v0 }
 0x199   : > { %3965 = vpow2.f32 %v5754_v4  ;;  %v1807_v53 = vadd.f32 %v1805_v63, %v1800_v7  ;;  %v1872_v60 = vmul.f32 %v4323_v23, %v4883_v39  ;;  %v1884_v3 = vmul.f32 %v4993_v43, %v4342_v52 }
 0x19a   : > { %3967 = vpow2.f32 %v1746_v42  ;;  %v1868_v47 = vadd.f32 %v1866_v62, %v1862_v21  ;;  %v5013_v54 = vadd.f32 %v4936_v6, %v1818_v12  ;;  %v1879_v59 = vadd.f32 %v1877_v9, %v1873_v11 }
 0x19b   : > { %v827_v16 = vmul.f32 1.442695, %v764_v45  ;;  %v1813_v40 = vadd.f32 %v1811_v28, %v1807_v53  ;;  %v1817_v37 = vmul.f32 %v4903_v31, %v5001_v41  ;;  %v1878_v35 = vmul.f32 %v5001_v41, %v4354_v0  ;;  %v5756_v45 = vld [vmem:[#allocation12_spill] sm:$0xff]  ;;  %v5758_v53 = vld [vmem:[#allocation10_spill] sm:$0xff] }
 0x19c   : > { %v1874_v2 = vadd.f32 %v1872_v60, %v1868_v47  ;;  %v1890_v10 = vmul.f32 %v4326_v25, %v5755_v36  ;;  %v1822_v56 = vsub.f32 0.0, %v5013_v54  ;;  %v1886_v1 = vadd.f32 %v1884_v3, %v1879_v59 }
 0x19d   : > { %v3954_v13 = vpop.eup %3953  ;;  %v1885_v17 = vmul.f32 %v5010_v55, %v4342_v52  ;;  %v1819_v22 = vadd.f32 %v1817_v37, %v1813_v40  ;;  %3969 = vpow2.f32 %v5756_v45  ;;  %v1896_v27 = vmul.f32 %v4903_v31, %v5015_v33  ;;  %v3760_v45 = vld [vmem:[%s5697_s5 + $0x30] sm:$0xff]  }
 0x19e   : > { %v1668_v14 = vadd.f32 1.0, %v3954_v13  ;;  %v3956_v51 = vpop.eup %3955  ;;  %v1880_v20 = vadd.f32 %v1878_v35, %v1874_v2  ;;  %v1824_v24 = vmul.f32 1.442695, %v1822_v56  ;;  %v1892_v49 = vadd.f32 %v1890_v10, %v1886_v1  ;;  %v5759_v2 = vld [vmem:[#allocation5_spill] sm:$0xff] }
 0x19f   : > { %3971 = vpow2.f32 %v827_v16  ;;  %v1891_v21 = vmul.f32 %v4326_v25, %v5757_v57  ;;  %v5034_v11 = vadd.f32 %v4936_v6, %v1819_v22  ;;  %v1897_v62 = vmul.f32 %v4903_v31, %v5027_v15 }
 0x1a0   : > { %v3958_v18 = vpop.eup %3957  ;;  %3973 = vrcp.f32 %v1668_v14  ;;  %v1887_v32 = vadd.f32 %v1885_v17, %v1880_v20  ;;  %v1898_v7 = vadd.f32 %v1896_v27, %v1892_v49  ;;  %v5043_v47 = vmul.f32 %v3956_v51, %v5758_v53  ;;  %v3759_v51 = vld [vmem:[%s5697_s5 + $0x38] sm:$0xff]   ;;  %v5067_v49 = vld [vmem:[#allocation2 + $0x8] sm:$0xff] }
 0x1a1   : > { %v1669_v42 = vadd.f32 1.0, %v3958_v18  ;;  %3975 = vpow2.f32 %v1824_v24  ;;  %v1823_v28 = vsub.f32 0.0, %v5034_v11  ;;  %v1927_v10 = vmul.f32 %v4943_v19, %v4274_v34  ;;  %3656 = vmatpush3.bf16.msra.mxu1 %v3759_v51  ;;  %3671 = vmatprep.mubr.msk.bf16.mxu1 %vm4088_vm1, %v5067_v49 }
 0x1a2   : > { %v3960_v63 = vpop.eup %3959  ;;  %v1893_v12 = vadd.f32 %v1891_v21, %v1887_v32  ;;  %v5040_v4 = vadd.f32 %v4936_v6, %v1898_v7  ;;  %993 = vst [vmem:[#allocation2 + $0x139] sm:$0xff] %v5043_v47  ;;  %v1933_v20 = vmul.f32 %v4287_v46, %v4866_v5  ;;  %v1939_v19 = vmul.f32 %v4977_v30, %v4300_v58  ;;  %v721_v7 = vpop.f32.mrf.mxu1 }
 0x1a3   : > { %v3962_v9 = vpop.eup %3961  ;;  %3977 = vrcp.f32 %v1669_v42  ;;  %v1826_v59 = vmul.f32 1.442695, %v1823_v28  ;;  %v5051_v35 = vmul.f32 %v3960_v63, %v5759_v2  ;;  %3657 = vmatprep.subr.bf16.mxu1 %v5067_v49  ;;  %v1928_v32 = vmul.f32 %v4984_v38, %v4274_v34  ;;  %v3761_v63 = vld [vmem:[%s5697_s5 + $0x28] sm:$0xff]  }
 0x1a4   : > { %v3964_v60 = vpop.eup %3963  ;;  %v1748_v3 = vadd.f32 1.0, %v3962_v9  ;;  %v1899_v16 = vadd.f32 %v1897_v62, %v1893_v12  ;;  %v1902_v13 = vsub.f32 0.0, %v5040_v4  ;;  %v1935_v21 = vadd.f32 %v1933_v20, %v1927_v10 }
 0x1a5   : > { %3979 = vpow2.f32 %v1826_v59  ;;  %v854_v1 = vadd.f32 1.0, %v3964_v60  ;;  %996 = vst [vmem:[#allocation2 + $0x159] sm:$0xff] %v5051_v35  ;;  %3658 = vmatpush3.bf16.msra.mxu1 %v3760_v45  ;;  %v1945_v28 = vmul.f32 %v4993_v43, %v4339_v50  ;;  %v1934_v9 = vmul.f32 %v4287_v46, %v4883_v39 }
 0x1a6   : > { %v3966_v40 = vpop.eup %3965  ;;  %v5048_v37 = vadd.f32 %v4936_v6, %v1899_v16  ;;  %v1904_v56 = vmul.f32 1.442695, %v1902_v13  ;;  %3981 = vrcp.f32 %v1748_v3  ;;  %v1941_v42 = vadd.f32 %v1939_v19, %v1935_v21  ;;  %3659 = vmatprep.subr.bf16.mxu1 %v5067_v49  ;;  %v5760_v3 = vld [vmem:[#allocation9_spill] sm:$0xff] }
 0x1a7   : > { %v3968_v14 = vpop.eup %3967  ;;  %v859_v24 = vadd.f32 1.0, %v3966_v40  ;;  %v5083_v59 = vadd.f32 %v5760_v3, %v721_v7  ;;  %v1936_v40 = vadd.f32 %v1934_v9, %v1928_v32  ;;  %v1951_v10 = vmul.f32 %v4323_v23, %v5755_v36  ;;  %v5761_v3 = vld [vmem:[#allocation6_spill] sm:$0xff] }
 0x1a8   : > { %v1749_v17 = vadd.f32 1.0, %v3968_v14  ;;  %v1903_v22 = vsub.f32 0.0, %v5048_v37  ;;  %3983 = vpow2.f32 %v1904_v56  ;;  %v1947_v2 = vadd.f32 %v1945_v28, %v1941_v42  ;;  %v3762_v14 = vld [vmem:[%s5697_s5 + $0x20] sm:$0xff]  }
 0x1a9   : > { %3660 = vmatpush3.bf16.msra.mxu1 %v3761_v63  ;;  %v1940_v56 = vmul.f32 %v5001_v41, %v4300_v58  ;;  %v762_v51 = vsub.f32 0.0, %v5083_v59  ;;  %v3763_v41 = vld [vmem:[%s5697_s5 + $0x18] sm:$0xff]   ;;  %v2008_v32 = vmul.f32 %v5010_v55, %v4274_v34  ;;  %v2019_v9 = vmul.f32 %v5015_v33, %v4300_v58 }
 0x1aa   : > { %3985 = vrcp.f32 %v1749_v17  ;;  %v1906_v27 = vmul.f32 1.442695, %v1903_v22  ;;  %v3970_v18 = vpop.eup %3969  ;;  %3661 = vmatprep.subr.bf16.mxu1 %v5067_v49  ;;  %v2007_v22 = vmul.f32 %v4993_v43, %v4274_v34  ;;  %v1953_v45 = vadd.f32 %v1951_v10, %v1947_v2  ;;  %v1962_v7 = vld [vmem:[#allocation2 + $0x138] sm:$0xff] }
 0x1ab   : > { %3987 = vrcp.f32 %v854_v1  ;;  %v857_v53 = vadd.f32 1.0, %v3970_v18  ;;  %v1942_v19 = vadd.f32 %v1940_v56, %v1936_v40  ;;  %v1946_v18 = vmul.f32 %v5010_v55, %v4339_v50  ;;  %v5116_v63 = vld [vmem:[#allocation3 + $0x8] sm:$0xf]  ;;  %v5132_v2 = vld [vmem:[#allocation3 + $0xc] sm:$0xf] }
 0x1ac   : > { %v3972_v5 = vpop.eup %3971  ;;  %3989 = vpow2.f32 %v1906_v27  ;;  %v2025_v40 = vmul.f32 %v1962_v7, %v4339_v50  ;;  %v1964_v56 = vmul.f32 %v1962_v7, %v4342_v52 }
 0x1ad   : > { %v3974_v30 = vpop.eup %3973  ;;  %3991 = vrcp.f32 %v859_v24  ;;  %v860_v60 = vadd.f32 1.0, %v3972_v5  ;;  %3662 = vmatpush3.bf16.msra.mxu1 %v3762_v14  ;;  %v2013_v24 = vmul.f32 %v4287_v46, %v5755_v36  ;;  %v2358_v14 = vunpack.c.l.bf16 %v5116_v63 }
 0x1ae   : > { %v3976_v62 = vpop.eup %3975  ;;  %v1672_v16 = vmul.f32 %v3974_v30, %v4939_v48  ;;  %v5095_v48 = vld [vmem:[#allocation3] sm:$0xf]  ;;  %3663 = vmatprep.subr.bf16.mxu1 %v5067_v49  ;;  %v1957_v30 = vmul.f32 %v5015_v33, %v4354_v0 }
 0x1af   : > { %v1828_v12 = vadd.f32 1.0, %v3976_v62  ;;  %v2356_v21 = vunpack.c.l.bf16 %v5095_v48 }
 0x1b0   : > { %v3978_v38 = vpop.eup %3977  ;;  %v1959_v55 = vadd.f32 %v1957_v30, %v1953_v45  ;;  %v823_v45 = vmul.f32 1.442695, %v762_v51  ;;  %v2087_v30 = vmul.f32 %v1962_v7, %v4274_v34  ;;  %v2359_v51 = vunpack.c.l.bf16 %v5132_v2 }
 0x1b1   : > { %v1673_v13 = vmul.f32 %v3978_v38, %v4950_v44  ;;  %3993 = vrcp.f32 %v1828_v12  ;;  %v5097_v44 = vld [vmem:[#allocation3 + $0x4] sm:$0xf]  ;;  %v2014_v12 = vmul.f32 %v4287_v46, %v5757_v57  ;;  %v2015_v38 = vadd.f32 %v2013_v24, %v2007_v22  ;;  %3664 = vmatpush3.bf16.msra.mxu1 %v3763_v41  ;;  %v3765_v24 = vld [vmem:[%s5697_s5 + $0x8] sm:$0xff]  }
 0x1b2   : > { %3995 = vrcp.f32 %v857_v53  ;;  %v3980_v1 = vpop.eup %3979  ;;  %v2357_v43 = vunpack.c.l.bf16 %v5097_v44  ;;  %3665 = vmatprep.subr.bf16.mxu1 %v5067_v49  ;;  %v5141_v22 = vld [vmem:[#allocation2 + $0x150] sm:$0xff]  ;;  %v2020_v41 = vmul.f32 %v5027_v15, %v4300_v58  ;;  %v2050_v7 = vmul.f32 %v4326_v25, %v4914_v61 }
 0x1b3   : > { %v3523_v39 = vpack.c.bf16 %v1673_v13, %v1672_v16  ;;  %3997 = vrcp.f32 %v860_v60  ;;  %v3982_v17 = vpop.eup %3981  ;;  %v1829_v20 = vadd.f32 1.0, %v3980_v1  ;;  %v1948_v60 = vadd.f32 %v1946_v18, %v1942_v19  ;;  %v5139_v1 = vld [vmem:[#allocation3 + $0x10] sm:$0xf] }
 0x1b4   : > { %v1752_v62 = vmul.f32 %v3982_v17, %v4962_v29  ;;  %v3764_v29 = vld [vmem:[%s5697_s5 + $0x10] sm:$0xff]   ;;  %v2016_v10 = vadd.f32 %v2014_v12, %v2008_v32  ;;  %v2021_v17 = vadd.f32 %v2019_v9, %v2015_v38  ;;  %v2388_v18 = vadd.f32 %v2357_v43, %v2356_v21 }
 0x1b5   : > { %3524 = vst [vmem:[#allocation3 + $0x38] sm:$0xff] %v3523_v39   ;;  %v3984_v27 = vpop.eup %3983  ;;  %3999 = vrcp.f32 %v1829_v20  ;;  %v1952_v39 = vmul.f32 %v4323_v23, %v5757_v57  ;;  %v5762_v20 = vld [vmem:[#allocation7_spill] sm:$0xff]  ;;  %v1966_v57 = vadd.f32 %v1964_v56, %v1959_v55  ;;  %3666 = vmatpush3.bf16.msra.mxu1 %v3764_v29  ;;  %v2360_v32 = vunpack.c.l.bf16 %v5139_v1  ;;  %v5184_v56 = vld [vmem:[#allocation2 + $0x158] sm:$0xff] }
 0x1b6   : > { %v1908_v42 = vadd.f32 1.0, %v3984_v27  ;;  %3667 = vmatprep.subr.bf16.mxu1 %v5067_v49  ;;  %v1970_v21 = vmul.f32 %v4326_v25, %v5043_v47  ;;  %v2105_v12 = vmul.f32 %v5141_v22, %v4339_v50  ;;  %v2031_v9 = vmul.f32 %v4323_v23, %v5043_v47 }
 0x1b7   : > { %v3986_v5 = vpop.eup %3985  ;;  %v1954_v27 = vadd.f32 %v1952_v39, %v1948_v60  ;;  %v2111_v38 = vmul.f32 %v4323_v23, %v4914_v61 }
 0x1b8   : > { %v3988_v36 = vpop.eup %3987  ;;  %v1753_v28 = vmul.f32 %v3986_v5, %v4975_v26  ;;  %4001 = vrcp.f32 %v1908_v42  ;;  %v2027_v5 = vadd.f32 %v2025_v40, %v2021_v17  ;;  %v1972_v60 = vadd.f32 %v1970_v21, %v1966_v57 }
 0x1b9   : > { %v3990_v53 = vpop.eup %3989  ;;  %v5125_v16 = vmul.f32 %v3988_v36, %v5761_v3  ;;  %v1958_v36 = vmul.f32 %v5027_v15, %v4354_v0  ;;  %v2093_v15 = vmul.f32 %v4287_v46, %v5043_v47  ;;  %v5763_v3 = vld [vmem:[#allocation8_spill] sm:$0xff]  ;;  %3668 = vmatpush3.bf16.msra.mxu1 %v3765_v24 }
 0x1ba   : > { %v3528_v13 = vpack.c.bf16 %v1753_v28, %v1752_v62  ;;  %v1909_v26 = vadd.f32 1.0, %v3990_v53  ;;  %v3992_v33 = vpop.eup %3991  ;;  %v2022_v62 = vadd.f32 %v2020_v41, %v2016_v10  ;;  %v2044_v28 = vmul.f32 %v5141_v22, %v4342_v52  ;;  %3669 = vmatprep.subr.bf16.mxu1 %v5067_v49 }
 0x1bb   : > { %994 = vst [vmem:[#allocation2 + $0x141] sm:$0xff] %v5125_v16  ;;  %v5144_v19 = vmul.f32 %v3992_v33, %v5762_v20  ;;  %v1960_v55 = vadd.f32 %v1958_v36, %v1954_v27  ;;  %v2095_v40 = vadd.f32 %v2093_v15, %v2087_v30  ;;  %v2389_v10 = vadd.f32 %v2388_v18, %v2358_v14 }
 0x1bc   : > { %3529 = vst [vmem:[#allocation3 + $0x40] sm:$0xff] %v3528_v13   ;;  %4003 = vrcp.f32 %v1909_v26  ;;  %v3766_v13 = vld [vmem:[%s5697_s5] sm:$0xff]   ;;  %v2033_v26 = vadd.f32 %v2031_v9, %v2027_v5  ;;  %v1971_v27 = vmul.f32 %v4326_v25, %v5125_v16 }
 0x1bd   : > { %999 = vst [vmem:[#allocation2 + $0x181] sm:$0xff] %v5144_v19  ;;  %4005 = vpow2.f32 %v823_v45  ;;  %3670 = vmatpush3.bf16.msra.mxu1 %v3766_v13  ;;  %v5203_v45 = vld [vmem:[#allocation2 + $0x152] sm:$0xff] }
 0x1be   : > { %v3994_v42 = vpop.eup %3993  ;;  %3675 = vmatprep.subr.bf16.mxu1 %v5067_v49 }
 0x1bf   : > { %v3996_v43 = vpop.eup %3995 }
 0x1c0   : > { %v3998_v53 = vpop.eup %3997  ;;  %v5173_v29 = vmul.f32 %v3996_v43, %v5763_v3 }
 0x1c1   : > { %v5181_v47 = vmul.f32 %v3998_v53, %v4820_v8  ;;  %v1832_v8 = vmul.f32 %v3994_v42, %v5013_v54  ;;  %v2045_v54 = vmul.f32 %v5184_v56, %v4342_v52  ;;  %v2032_v42 = vmul.f32 %v4323_v23, %v5125_v16 }
 0x1c2   : > { %v5178_v33 = vld [vmem:[#allocation2 + $0x140] sm:$0xff]  ;;  %997 = vst [vmem:[#allocation2 + $0x169] sm:$0xff] %v5173_v29  ;;  %v4000_v57 = vpop.eup %3999 }
 0x1c3   : > { %v1974_v39 = vld [vmem:[#allocation2 + $0x13a] sm:$0xff]  ;;  %v1965_v17 = vmul.f32 %v5178_v33, %v4342_v52  ;;  %v2026_v41 = vmul.f32 %v5178_v33, %v4339_v50  ;;  %v5195_v14 = vld [vmem:[#allocation2 + $0x142] sm:$0xff]  ;;  %1000 = vst [vmem:[#allocation2 + $0x189] sm:$0xff] %v5181_v47  ;;  %v1833_v5 = vmul.f32 %v4000_v57, %v5034_v11 }
 0x1c4   : > { %v1976_v20 = vmul.f32 %v4903_v31, %v1974_v39  ;;  %v2037_v24 = vmul.f32 %v1974_v39, %v4354_v0  ;;  %v2099_v18 = vmul.f32 %v1974_v39, %v4300_v58  ;;  %v1977_v11 = vmul.f32 %v4903_v31, %v5195_v14 }
 0x1c5   : > { %v1967_v30 = vadd.f32 %v1965_v17, %v1960_v55  ;;  %v2028_v21 = vadd.f32 %v2026_v41, %v2022_v62  ;;  %v4002_v15 = vpop.eup %4001  ;;  %v3533_v53 = vpack.c.bf16 %v1833_v5, %v1832_v8  ;;  %v2038_v55 = vmul.f32 %v5195_v14, %v4354_v0 }
 0x1c6   : > { %v1978_v36 = vadd.f32 %v1976_v20, %v1972_v60  ;;  %v2039_v43 = vadd.f32 %v2037_v24, %v2033_v26  ;;  %v2101_v9 = vadd.f32 %v2099_v18, %v2095_v40  ;;  %v2056_v26 = vmul.f32 %v4903_v31, %v5203_v45  ;;  %v5222_v18 = vld [vmem:[#allocation2 + $0x15a] sm:$0xff] }
 0x1c7   : > { %v1973_v3 = vadd.f32 %v1971_v27, %v1967_v30  ;;  %v2034_v60 = vadd.f32 %v2032_v42, %v2028_v21  ;;  %3534 = vst [vmem:[#allocation3 + $0x48] sm:$0xff] %v3533_v53   ;;  %v2390_v41 = vadd.f32 %v2389_v10, %v2359_v51  ;;  %v1912_v57 = vmul.f32 %v4002_v15, %v5040_v4  ;;  %v5231_v10 = vld [vmem:[#allocation3 + $0x14] sm:$0xf] }
 0x1c8   : > { %v5211_v62 = vadd.f32 %v4936_v6, %v1978_v36  ;;  %v2046_v13 = vadd.f32 %v2044_v28, %v2039_v43  ;;  %v2107_v39 = vadd.f32 %v2105_v12, %v2101_v9  ;;  %v2051_v36 = vmul.f32 %v4326_v25, %v5051_v35  ;;  %v5241_v43 = vld [vmem:[#allocation3 + $0x18] sm:$0xf] }
 0x1c9   : > { %v4004_v17 = vpop.eup %4003  ;;  %v1979_v40 = vadd.f32 %v1977_v11, %v1973_v3  ;;  %v2040_v27 = vadd.f32 %v2038_v55, %v2034_v60  ;;  %5764 = vst [vmem:[#allocation11_spill] sm:$0xff] %v5241_v43  ;;  %v2361_v9 = vunpack.c.l.bf16 %v5231_v10 }
 0x1ca   : > { %v1982_v20 = vsub.f32 0.0, %v5211_v62  ;;  %v1913_v8 = vmul.f32 %v4004_v17, %v5048_v37  ;;  %v2052_v24 = vadd.f32 %v2050_v7, %v2046_v13  ;;  %v5227_v5 = vadd.f32 %v2111_v38, %v2107_v39  ;;  %v4006_v15 = vpop.eup %4005  ;;  %v5250_v17 = vld [vmem:[#allocation3 + $0x1c] sm:$0xf] }
 0x1cb   : > { %v5225_v28 = vadd.f32 %v4936_v6, %v1979_v40  ;;  %v2047_v21 = vadd.f32 %v2045_v54, %v2040_v27  ;;  %v2391_v37 = vadd.f32 %v2390_v41, %v2360_v32  ;;  %v2057_v7 = vmul.f32 %v4903_v31, %v5222_v18  ;;  %5765 = vst [vmem:[#allocation13_spill] sm:$0xff] %v5250_v17 }
 0x1cc   : > { %v1984_v12 = vmul.f32 1.442695, %v1982_v20  ;;  %v3538_v30 = vpack.c.bf16 %v1913_v8, %v1912_v57  ;;  %v2058_v51 = vadd.f32 %v2056_v26, %v2052_v24  ;;  %v2362_v32 = vunpack.c.l.bf16 %v5241_v43  ;;  %v5252_v20 = vld [vmem:[#allocation3 + $0x20] sm:$0xf] }
 0x1cd   : > { %v1983_v4 = vsub.f32 0.0, %v5225_v28  ;;  %v2053_v38 = vadd.f32 %v2051_v36, %v2047_v21  ;;  %v2392_v11 = vadd.f32 %v2391_v37, %v2361_v9  ;;  %v858_v39 = vadd.f32 1.0, %v4006_v15  ;;  %5766 = vst [vmem:[#allocation12_spill] sm:$0xff] %v5252_v20  ;;  %v5262_v37 = vld [vmem:[#allocation3 + $0x24] sm:$0xf] }
 0x1ce   : > { %4007 = vpow2.f32 %v1984_v12  ;;  %3539 = vst [vmem:[#allocation3 + $0x50] sm:$0xff] %v3538_v30   ;;  %v5239_v42 = vadd.f32 %v4936_v6, %v2058_v51  ;;  %v2363_v41 = vunpack.c.l.bf16 %v5250_v17  ;;  %v2088_v57 = vmul.f32 %v5178_v33, %v4274_v34  ;;  %v2281_v30 = vld [vmem:[#allocation2 + $0x198] sm:$0xff]  ;;  %5767 = vst [vmem:[#allocation14_spill] sm:$0xff] %v5262_v37 }
 0x1cf   : > { %v1986_v54 = vmul.f32 1.442695, %v1983_v4  ;;  %v2059_v53 = vadd.f32 %v2057_v7, %v2053_v38  ;;  %v2393_v26 = vadd.f32 %v2392_v11, %v2362_v32  ;;  %v2364_v8 = vunpack.c.l.bf16 %v5252_v20  ;;  %v2287_v4 = vld [vmem:[#allocation2 + $0x199] sm:$0xff] }
 0x1d0   : > { %v2062_v3 = vsub.f32 0.0, %v5239_v42  ;;  %v2094_v12 = vmul.f32 %v4287_v46, %v5125_v16  ;;  %v2167_v21 = vmul.f32 %v5141_v22, %v4274_v34  ;;  %v5265_v7 = vmul.f32 %v2281_v30, %v4342_v52  ;;  %v5273_v22 = vld [vmem:[#allocation3 + $0x28] sm:$0xf] }
 0x1d1   : > { %4009 = vpow2.f32 %v1986_v54  ;;  %v5247_v60 = vadd.f32 %v4936_v6, %v2059_v53  ;;  %v2394_v27 = vadd.f32 %v2393_v26, %v2363_v41  ;;  %v2173_v54 = vmul.f32 %v4287_v46, %v4914_v61  ;;  %5768 = vst [vmem:[#allocation10_spill] sm:$0xff] %v5273_v22  ;;  %v5289_v26 = vld [vmem:[#allocation3 + $0x30] sm:$0xf] }
 0x1d2   : > { %v2064_v55 = vmul.f32 1.442695, %v2062_v3  ;;  %v2096_v51 = vadd.f32 %v2094_v12, %v2088_v57  ;;  %v2168_v16 = vmul.f32 %v5184_v56, %v4274_v34  ;;  %v2100_v9 = vmul.f32 %v5195_v14, %v4300_v58  ;;  %5770 = vst [vmem:[#allocation9_spill] sm:$0xff] %v5289_v26 }
 0x1d3   : > { %v2063_v13 = vsub.f32 0.0, %v5247_v60  ;;  %v2395_v33 = vadd.f32 %v2394_v27, %v2364_v8  ;;  %v5277_v53 = vmul.f32 %v5067_v49, %v4342_v52  ;;  %v5280_v3 = vmul.f32 %v2287_v4, %v4326_v25 }
 0x1d4   : > { %4011 = vpow2.f32 %v2064_v55  ;;  %v2365_v32 = vunpack.c.l.bf16 %v5262_v37  ;;  %v2175_v61 = vadd.f32 %v2173_v54, %v2167_v21  ;;  %v2117_v11 = vmul.f32 %v5203_v45, %v4354_v0 }
 0x1d5   : > { %v2066_v40 = vmul.f32 1.442695, %v2063_v13  ;;  %4013 = vrcp.f32 %v858_v39  ;;  %v2174_v55 = vmul.f32 %v4287_v46, %v5051_v35  ;;  %v2102_v14 = vadd.f32 %v2100_v9, %v2096_v51  ;;  %v2122_v13 = vld [vmem:[#allocation2 + $0x168] sm:$0xff]  ;;  %v5287_v39 = vld [vmem:[#allocation3 + $0x2c] sm:$0xf] }
 0x1d6   : > { %5769 = vst [vmem:[#allocation5_spill] sm:$0xff] %v5287_v39  ;;  %v2179_v41 = vmul.f32 %v5203_v45, %v4300_v58  ;;  %v2366_v57 = vunpack.c.l.bf16 %v5273_v22  ;;  %v2396_v8 = vadd.f32 %v2395_v33, %v2365_v32  ;;  %v2106_v27 = vmul.f32 %v5184_v56, %v4339_v50 }
 0x1d7   : > { %4015 = vpow2.f32 %v2066_v40  ;;  %v2119_v30 = vadd.f32 %v2117_v11, %v5227_v5  ;;  %v2112_v51 = vmul.f32 %v4323_v23, %v5051_v35  ;;  %v2185_v4 = vmul.f32 %v2122_v13, %v4339_v50 }
 0x1d8   : > { %v2367_v45 = vunpack.c.l.bf16 %v5287_v39  ;;  %v2180_v33 = vmul.f32 %v5222_v18, %v4300_v58  ;;  %v2108_v56 = vadd.f32 %v2106_v27, %v2102_v14  ;;  %v2124_v54 = vmul.f32 %v2122_v13, %v4342_v52 }
 0x1d9   : > { %v2397_v32 = vadd.f32 %v2396_v8, %v2366_v57  ;;  %v2118_v11 = vmul.f32 %v5222_v18, %v4354_v0  ;;  %v5315_v14 = vmul.f32 %v4326_v25, %v5144_v19  ;;  %v2247_v27 = vmul.f32 %v2122_v13, %v4274_v34  ;;  %v2214_v8 = vld [vmem:[#allocation2 + $0x182] sm:$0xff] }
 0x1da   : > { %v2126_v39 = vadd.f32 %v2124_v54, %v2119_v30  ;;  %v5321_v57 = vmul.f32 %v4323_v23, %v5144_v19  ;;  %v2130_v18 = vmul.f32 %v4326_v25, %v5173_v29  ;;  %v2253_v13 = vmul.f32 %v4287_v46, %v5173_v29 }
 0x1db   : > { %v4008_v24 = vpop.eup %4007 }
 0x1dc   : > { %v1988_v36 = vadd.f32 1.0, %v4008_v24  ;;  %v2176_v24 = vadd.f32 %v2174_v55, %v2168_v16  ;;  %v5308_v16 = vld [vmem:[#allocation3 + $0x38] sm:$0xf]  ;;  %v2132_v54 = vadd.f32 %v2130_v18, %v2126_v39  ;;  %v2277_v39 = vmul.f32 %v2214_v8, %v4354_v0 }
 0x1de   : > { %v4010_v38 = vpop.eup %4009  ;;  %4017 = vrcp.f32 %v1988_v36  ;;  %v5297_v36 = vld [vmem:[#allocation3 + $0x34] sm:$0xf]  ;;  %v2182_v55 = vadd.f32 %v2180_v33, %v2176_v24  ;;  %v2215_v24 = vld [vmem:[#allocation2 + $0x18a] sm:$0xff] }
 0x1df   : > { %v1989_v15 = vadd.f32 1.0, %v4010_v38  ;;  %v2368_v38 = vunpack.c.l.bf16 %v5289_v26  ;;  %v2202_v26 = vld [vmem:[#allocation2 + $0x180] sm:$0xff] }
 0x1e0   : > { %v2204_v30 = vmul.f32 %v2202_v26, %v4342_v52  ;;  %v2265_v33 = vmul.f32 %v2202_v26, %v4339_v50  ;;  %v2272_v26 = vmul.f32 %v4323_v23, %v5181_v47 }
 0x1e1   : > { %v4012_v40 = vpop.eup %4011  ;;  %4019 = vrcp.f32 %v1989_v15  ;;  %v2181_v15 = vadd.f32 %v2179_v41, %v2175_v61  ;;  %v2203_v61 = vld [vmem:[#allocation2 + $0x188] sm:$0xff]  ;;  %v5338_v41 = vmul.f32 %v4903_v31, %v2215_v24 }
 0x1e2   : > { %v2068_v12 = vadd.f32 1.0, %v4012_v40  ;;  %v4014_v21 = vpop.eup %4013  ;;  %v2205_v19 = vmul.f32 %v2203_v61, %v4342_v52 }
 0x1e3   : > { %v922_v5 = vmul.f32 %v4014_v21, %v5083_v59  ;;  %v2187_v59 = vadd.f32 %v2185_v4, %v2181_v15  ;;  %v2191_v21 = vmul.f32 %v4323_v23, %v5173_v29  ;;  %v2398_v4 = vadd.f32 %v2397_v32, %v2367_v45 }
 0x1e4   : > { %v4016_v9 = vpop.eup %4015  ;;  %4021 = vrcp.f32 %v2068_v12  ;;  %v2114_v12 = vadd.f32 %v2112_v51, %v2108_v56  ;;  %v2255_v56 = vadd.f32 %v2253_v13, %v2247_v27  ;;  %v2266_v29 = vmul.f32 %v2203_v61, %v4339_v50 }
 0x1e5   : > { %v2069_v40 = vadd.f32 1.0, %v4016_v9  ;;  %998 = vst [vmem:[#allocation2 + $0x171] sm:$0xff] %v922_v5  ;;  %v5334_v9 = vmul.f32 %v4326_v25, %v5181_v47  ;;  %v2193_v51 = vadd.f32 %v2191_v21, %v2187_v59  ;;  %v2131_v18 = vmul.f32 %v4326_v25, %v922_v5 }
 0x1e6   : > { %v2120_v45 = vadd.f32 %v2118_v11, %v2114_v12  ;;  %v2192_v59 = vmul.f32 %v4323_v23, %v922_v5  ;;  %v2254_v27 = vmul.f32 %v4287_v46, %v922_v5  ;;  %v2399_v21 = vadd.f32 %v2398_v4, %v2368_v38 }
 0x1e7   : > { %4023 = vrcp.f32 %v2069_v40  ;;  %v2216_v40 = vmul.f32 %v4903_v31, %v2214_v8 }
 0x1eb   : > { %v4018_v15 = vpop.eup %4017 }
 0x1ec   : > { %v2123_v32 = vld [vmem:[#allocation2 + $0x170] sm:$0xff]  ;;  %v1992_v37 = vmul.f32 %v4018_v15, %v5211_v62 }
 0x1ed   : > { %v2134_v35 = vld [vmem:[#allocation2 + $0x16a] sm:$0xff]  ;;  %v2135_v22 = vld [vmem:[#allocation2 + $0x172] sm:$0xff]  ;;  %v2125_v61 = vmul.f32 %v2123_v32, %v4342_v52  ;;  %v2186_v8 = vmul.f32 %v2123_v32, %v4339_v50  ;;  %v2248_v23 = vmul.f32 %v2123_v32, %v4274_v34 }
 0x1ee   : > { %v4020_v13 = vpop.eup %4019  ;;  %v2136_v47 = vmul.f32 %v4903_v31, %v2134_v35  ;;  %v2137_v12 = vmul.f32 %v4903_v31, %v2135_v22  ;;  %v2197_v20 = vmul.f32 %v2134_v35, %v4354_v0  ;;  %v2259_v5 = vmul.f32 %v2134_v35, %v4300_v58 }
 0x1ef   : > { %v1993_v11 = vmul.f32 %v4020_v13, %v5225_v28  ;;  %v2127_v17 = vadd.f32 %v2125_v61, %v2120_v45  ;;  %v2188_v38 = vadd.f32 %v2186_v8, %v2182_v55  ;;  %v2256_v52 = vadd.f32 %v2254_v27, %v2248_v23  ;;  %v2288_v61 = vld [vmem:[#allocation2 + $0x1a1] sm:$0xff] }
 0x1f0   : > { %v2138_v46 = vadd.f32 %v2136_v47, %v2132_v54  ;;  %v2199_v4 = vadd.f32 %v2197_v20, %v2193_v51  ;;  %v2260_v15 = vmul.f32 %v2135_v22, %v4300_v58  ;;  %v2198_v13 = vmul.f32 %v2135_v22, %v4354_v0  ;;  %v2293_v8 = vld [vmem:[#allocation2 + $0x19a] sm:$0xff] }
 0x1f1   : > { %v3543_v62 = vpack.c.bf16 %v1993_v11, %v1992_v37  ;;  %v4022_v43 = vpop.eup %4021  ;;  %v2133_v50 = vadd.f32 %v2131_v18, %v2127_v17  ;;  %v2194_v31 = vadd.f32 %v2192_v59, %v2188_v38  ;;  %v2261_v45 = vadd.f32 %v2259_v5, %v2255_v56  ;;  %v5372_v11 = vld [vmem:[#allocation3 + $0x3c] sm:$0xf]  ;;  %v4061_v38 = vld [vmem:[%s5695_s3 + $0x8] ss:$0 sm:$0xff] }
 0x1f2   : > { %v5358_v28 = vadd.f32 %v4936_v6, %v2138_v46  ;;  %v2206_v34 = vadd.f32 %v2204_v30, %v2199_v4  ;;  %v2262_v54 = vadd.f32 %v2260_v15, %v2256_v52  ;;  %v5771_v55 = vunpack.c.l.bf16 %v5297_v36  ;;  %v4062_v4 = vld [vmem:[%s5696_s4] ss:$0 sm:$0xff] }
 0x1f3   : > { %3544 = vst [vmem:[#allocation3 + $0x58] sm:$0xff] %v3543_v62   ;;  %v2278_v20 = vmul.f32 %v2215_v24, %v4354_v0  ;;  %v2139_v37 = vadd.f32 %v2137_v12, %v2133_v50  ;;  %v2200_v51 = vadd.f32 %v2198_v13, %v2194_v31  ;;  %v2072_v32 = vmul.f32 %v4022_v43, %v5239_v42 }
 0x1f4   : > { %v2400_v35 = vadd.f32 %v2399_v21, %v5771_v55  ;;  %v2142_v58 = vsub.f32 0.0, %v5358_v28  ;;  %v4024_v17 = vpop.eup %4023  ;;  %v2212_v18 = vadd.f32 %v5315_v14, %v2206_v34  ;;  %v2267_v59 = vadd.f32 %v2265_v33, %v2261_v45  ;;  %v5400_v45 = vld [vmem:[#allocation3 + $0x44] sm:$0xf] }
 0x1f5   : > { %v2268_v22 = vadd.f32 %v2266_v29, %v2262_v54  ;;  %v2073_v30 = vmul.f32 %v4024_v17, %v5247_v60  ;;  %v5369_v56 = vadd.f32 %v4936_v6, %v2139_v37  ;;  %v2207_v21 = vadd.f32 %v2205_v19, %v2200_v51  ;;  %v2294_v29 = vld [vmem:[#allocation2 + $0x1a2] sm:$0xff]  ;;  %v5406_v37 = vld [vmem:[#allocation3 + $0x48] sm:$0xf] }
 0x1f6   : > { %v2144_v27 = vmul.f32 1.442695, %v2142_v58  ;;  %v2218_v0 = vadd.f32 %v2216_v40, %v2212_v18  ;;  %v2273_v24 = vadd.f32 %v5321_v57, %v2267_v59  ;;  %v5772_v42 = vunpack.c.l.bf16 %v5308_v16 }
 0x1f7   : > { %v2274_v47 = vadd.f32 %v2272_v26, %v2268_v22  ;;  %v3548_v14 = vpack.c.bf16 %v2073_v30, %v2072_v32  ;;  %v2143_v33 = vsub.f32 0.0, %v5369_v56  ;;  %v2213_v60 = vadd.f32 %v5334_v9, %v2207_v21  ;;  %v5382_v26 = vld [vmem:[#allocation3 + $0x40] sm:$0xf] }
 0x1f8   : > { %v2401_v43 = vadd.f32 %v2400_v35, %v5772_v42  ;;  %4025 = vpow2.f32 %v2144_v27  ;;  %v5379_v19 = vadd.f32 %v4936_v6, %v2218_v0  ;;  %v2279_v40 = vadd.f32 %v2277_v39, %v2273_v24  ;;  %v5412_v27 = vld [vmem:[#allocation3 + $0x4c] sm:$0xf]  ;;  %v5414_v0 = vld [vmem:[#allocation3 + $0x50] sm:$0xf] }
 0x1f9   : > { %v2280_v12 = vadd.f32 %v2278_v20, %v2274_v47  ;;  %v2290_v57 = vmul.f32 %v2288_v61, %v4326_v25  ;;  %3549 = vst [vmem:[#allocation3 + $0x60] sm:$0xff] %v3548_v14   ;;  %v2146_v23 = vmul.f32 1.442695, %v2143_v33  ;;  %v2219_v46 = vadd.f32 %v5338_v41, %v2213_v60  ;;  %v5418_v60 = vld [vmem:[#allocation3 + $0x54] sm:$0xf] }
 0x1fa   : > { %v2295_v5 = vmul.f32 %v4061_v38, %v2293_v8  ;;  %v2371_v9 = vunpack.c.l.bf16 %v5372_v11  ;;  %v2222_v6 = vsub.f32 0.0, %v5379_v19  ;;  %v2285_v39 = vadd.f32 %v5265_v7, %v2279_v40 }
 0x1fb   : > { %v2286_v62 = vadd.f32 %v5277_v53, %v2280_v12  ;;  %v2296_v25 = vmul.f32 %v4061_v38, %v2294_v29  ;;  %4027 = vpow2.f32 %v2146_v23  ;;  %v5395_v41 = vadd.f32 %v4062_v4, %v2219_v46  ;;  %v5420_v12 = vld [vmem:[#allocation3 + $0x58] sm:$0xf] }
 0x1fc   : > { %v2372_v52 = vunpack.c.l.bf16 %v5382_v26  ;;  %v2402_v15 = vadd.f32 %v2401_v43, %v2371_v9  ;;  %v2224_v50 = vmul.f32 1.442695, %v2222_v6  ;;  %v2291_v31 = vadd.f32 %v5280_v3, %v2285_v39 }
 0x1fd   : > { %v2292_v13 = vadd.f32 %v2290_v57, %v2286_v62  ;;  %v2223_v34 = vsub.f32 0.0, %v5395_v41  ;;  %v2373_v58 = vunpack.c.l.bf16 %v5400_v45  ;;  %v2374_v17 = vunpack.c.l.bf16 %v5406_v37  ;;  %v5424_v62 = vld [vmem:[#allocation3 + $0x5c] sm:$0xf] }
 0x1fe   : > { %4029 = vpow2.f32 %v2224_v50  ;;  %v2297_v7 = vadd.f32 %v2295_v5, %v2291_v31  ;;  %v2403_v55 = vadd.f32 %v2402_v15, %v2372_v52  ;;  %v2375_v47 = vunpack.c.l.bf16 %v5412_v27 }
 0x1ff   : > { %v2298_v53 = vadd.f32 %v2296_v25, %v2292_v13  ;;  %v2226_v54 = vmul.f32 1.442695, %v2223_v34  ;;  %v2376_v42 = vunpack.c.l.bf16 %v5414_v0  ;;  %v2377_v57 = vunpack.c.l.bf16 %v5418_v60 }
 0x200   : > { %v5402_v35 = vadd.f32 %v4062_v4, %v2297_v7  ;;  %v2404_v32 = vadd.f32 %v2403_v55, %v2373_v58  ;;  %v2378_v46 = vunpack.c.l.bf16 %v5420_v12  ;;  %v5426_v52 = vld [vmem:[#allocation3 + $0x60] sm:$0xf]  ;;  %v2379_v31 = vunpack.c.l.bf16 %v5424_v62  ;;  %v5432_v55 = vld [vmem:[#allocation3 + $0x64] sm:$0xf] }
 0x201   : > { %v5404_v20 = vadd.f32 %v4062_v4, %v2298_v53  ;;  %4031 = vpow2.f32 %v2226_v54  ;;  %v2380_v34 = vunpack.c.l.bf16 %v5426_v52 }
 0x202   : > { %v2301_v3 = vsub.f32 0.0, %v5402_v35  ;;  %v2405_v21 = vadd.f32 %v2404_v32, %v2374_v17 }
 0x203   : > { %v2302_v51 = vsub.f32 0.0, %v5404_v20 }
 0x204   : > { %v2303_v59 = vmul.f32 1.442695, %v2301_v3  ;;  %v2406_v43 = vadd.f32 %v2405_v21, %v2375_v47 }
 0x205   : > { %v4026_v18 = vpop.eup %4025  ;;  %v2305_v22 = vmul.f32 1.442695, %v2302_v51 }
 0x206   : > { %v2148_v30 = vadd.f32 1.0, %v4026_v18  ;;  %4033 = vpow2.f32 %v2303_v59  ;;  %v2407_v40 = vadd.f32 %v2406_v43, %v2376_v42 }
 0x207   : > { %4035 = vpow2.f32 %v2305_v22 }
 0x208   : > { %v4028_v61 = vpop.eup %4027  ;;  %4037 = vrcp.f32 %v2148_v30  ;;  %v2408_v38 = vadd.f32 %v2407_v40, %v2377_v57 }
 0x209   : > { %v2149_v24 = vadd.f32 1.0, %v4028_v61 }
 0x20a   : > { %v2409_v25 = vadd.f32 %v2408_v38, %v2378_v46 }
 0x20b   : > { %v4030_v8 = vpop.eup %4029  ;;  %4039 = vrcp.f32 %v2149_v24 }
 0x20c   : > { %v2228_v14 = vadd.f32 1.0, %v4030_v8  ;;  %v2410_v7 = vadd.f32 %v2409_v25, %v2379_v31  ;;  %v3768_v31 = vld [vmem:[%s5699_s7] sm:$0xff]  }
 0x20e   : > { %v4032_v33 = vpop.eup %4031  ;;  %4041 = vrcp.f32 %v2228_v14  ;;  %v2411_v51 = vadd.f32 %v2410_v7, %v2380_v34 }
 0x20f   : > { %v2229_v29 = vadd.f32 1.0, %v4032_v33 }
 0x211   : > { %4043 = vrcp.f32 %v2229_v29 }
 0x213   : > { %v4034_v23 = vpop.eup %4033 }
 0x214   : > { %v2307_v5 = vadd.f32 1.0, %v4034_v23  ;;  %v4036_v9 = vpop.eup %4035 }
 0x215   : > { %v4038_v6 = vpop.eup %4037  ;;  %v2308_v39 = vadd.f32 1.0, %v4036_v9 }
 0x216   : > { %4045 = vrcp.f32 %v2307_v5  ;;  %v2152_v15 = vmul.f32 %v4038_v6, %v5358_v28  ;;  %v2381_v28 = vunpack.c.l.bf16 %v5432_v55 }
 0x217   : > { %4047 = vrcp.f32 %v2308_v39 }
 0x218   : > { %v4040_v4 = vpop.eup %4039  ;;  %v2412_v32 = vadd.f32 %v2411_v51, %v2381_v28 }
 0x219   : > { %v2153_v50 = vmul.f32 %v4040_v4, %v5369_v56 }
 0x21b   : > { %v3553_v13 = vpack.c.bf16 %v2153_v50, %v2152_v15  ;;  %v4042_v53 = vpop.eup %4041  ;;  %v3767_v50 = vld [vmem:[%s5699_s7 + $0x8] sm:$0xff]  }
 0x21c   : > { %v2232_v58 = vmul.f32 %v4042_v53, %v5379_v19 }
 0x21d   : > { %3554 = vst [vmem:[#allocation3 + $0x68] sm:$0xff] %v3553_v13   ;;  %v3346_v13 = vld [vmem:[%s5698_s6] ss:$0 sm:$0xff] }
 0x21e   : > { %v4044_v54 = vpop.eup %4043 }
 0x21f   : > { %v2233_v3 = vmul.f32 %v4044_v54, %v5395_v41 }
 0x221   : > { %v3558_v17 = vpack.c.bf16 %v2233_v3, %v2232_v58 }
 0x223   : > { %v4046_v56 = vpop.eup %4045  ;;  %3559 = vst [vmem:[#allocation3 + $0x70] sm:$0xff] %v3558_v17  }
 0x224   : > { %v5437_v18 = vld [vmem:[#allocation3 + $0x68] sm:$0xf]  ;;  %v5439_v59 = vld [vmem:[#allocation3 + $0x6c] sm:$0xf]  ;;  %v4048_v22 = vpop.eup %4047  ;;  %v2311_v21 = vmul.f32 %v4046_v56, %v5402_v35 }
 0x225   : > { %v2382_v30 = vunpack.c.l.bf16 %v5437_v18  ;;  %v2312_v19 = vmul.f32 %v4048_v22, %v5404_v20  ;;  %v2383_v41 = vunpack.c.l.bf16 %v5439_v59  ;;  %v3769_v22 = vld [vmem:[%s5701_s9 + $0x38] sm:$0xff]  }
 0x226   : > { %3683 = vmatprep.subr.bf16.mxu0 %v3769_v22 }
 0x227   : > { %v2413_v61 = vadd.f32 %v2412_v32, %v2382_v30  ;;  %v3563_v24 = vpack.c.bf16 %v2312_v19, %v2311_v21  ;;  %3684 = vmatpush3.bf16.msra.mxu0 %v3769_v22  ;;  %v3770_v30 = vld [vmem:[%s5701_s9 + $0x30] sm:$0xff]   ;;  %v3771_v21 = vld [vmem:[%s5701_s9 + $0x28] sm:$0xff]   ;;  %v3772_v19 = vld [vmem:[%s5701_s9 + $0x20] sm:$0xff]  }
 0x228   : > { %3685 = vmatprep.subr.bf16.mxu0 %v3770_v30 }
 0x229   : > { %v2414_v47 = vadd.f32 %v2413_v61, %v2383_v41  ;;  %3564 = vst [vmem:[#allocation3 + $0x78] sm:$0xff] %v3563_v24   ;;  %v3773_v41 = vld [vmem:[%s5701_s9 + $0x18] sm:$0xff]   ;;  %v3774_v61 = vld [vmem:[%s5701_s9 + $0x10] sm:$0xff]   ;;  %v3775_v24 = vld [vmem:[%s5701_s9 + $0x8] sm:$0xff]  }
 0x22a   : > { %v5445_v8 = vld [vmem:[#allocation3 + $0x70] sm:$0xf]  ;;  %v5447_v42 = vld [vmem:[#allocation3 + $0x74] sm:$0xf] }
 0x22b   : > { %v2384_v43 = vunpack.c.l.bf16 %v5445_v8  ;;  %v2385_v33 = vunpack.c.l.bf16 %v5447_v42  ;;  %3686 = vmatpush3.bf16.msra.mxu0 %v3770_v30  ;;  %v5780_v30 = vld [vmem:[#allocation5_spill] sm:$0xff] }
 0x22c   : > { %3687 = vmatprep.subr.bf16.mxu0 %v3771_v21 }
 0x22d   : > { %v2415_v14 = vadd.f32 %v2414_v47, %v2384_v43  ;;  %v3776_v47 = vld [vmem:[%s5701_s9] sm:$0xff]  }
 0x22e   : > { %v3355_v43 = vld [vmem:[%s5700_s8] ss:$0 sm:$0xff] }
 0x22f   : > { %v2416_v29 = vadd.f32 %v2415_v14, %v2385_v33  ;;  %3688 = vmatpush3.bf16.msra.mxu0 %v3771_v21 }
 0x230   : > { %v5451_v40 = vld [vmem:[#allocation3 + $0x78] sm:$0xf]  ;;  %v5453_v35 = vld [vmem:[#allocation3 + $0x7c] sm:$0xf]  ;;  %3689 = vmatprep.subr.bf16.mxu0 %v3772_v19 }
 0x231   : > { %v2386_v20 = vunpack.c.l.bf16 %v5451_v40  ;;  %v2387_v57 = vunpack.c.l.bf16 %v5453_v35 }
 0x233   : > { %v2417_v23 = vadd.f32 %v2416_v29, %v2386_v20  ;;  %3690 = vmatpush3.bf16.msra.mxu0 %v3772_v19  ;;  %v5781_v19 = vld [vmem:[#allocation9_spill] sm:$0xff] }
 0x234   : > { %3691 = vmatprep.subr.bf16.mxu0 %v3773_v41 }
 0x235   : > { %v2418_v46 = vadd.f32 %v2417_v23, %v2387_v57 }
 0x237   : > { %v2419_v38 = vrot.slane %v2418_v46, 4  ;;  %3692 = vmatpush3.bf16.msra.mxu0 %v3773_v41 }
 0x238   : > { %3693 = vmatprep.subr.bf16.mxu0 %v3774_v61 }
 0x239   : > { %v2420_v5 = vadd.f32 %v2419_v38, %v2418_v46 }
 0x23b   : > { %v2421_v9 = vrot.slane %v2420_v5, 2  ;;  %3694 = vmatpush3.bf16.msra.mxu0 %v3774_v61 }
 0x23c   : > { %3695 = vmatprep.subr.bf16.mxu0 %v3775_v24 }
 0x23d   : > { %v2422_v6 = vadd.f32 %v2421_v9, %v2420_v5 }
 0x23f   : > { %v2423_v39 = vrot.slane %v2422_v6, 1  ;;  %3696 = vmatpush3.bf16.msra.mxu0 %v3775_v24 }
 0x240   : > { %3697 = vmatprep.subr.bf16.mxu0 %v3776_v47 }
 0x241   : > { %v2424_v25 = vadd.f32 %v2423_v39, %v2422_v6 }
 0x243   : > { %v2425_v4 = vmul.f32 0.00390625, %v2424_v25  ;;  %3698 = vmatpush3.bf16.msra.mxu0 %v3776_v47  ;;  %v5773_v25 = vld [vmem:[#allocation4_spill] sm:$0xff] }
 0x245   : > { %v2426_v15 = vpack.c.bf16 %v2425_v4, %v2425_v4  ;;  %v5774_v4 = vsub.s32 0, %v5773_v25 }
 0x247   : > { %3672 = vmatmul.mubr.bf16.vlgmr.msra.gmra.mxu1 %v2426_v15 }
 0x248   : > { %3679 = vmatprep.mubr.msk.bf16.mxu1 %vm4088_vm1, %v5067_v49  ;;  %3676 = vmatpush3.bf16.msra.mxu1 %v3767_v50 }
 0x249   : > { %3677 = vmatprep.subr.bf16.mxu1 %v5067_v49 }
 0x24c   : > { %3678 = vmatpush3.bf16.msra.mxu1 %v3768_v31 }
 0x307   : > { %v2532_v34 = vpop.f32.mrf.mxu1 }
 0x308   : > { %v2533_v7 = vadd.f32 %v3346_v13, %v2532_v34 }
 0x309   : > { %v3673_v53 = vpop.f32.mrf.mxu1 }
 0x30a   : > { %v2538_v54 = vsub.f32 0.0, %v2533_v7 }
 0x30b   : > { %v2535_v58 = vpop.f32.mrf.mxu1 }
 0x30c   : > { %v2539_v3 = vmul.f32 1.442695, %v2538_v54 }
 0x30d   : > { %v3674_v51 = vpop.f32.mrf.mxu1 }
 0x30e   : > { %4049 = vpow2.f32 %v2539_v3 }
 0x31b   : > { %v4050_v17 = vpop.eup %4049 }
 0x31c   : > { %v2541_v28 = vadd.f32 1.0, %v4050_v17  ;;  %v5776_v17 = vld [vmem:[#allocation13_spill] sm:$0xff] }
 0x31e   : > { %4051 = vrcp.f32 %v2541_v28  ;;  %v5777_v28 = vld [vmem:[#allocation12_spill] sm:$0xff] }
 0x32b   : > { %v4052_v49 = vpop.eup %4051 }
 0x32c   : > { %v2543_v56 = vmul.f32 %v4052_v49, %v2533_v7  ;;  %v5778_v49 = vld [vmem:[#allocation14_spill] sm:$0xff] }
 0x32e   : > { %v2544_v32 = vpack.c.bf16 %v2543_v56, %v2543_v56 }
 0x330   : > { %3680 = vmatmul.mubr.msk.bf16.vlgmr.msra.gmra.mxu1 %vm523_vm0, %v2544_v32  ;;  %v5779_v32 = vld [vmem:[#allocation10_spill] sm:$0xff] }
 0x3f0   : > { %v2605_v14 = vpop.f32.mrf.mxu1 }
 0x3f1   : > { %v2606_v33 = vadd.f32 %v3355_v43, %v2605_v14 }
 0x3f2   : > { %v3681_v29 = vpop.f32.mrf.mxu1 }
 0x3f3   : > { %v2611_v20 = vsub.f32 0.0, %v2606_v33 }
 0x3f4   : > { %v2608_v57 = vpop.f32.mrf.mxu1 }
 0x3f5   : > { %v2612_v23 = vmul.f32 1.442695, %v2611_v20 }
 0x3f6   : > { %v3682_v46 = vpop.f32.mrf.mxu1 }
 0x3f7   : > { %4053 = vpow2.f32 %v2612_v23 }
 0x404   : > { %v4054_v38 = vpop.eup %4053 }
 0x405   : > { %v2614_v5 = vadd.f32 1.0, %v4054_v38 }
 0x407   : > { %4055 = vrcp.f32 %v2614_v5 }
 0x414   : > { %v4056_v9 = vpop.eup %4055 }
 0x415   : > { %v2616_v6 = vpack.c.bf16 %v4056_v9, %v4056_v9 }
 0x417   : > { %v2618_v39 = vpack.i.b16 %v2616_v6, %v2616_v6 }
 0x419   : > { %v2623_v15 = vrot.slane %v2618_v39, %v5774_v4  ;;  %v4064_v4 = vld [vmem:[%s4171_s26] sm:$0xff]  }
 0x41b   : > { %v5499_v50 = vcombine.low %v2623_v15, %v2623_v15  ;;  %v2988_v15 = vunpack.c.l.bf16 %v4064_v4 }
 0x41d   : > { %v2628_v31 = vmul.bf16 %v5499_v50, %v5095_v48  ;;  %v2629_v13 = vmul.bf16 %v5499_v50, %v5097_v44  ;;  %v2630_v34 = vmul.bf16 %v5499_v50, %v5116_v63  ;;  %v2631_v7 = vmul.bf16 %v5499_v50, %v5132_v2  ;;  %v5775_v48 = vld [vmem:[#allocation11_spill] sm:$0xff] }
 0x41e   : > { %v2632_v53 = vmul.bf16 %v5499_v50, %v5139_v1  ;;  %v2633_v54 = vmul.bf16 %v5499_v50, %v5231_v10  ;;  %v2634_v44 = vmul.bf16 %v5499_v50, %v5775_v48  ;;  %v2635_v63 = vmul.bf16 %v5499_v50, %v5776_v17  ;;  %v4065_v17 = vld [vmem:[%s4171_s26 + $0x18] sm:$0xff]  }
 0x41f   : > { %v3361_v58 = vcombine.low %v2628_v31, %v2629_v13  ;;  %v3362_v3 = vcombine.low %v2630_v34, %v2631_v7  ;;  %v2636_v2 = vmul.bf16 %v5499_v50, %v5777_v28  ;;  %v2637_v1 = vmul.bf16 %v5499_v50, %v5778_v49 }
 0x420   : > { %v3363_v51 = vcombine.low %v2632_v53, %v2633_v54  ;;  %v3364_v56 = vcombine.low %v2634_v44, %v2635_v63  ;;  %v2638_v22 = vmul.bf16 %v5499_v50, %v5779_v32  ;;  %v2639_v21 = vmul.bf16 %v5499_v50, %v5780_v30 }
 0x421   : > { %3699 = vmatprep.mubr.bf16.mxu0 %v3361_v58  ;;  %v3365_v10 = vcombine.low %v2636_v2, %v2637_v1  ;;  %v2640_v41 = vmul.bf16 %v5499_v50, %v5781_v19  ;;  %v2641_v61 = vmul.bf16 %v5499_v50, %v5297_v36  ;;  %v2642_v43 = vmul.bf16 %v5499_v50, %v5308_v16 }
 0x422   : > { %3700 = vmatmul.mubr.bf16.vlgmr.msra.gmra.mxu0 %v3362_v3  ;;  %v3366_v24 = vcombine.low %v2638_v22, %v2639_v21  ;;  %v2643_v14 = vmul.bf16 %v5499_v50, %v5372_v11  ;;  %v2644_v33 = vmul.bf16 %v5499_v50, %v5382_v26  ;;  %v2645_v29 = vmul.bf16 %v5499_v50, %v5400_v45 }
 0x423   : > { %3703 = vmatprep.mubr.bf16.mxu0 %v3363_v51  ;;  %v3367_v47 = vcombine.low %v2640_v41, %v2641_v61  ;;  %v2646_v36 = vmul.bf16 %v5499_v50, %v5406_v37  ;;  %v2647_v23 = vmul.bf16 %v5499_v50, %v5412_v27  ;;  %v2648_v16 = vmul.bf16 %v5499_v50, %v5414_v0 }
 0x424   : > { %v3368_v20 = vcombine.low %v2642_v43, %v2643_v14  ;;  %v3369_v57 = vcombine.low %v2644_v33, %v2645_v29  ;;  %v2649_v11 = vmul.bf16 %v5499_v50, %v5418_v60  ;;  %v2650_v45 = vmul.bf16 %v5499_v50, %v5420_v12 }
 0x425   : > { %v3370_v26 = vcombine.low %v2646_v36, %v2647_v23  ;;  %v2651_v38 = vmul.bf16 %v5499_v50, %v5424_v62  ;;  %v2652_v37 = vmul.bf16 %v5499_v50, %v5426_v52  ;;  %v2653_v27 = vmul.bf16 %v5499_v50, %v5432_v55 }
 0x426   : > { %v3371_v46 = vcombine.low %v2648_v16, %v2649_v11  ;;  %v2654_v60 = vmul.bf16 %v5499_v50, %v5437_v18  ;;  %v2655_v12 = vmul.bf16 %v5499_v50, %v5439_v59  ;;  %v2656_v62 = vmul.bf16 %v5499_v50, %v5445_v8  ;;  %v5568_v59 = vld [vmem:[%s5702_s10] ss:$0 sm:$0xff]  ;;  %v4063_v8 = vld [vmem:[%s4171_s26 + $0x8] sm:$0xff]  }
 0x427   : > { %v3372_v0 = vcombine.low %v2650_v45, %v2651_v38  ;;  %v3373_v5 = vcombine.low %v2652_v37, %v2653_v27  ;;  %v2657_v52 = vmul.bf16 %v5499_v50, %v5447_v42  ;;  %v2658_v6 = vmul.bf16 %v5499_v50, %v5451_v40 }
 0x428   : > { %v3374_v9 = vcombine.low %v2654_v60, %v2655_v12  ;;  %v2659_v18 = vmul.bf16 %v5499_v50, %v5453_v35  ;;  %v2990_v42 = vunpack.c.l.bf16 %v4063_v8  ;;  %v2991_v35 = vunpack.c.h.bf16 %v4063_v8  ;;  %v4069_v8 = vld [vmem:[%s4171_s26 + $0x38] sm:$0xff]  }
 0x429   : > { %v3375_v55 = vcombine.low %v2656_v62, %v2657_v52  ;;  %v2989_v7 = vunpack.c.h.bf16 %v4064_v4  ;;  %v2994_v63 = vunpack.c.l.bf16 %v4065_v17  ;;  %v2995_v19 = vunpack.c.h.bf16 %v4065_v17 }
 0x42a   : > { %3704 = vmatmul.mubr.bf16.gmra.mxu0 %v3364_v56  ;;  %v3376_v39 = vcombine.low %v2658_v6, %v2659_v18  ;;  %v4066_v56 = vld [vmem:[%s4171_s26 + $0x10] sm:$0xff]  }
 0x42b   : > { %3707 = vmatprep.mubr.bf16.mxu0 %v3365_v10  ;;  %v2992_v10 = vunpack.c.l.bf16 %v4066_v56  ;;  %v2993_v43 = vunpack.c.h.bf16 %v4066_v56 }
 0x432   : > { %3708 = vmatmul.mubr.bf16.gmra.mxu0 %v3366_v24 }
 0x433   : > { %3711 = vmatprep.mubr.bf16.mxu0 %v3367_v47 }
 0x43a   : > { %3712 = vmatmul.mubr.bf16.gmra.mxu0 %v3368_v20 }
 0x43b   : > { %3715 = vmatprep.mubr.bf16.mxu0 %v3369_v57  ;;  %v4067_v57 = vld [vmem:[%s4171_s26 + $0x28] sm:$0xff]  }
 0x43c   : > { %v2998_v36 = vunpack.c.l.bf16 %v4067_v57 }
 0x442   : > { %3716 = vmatmul.mubr.bf16.gmra.mxu0 %v3370_v26 }
 0x443   : > { %3719 = vmatprep.mubr.bf16.mxu0 %v3371_v46  ;;  %v4068_v46 = vld [vmem:[%s4171_s26 + $0x20] sm:$0xff]  }
 0x444   : > { %v2996_v45 = vunpack.c.l.bf16 %v4068_v46 }
 0x44a   : > { %3720 = vmatmul.mubr.bf16.gmra.mxu0 %v3372_v0 }
 0x44b   : > { %3723 = vmatprep.mubr.bf16.mxu0 %v3373_v5  ;;  %v2999_v5 = vunpack.c.h.bf16 %v4067_v57 }
 0x452   : > { %3724 = vmatmul.mubr.bf16.gmra.mxu0 %v3374_v9  ;;  %v2997_v9 = vunpack.c.h.bf16 %v4068_v46 }
 0x453   : > { %3727 = vmatprep.mubr.bf16.mxu0 %v3375_v55 }
 0x45a   : > { %3728 = vmatmul.mubr.bf16.gmra.mxu0 %v3376_v39 }
 0x4e2   : > { %v3701_v25 = vpop.f32.mrf.mxu0 }
 0x4e3   : > { %v2870_v31 = vadd.f32 %v3701_v25, %v5568_v59 }
 0x4e4   : > { %v2861_v13 = vpop.f32.mrf.mxu0 }
 0x4e5   : > { %v3022_v40 = vadd.f32 %v2990_v42, %v2870_v31  ;;  %v2862_v34 = vadd.f32 %v5568_v59, %v2861_v13  ;;  %v3002_v42 = vunpack.c.l.bf16 %v4069_v8  ;;  %v4070_v13 = vld [vmem:[%s4171_s26 + $0x30] sm:$0xff]  }
 0x4e6   : > { %v3702_v50 = vpop.f32.mrf.mxu0 }
 0x4e7   : > { %v3455_v53 = vpack.c.bf16 %v3022_v40, %v3022_v40  ;;  %v3020_v54 = vadd.f32 %v2988_v15, %v2862_v34  ;;  %v2873_v58 = vadd.f32 %v3702_v50, %v5568_v59  ;;  %v3000_v40 = vunpack.c.l.bf16 %v4070_v13 }
 0x4e8   : > { %v2864_v3 = vpop.f32.mrf.mxu0 }
 0x4e9   : > { %3183 = vst.msk [vmem:[%s5579_s29 + $0x8] sm:$0xf] %vm3180_vm2, %v3455_v53  ;;  %v3453_v51 = vpack.c.bf16 %v3020_v54, %v3020_v54  ;;  %v3023_v48 = vadd.f32 %v2991_v35, %v2873_v58  ;;  %v2865_v44 = vadd.f32 %v5568_v59, %v2864_v3  ;;  %v3003_v53 = vunpack.c.h.bf16 %v4069_v8 }
 0x4ea   : > { %v3705_v28 = vpop.f32.mrf.mxu0 }
 0x4eb   : > { %3181 = vst.msk [vmem:[%s5579_s29] sm:$0xf] %vm3180_vm2, %v3453_v51  ;;  %v3456_v2 = vpack.c.bf16 %v3023_v48, %v3023_v48  ;;  %v3021_v49 = vadd.f32 %v2989_v7, %v2865_v44  ;;  %v2886_v1 = vadd.f32 %v3705_v28, %v5568_v59  ;;  %v3001_v48 = vunpack.c.h.bf16 %v4070_v13 }
 0x4ec   : > { %v2877_v32 = vpop.f32.mrf.mxu0 }
 0x4ed   : > { %3184 = vst.msk [vmem:[%s5579_s29 + $0xc] sm:$0xf] %vm3180_vm2, %v3456_v2  ;;  %v3454_v22 = vpack.c.bf16 %v3021_v49, %v3021_v49  ;;  %v3026_v30 = vadd.f32 %v2994_v63, %v2886_v1  ;;  %v2878_v21 = vadd.f32 %v5568_v59, %v2877_v32  ;;  %v4071_v2 = vld [vmem:[%s4171_s26 + $0x48] sm:$0xff]  }
 0x4ee   : > { %v3706_v41 = vpop.f32.mrf.mxu0  ;;  %v3006_v49 = vunpack.c.l.bf16 %v4071_v2 }
 0x4ef   : > { %3182 = vst.msk [vmem:[%s5579_s29 + $0x4] sm:$0xf] %vm3180_vm2, %v3454_v22  ;;  %v3459_v61 = vpack.c.bf16 %v3026_v30, %v3026_v30  ;;  %v3024_v24 = vadd.f32 %v2992_v10, %v2878_v21  ;;  %v2889_v47 = vadd.f32 %v3706_v41, %v5568_v59  ;;  %v4072_v22 = vld [vmem:[%s4171_s26 + $0x40] sm:$0xff]  }
 0x4f0   : > { %v2880_v14 = vpop.f32.mrf.mxu0  ;;  %v3004_v30 = vunpack.c.l.bf16 %v4072_v22 }
 0x4f1   : > { %3187 = vst.msk [vmem:[%s5579_s29 + $0x18] sm:$0xf] %vm3180_vm2, %v3459_v61  ;;  %v3457_v33 = vpack.c.bf16 %v3024_v24, %v3024_v24  ;;  %v3027_v29 = vadd.f32 %v2995_v19, %v2889_v47  ;;  %v2881_v20 = vadd.f32 %v5568_v59, %v2880_v14  ;;  %v3007_v24 = vunpack.c.h.bf16 %v4071_v2 }
 0x4f2   : > { %v3709_v23 = vpop.f32.mrf.mxu0 }
 0x4f3   : > { %3185 = vst.msk [vmem:[%s5579_s29 + $0x10] sm:$0xf] %vm3180_vm2, %v3457_v33  ;;  %v3460_v16 = vpack.c.bf16 %v3027_v29, %v3027_v29  ;;  %v3025_v11 = vadd.f32 %v2993_v43, %v2881_v20  ;;  %v2902_v26 = vadd.f32 %v3709_v23, %v5568_v59  ;;  %v3005_v29 = vunpack.c.h.bf16 %v4072_v22 }
 0x4f4   : > { %v2893_v38 = vpop.f32.mrf.mxu0 }
 0x4f5   : > { %3188 = vst.msk [vmem:[%s5579_s29 + $0x1c] sm:$0xf] %vm3180_vm2, %v3460_v16  ;;  %v3458_v37 = vpack.c.bf16 %v3025_v11, %v3025_v11  ;;  %v3030_v27 = vadd.f32 %v2998_v36, %v2902_v26  ;;  %v2894_v0 = vadd.f32 %v5568_v59, %v2893_v38  ;;  %v4073_v16 = vld [vmem:[%s4171_s26 + $0x58] sm:$0xff]  }
 0x4f6   : > { %v3710_v60 = vpop.f32.mrf.mxu0  ;;  %v3010_v11 = vunpack.c.l.bf16 %v4073_v16 }
 0x4f7   : > { %3186 = vst.msk [vmem:[%s5579_s29 + $0x14] sm:$0xf] %vm3180_vm2, %v3458_v37  ;;  %v3463_v12 = vpack.c.bf16 %v3030_v27, %v3030_v27  ;;  %v3028_v62 = vadd.f32 %v2996_v45, %v2894_v0  ;;  %v2905_v52 = vadd.f32 %v3710_v60, %v5568_v59  ;;  %v4074_v37 = vld [vmem:[%s4171_s26 + $0x50] sm:$0xff]  }
 0x4f8   : > { %v2896_v55 = vpop.f32.mrf.mxu0  ;;  %v3008_v27 = vunpack.c.l.bf16 %v4074_v37 }
 0x4f9   : > { %3191 = vst.msk [vmem:[%s5579_s29 + $0x28] sm:$0xf] %vm3180_vm2, %v3463_v12  ;;  %v3461_v6 = vpack.c.bf16 %v3028_v62, %v3028_v62  ;;  %v3031_v18 = vadd.f32 %v2999_v5, %v2905_v52  ;;  %v2897_v39 = vadd.f32 %v5568_v59, %v2896_v55  ;;  %v3011_v62 = vunpack.c.h.bf16 %v4073_v16 }
 0x4fa   : > { %v3713_v25 = vpop.f32.mrf.mxu0 }
 0x4fb   : > { %3189 = vst.msk [vmem:[%s5579_s29 + $0x20] sm:$0xf] %vm3180_vm2, %v3461_v6  ;;  %v3464_v4 = vpack.c.bf16 %v3031_v18, %v3031_v18  ;;  %v3029_v15 = vadd.f32 %v2997_v9, %v2897_v39  ;;  %v2918_v31 = vadd.f32 %v3713_v25, %v5568_v59  ;;  %v3009_v18 = vunpack.c.h.bf16 %v4074_v37 }
 0x4fc   : > { %v2909_v34 = vpop.f32.mrf.mxu0 }
 0x4fd   : > { %3192 = vst.msk [vmem:[%s5579_s29 + $0x2c] sm:$0xf] %vm3180_vm2, %v3464_v4  ;;  %v3462_v35 = vpack.c.bf16 %v3029_v15, %v3029_v15  ;;  %v3034_v50 = vadd.f32 %v3002_v42, %v2918_v31  ;;  %v2910_v7 = vadd.f32 %v5568_v59, %v2909_v34  ;;  %v4075_v4 = vld [vmem:[%s4171_s26 + $0x68] sm:$0xff]  }
 0x4fe   : > { %v3714_v54 = vpop.f32.mrf.mxu0  ;;  %v3014_v15 = vunpack.c.l.bf16 %v4075_v4 }
 0x4ff   : > { %3190 = vst.msk [vmem:[%s5579_s29 + $0x24] sm:$0xf] %vm3180_vm2, %v3462_v35  ;;  %v3467_v58 = vpack.c.bf16 %v3034_v50, %v3034_v50  ;;  %v3032_v3 = vadd.f32 %v3000_v40, %v2910_v7  ;;  %v2921_v51 = vadd.f32 %v3714_v54, %v5568_v59  ;;  %v4076_v35 = vld [vmem:[%s4171_s26 + $0x60] sm:$0xff]  }
 0x500   : > { %v2912_v44 = vpop.f32.mrf.mxu0  ;;  %v3012_v50 = vunpack.c.l.bf16 %v4076_v35 }
 0x501   : > { %3195 = vst.msk [vmem:[%s5579_s29 + $0x38] sm:$0xf] %vm3180_vm2, %v3467_v58  ;;  %v3465_v17 = vpack.c.bf16 %v3032_v3, %v3032_v3  ;;  %v3035_v63 = vadd.f32 %v3003_v53, %v2921_v51  ;;  %v2913_v28 = vadd.f32 %v5568_v59, %v2912_v44  ;;  %v3015_v3 = vunpack.c.h.bf16 %v4075_v4 }
 0x502   : > { %v3717_v1 = vpop.f32.mrf.mxu0 }
 0x503   : > { %3193 = vst.msk [vmem:[%s5579_s29 + $0x30] sm:$0xf] %vm3180_vm2, %v3465_v17  ;;  %v3468_v56 = vpack.c.bf16 %v3035_v63, %v3035_v63  ;;  %v3033_v10 = vadd.f32 %v3001_v48, %v2913_v28  ;;  %v2934_v32 = vadd.f32 %v3717_v1, %v5568_v59  ;;  %v3013_v63 = vunpack.c.h.bf16 %v4076_v35 }
 0x504   : > { %v2925_v21 = vpop.f32.mrf.mxu0 }
 0x505   : > { %3196 = vst.msk [vmem:[%s5579_s29 + $0x3c] sm:$0xf] %vm3180_vm2, %v3468_v56  ;;  %v3466_v19 = vpack.c.bf16 %v3033_v10, %v3033_v10  ;;  %v3038_v41 = vadd.f32 %v3006_v49, %v2934_v32  ;;  %v2926_v61 = vadd.f32 %v5568_v59, %v2925_v21  ;;  %v4077_v56 = vld [vmem:[%s4171_s26 + $0x78] sm:$0xff]  }
 0x506   : > { %v3718_v47 = vpop.f32.mrf.mxu0  ;;  %v3018_v10 = vunpack.c.l.bf16 %v4077_v56 }
 0x507   : > { %3194 = vst.msk [vmem:[%s5579_s29 + $0x34] sm:$0xf] %vm3180_vm2, %v3466_v19  ;;  %v3471_v43 = vpack.c.bf16 %v3038_v41, %v3038_v41  ;;  %v3036_v14 = vadd.f32 %v3004_v30, %v2926_v61  ;;  %v2937_v33 = vadd.f32 %v3718_v47, %v5568_v59  ;;  %v4078_v19 = vld [vmem:[%s4171_s26 + $0x70] sm:$0xff]  }
 0x508   : > { %v2928_v20 = vpop.f32.mrf.mxu0  ;;  %v3016_v41 = vunpack.c.l.bf16 %v4078_v19 }
 0x509   : > { %3199 = vst.msk [vmem:[%s5579_s29 + $0x48] sm:$0xf] %vm3180_vm2, %v3471_v43  ;;  %v3469_v57 = vpack.c.bf16 %v3036_v14, %v3036_v14  ;;  %v3039_v36 = vadd.f32 %v3007_v24, %v2937_v33  ;;  %v2929_v23 = vadd.f32 %v5568_v59, %v2928_v20  ;;  %v3019_v14 = vunpack.c.h.bf16 %v4077_v56 }
 0x50a   : > { %v3721_v26 = vpop.f32.mrf.mxu0 }
 0x50b   : > { %3197 = vst.msk [vmem:[%s5579_s29 + $0x40] sm:$0xf] %vm3180_vm2, %v3469_v57  ;;  %v3472_v46 = vpack.c.bf16 %v3039_v36, %v3039_v36  ;;  %v3037_v45 = vadd.f32 %v3005_v29, %v2929_v23  ;;  %v2950_v38 = vadd.f32 %v3721_v26, %v5568_v59  ;;  %v3017_v36 = vunpack.c.h.bf16 %v4078_v19 }
 0x50c   : > { %v2941_v0 = vpop.f32.mrf.mxu0 }
 0x50d   : > { %3200 = vst.msk [vmem:[%s5579_s29 + $0x4c] sm:$0xf] %vm3180_vm2, %v3472_v46  ;;  %v3470_v5 = vpack.c.bf16 %v3037_v45, %v3037_v45  ;;  %v3042_v60 = vadd.f32 %v3010_v11, %v2950_v38  ;;  %v2942_v12 = vadd.f32 %v5568_v59, %v2941_v0 }
 0x50e   : > { %v3722_v52 = vpop.f32.mrf.mxu0 }
 0x50f   : > { %3198 = vst.msk [vmem:[%s5579_s29 + $0x44] sm:$0xf] %vm3180_vm2, %v3470_v5  ;;  %v3475_v9 = vpack.c.bf16 %v3042_v60, %v3042_v60  ;;  %v3040_v55 = vadd.f32 %v3008_v27, %v2942_v12  ;;  %v2953_v6 = vadd.f32 %v3722_v52, %v5568_v59 }
 0x510   : > { %v2944_v39 = vpop.f32.mrf.mxu0 }
 0x511   : > { %3203 = vst.msk [vmem:[%s5579_s29 + $0x58] sm:$0xf] %vm3180_vm2, %v3475_v9  ;;  %v3473_v8 = vpack.c.bf16 %v3040_v55, %v3040_v55  ;;  %v3043_v42 = vadd.f32 %v3011_v62, %v2953_v6  ;;  %v2945_v25 = vadd.f32 %v5568_v59, %v2944_v39 }
 0x512   : > { %v3725_v31 = vpop.f32.mrf.mxu0 }
 0x513   : > { %3201 = vst.msk [vmem:[%s5579_s29 + $0x50] sm:$0xf] %vm3180_vm2, %v3473_v8  ;;  %v3476_v13 = vpack.c.bf16 %v3043_v42, %v3043_v42  ;;  %v3041_v40 = vadd.f32 %v3009_v18, %v2945_v25  ;;  %v2966_v34 = vadd.f32 %v3725_v31, %v5568_v59 }
 0x514   : > { %v2957_v7 = vpop.f32.mrf.mxu0 }
 0x515   : > { %3204 = vst.msk [vmem:[%s5579_s29 + $0x5c] sm:$0xf] %vm3180_vm2, %v3476_v13  ;;  %v3474_v53 = vpack.c.bf16 %v3041_v40, %v3041_v40  ;;  %v3046_v54 = vadd.f32 %v3014_v15, %v2966_v34  ;;  %v2958_v58 = vadd.f32 %v5568_v59, %v2957_v7 }
 0x516   : > { %v3726_v51 = vpop.f32.mrf.mxu0 }
 0x517   : > { %3202 = vst.msk [vmem:[%s5579_s29 + $0x54] sm:$0xf] %vm3180_vm2, %v3474_v53  ;;  %v3479_v48 = vpack.c.bf16 %v3046_v54, %v3046_v54  ;;  %v3044_v44 = vadd.f32 %v3012_v50, %v2958_v58  ;;  %v2969_v17 = vadd.f32 %v3726_v51, %v5568_v59 }
 0x518   : > { %v2960_v28 = vpop.f32.mrf.mxu0 }
 0x519   : > { %3207 = vst.msk [vmem:[%s5579_s29 + $0x68] sm:$0xf] %vm3180_vm2, %v3479_v48  ;;  %v3477_v2 = vpack.c.bf16 %v3044_v44, %v3044_v44  ;;  %v3047_v49 = vadd.f32 %v3015_v3, %v2969_v17  ;;  %v2961_v1 = vadd.f32 %v5568_v59, %v2960_v28 }
 0x51a   : > { %v3729_v32 = vpop.f32.mrf.mxu0 }
 0x51b   : > { %3205 = vst.msk [vmem:[%s5579_s29 + $0x60] sm:$0xf] %vm3180_vm2, %v3477_v2  ;;  %v3480_v22 = vpack.c.bf16 %v3047_v49, %v3047_v49  ;;  %v3045_v30 = vadd.f32 %v3013_v63, %v2961_v1  ;;  %v2982_v21 = vadd.f32 %v3729_v32, %v5568_v59 }
 0x51c   : > { %v2973_v61 = vpop.f32.mrf.mxu0 }
 0x51d   : > { %3208 = vst.msk [vmem:[%s5579_s29 + $0x6c] sm:$0xf] %vm3180_vm2, %v3480_v22  ;;  %v3478_v24 = vpack.c.bf16 %v3045_v30, %v3045_v30  ;;  %v3050_v47 = vadd.f32 %v3018_v10, %v2982_v21  ;;  %v2974_v43 = vadd.f32 %v5568_v59, %v2973_v61 }
 0x51e   : > { %v3730_v33 = vpop.f32.mrf.mxu0 }
 0x51f   : > { %3206 = vst.msk [vmem:[%s5579_s29 + $0x64] sm:$0xf] %vm3180_vm2, %v3478_v24  ;;  %v3483_v29 = vpack.c.bf16 %v3050_v47, %v3050_v47  ;;  %v3048_v20 = vadd.f32 %v3016_v41, %v2974_v43  ;;  %v2985_v57 = vadd.f32 %v3730_v33, %v5568_v59 }
 0x520   : > { %v2976_v23 = vpop.f32.mrf.mxu0 }
 0x521   : > { %3211 = vst.msk [vmem:[%s5579_s29 + $0x78] sm:$0xf] %vm3180_vm2, %v3483_v29  ;;  %v3481_v16 = vpack.c.bf16 %v3048_v20, %v3048_v20  ;;  %v3051_v11 = vadd.f32 %v3019_v14, %v2985_v57  ;;  %v2977_v26 = vadd.f32 %v5568_v59, %v2976_v23 }
 0x523   : > { %3209 = vst.msk [vmem:[%s5579_s29 + $0x70] sm:$0xf] %vm3180_vm2, %v3481_v16  ;;  %v3484_v46 = vpack.c.bf16 %v3051_v11, %v3051_v11  ;;  %v3049_v45 = vadd.f32 %v3017_v36, %v2977_v26 }
 0x525   : > { %3212 = vst.msk [vmem:[%s5579_s29 + $0x7c] sm:$0xf] %vm3180_vm2, %v3484_v46  ;;  %v3482_v38 = vpack.c.bf16 %v3049_v45, %v3049_v45 }
 0x527   : > { %3210 = vst.msk [vmem:[%s5579_s29 + $0x74] sm:$0xf] %vm3180_vm2, %v3482_v38 }
 0x528 PF: > { %s21_s17 = sadd.s32 1, %s4085_s17  }
 0x529   : > { %p18_p4 = scmp.ge.s32.totalorder %s21_s17, 4  }
 0x52b   :  { %20 = sbr.rel (!%p18_p4) target bundleno = 1 (0x1), region = 126 }

</bundles_post_ra>
